<compile_context>
chip_gen: v7x
topology: tpu7x:2x2x1
jax: 0.10.0
libtpu: 0.0.40
codegen_flags: <defaults>
</compile_context>

<pallas_src>
import functools

import jax
import jax.numpy as jnp
from jax.experimental import pallas as pl
from jax.experimental.pallas import tpu as pltpu

DIM = 1
HID = 256


def _leaky_relu(x, alpha=0.01):
    # Equivalent to where(x >= 0, x, alpha*x) for 0 < alpha < 1, one VALU op cheaper.
    return jnp.maximum(x, alpha * x)


def escape_mlp_kernel(x_ref,
                      w1_ref, b1_ref,
                      w2_ref, b2_ref,
                      w3_ref, b3_ref,
                      w4_ref, b4_ref,
                      o_ref):
    # x_ref: (tile_n, 1) f32
    # w1_ref / w4_ref: (1, HID) f32 rows;  w2_ref / w3_ref: (HID, HID) bf16/f32
    # b1..b3: (1, HID) f32;  b4: (1, 1) f32
    x = x_ref[...]

    # Layer 1: fan_in == 1 -> Linear is an outer product. VPU broadcast, no MXU.
    h = x * w1_ref[...] + b1_ref[...]                       # (tile_n, HID) f32
    h = _leaky_relu(h)                                      # Dropout -> identity (eval)

    # Layers 2 & 3: the two real 256x256 matmuls on the MXU (f32 accumulation).
    h = jnp.dot(h.astype(w2_ref.dtype), w2_ref[...],
                preferred_element_type=jnp.float32) + b2_ref[...]
    h = _leaky_relu(h)

    h = jnp.dot(h.astype(w3_ref.dtype), w3_ref[...],
                preferred_element_type=jnp.float32) + b3_ref[...]
    h = _leaky_relu(h)

    # Layer 4: fan_out == 1 -> cross-lane reduction (XLU) instead of a matmul.
    logit = jnp.sum(h * w4_ref[...], axis=-1, keepdims=True) + b4_ref[...]
    o_ref[...] = jax.nn.sigmoid(logit).astype(o_ref.dtype)  # (tile_n, 1)


def prepare_params(params, weight_dtype=jnp.bfloat16):
    """One-time parameter prep (hoisted out of the per-call path).

    `weight_dtype` applies only to the two 256x256 MXU weights (W2, W3); bf16 is
    the default (native MXU path on all generations, f32 accumulation in-kernel).
    Layer-1 broadcast row, biases, and the layer-4 reduce row stay f32 so
    elementwise math never runs in bf16 (important on v5e).
    """
    w1, b1, w2, b2, w3, b3, w4, b4 = params
    return (
        jnp.asarray(w1, jnp.float32).reshape(1, HID),    # (DIM, HID) -> row
        jnp.asarray(b1, jnp.float32).reshape(1, HID),
        jnp.asarray(w2, weight_dtype),
        jnp.asarray(b2, jnp.float32).reshape(1, HID),
        jnp.asarray(w3, weight_dtype),
        jnp.asarray(b3, jnp.float32).reshape(1, HID),
        jnp.asarray(w4, jnp.float32).reshape(1, HID),    # (HID, DIM) -> row
        jnp.asarray(b4, jnp.float32).reshape(1, 1),
    )


def _round_up(n, m):
    return ((n + m - 1) // m) * m


@functools.partial(jax.jit, static_argnames=("tile_n",))
def escape_model_forward(x, prepared_params, *, tile_n=2048):
    """x: (N, 1) float -> (N, 1) float32 (eval-mode forward).

    tile_n=2048: amortizes the ~0.35us/step grid overhead while keeping the
    (tile_n, 256) f32 intermediates (~2 MiB each) inside v7x's 32 MiB scoped
    VMEM. Re-derive per generation before pushing it higher (v6e/v5e have
    128 MiB VMEM and would tolerate 4096+ with a raised vmem_limit_bytes).
    """
    w1, b1, w2, b2, w3, b3, w4, b4 = prepared_params

    x = x.astype(jnp.float32)
    n = x.shape[0]

    # Don't pad tiny batches all the way to tile_n; block sublane dim must stay
    # a multiple of 8 (or equal the full padded extent, which it does here).
    tile = min(tile_n, _round_up(n, 8))
    n_tiles = pl.cdiv(n, tile)
    n_pad = n_tiles * tile
    if n_pad != n:
        # Lane-thin (N, 1) pad: 4 bytes/row, negligible; avoids a hard assert.
        x = jnp.pad(x, ((0, n_pad - n), (0, 0)))

    # Constant index_map -> DMA'd once, reused every grid step (weights resident).
    const = lambda shape: pl.BlockSpec(shape, lambda i: (0, 0))

    out = pl.pallas_call(
        escape_mlp_kernel,
        out_shape=jax.ShapeDtypeStruct((n_pad, DIM), jnp.float32),
        grid_spec=pltpu.PrefetchScalarGridSpec(
            num_scalar_prefetch=0,
            grid=(n_tiles,),
            in_specs=[
                pl.BlockSpec((tile, DIM), lambda i: (i, 0)),     # x (lane-thin)
                const((1, HID)), const((1, HID)),                # W1 row, b1
                const((HID, HID)), const((1, HID)),              # W2, b2
                const((HID, HID)), const((1, HID)),              # W3, b3
                const((1, HID)), const((1, 1)),                  # W4 row, b4
            ],
            out_specs=pl.BlockSpec((tile, DIM), lambda i: (i, 0)),
        ),
        compiler_params=pltpu.CompilerParams(
            # Batch-tile axis is embarrassingly parallel (shards across TCs);
            # on v7x keep n_tiles >= 4 so each core still pipelines >= 2 steps.
            dimension_semantics=(pltpu.PARALLEL,),
            # Explicit cap == v7x default scoped budget; kernel uses ~10-12 MiB
            # at tile_n=2048, so this documents headroom rather than raising it.
            vmem_limit_bytes=32 * 1024 * 1024,
        ),
    )(x, w1, b1, w2, b2, w3, b3, w4, b4)

    return out[:n] if n_pad != n else out


def init_params(key):
    """Deterministic params mimicking PyTorch nn.Linear default init:
    U(-1/sqrt(fan_in), 1/sqrt(fan_in)) for both weight and bias."""
    def linear(key, fan_in, fan_out):
        kw, kb = jax.random.split(key)
        bound = 1.0 / jnp.sqrt(jnp.float32(fan_in))
        w = jax.random.uniform(kw, (fan_in, fan_out), jnp.float32, -bound, bound)
        b = jax.random.uniform(kb, (fan_out,), jnp.float32, -bound, bound)
        return w, b

    k1, k2, k3, k4 = jax.random.split(key, 4)
    w1, b1 = linear(k1, DIM, HID)
    w2, b2 = linear(k2, HID, HID)
    w3, b3 = linear(k3, HID, HID)
    w4, b4 = linear(k4, HID, DIM)
    return (w1, b1, w2, b2, w3, b3, w4, b4)


def reference_forward(x, params):
    """Pure-JAX reference of the PyTorch forward (eval mode)."""
    w1, b1, w2, b2, w3, b3, w4, b4 = params
    h = jnp.where(x >= 0, x, 0.01 * x)  # applied after each linear below
    h = x @ w1 + b1
    h = jnp.where(h >= 0, h, 0.01 * h)
    h = h @ w2 + b2
    h = jnp.where(h >= 0, h, 0.01 * h)
    h = h @ w3 + b3
    h = jnp.where(h >= 0, h, 0.01 * h)
    return jax.nn.sigmoid(h @ w4 + b4)


if __name__ == "__main__":
    key = jax.random.PRNGKey(0)
    k_param, k_x = jax.random.split(key)

    params = init_params(k_param)

    # Small deterministic demo batch (scalar-feature regression input: (N, 1)).
    N = 512
    x = jax.random.uniform(k_x, (N, DIM), jnp.float32, -2.0, 2.0)
    ref = reference_forward(x, params)

    # Default path: bf16 W2/W3 on the MXU, f32 accumulation / elementwise.
    prepared = prepare_params(params)  # weight_dtype defaults to bf16
    out = jax.block_until_ready(escape_model_forward(x, prepared))
    assert out.shape == (N, DIM)
    assert jnp.max(jnp.abs(out - ref)) < 2e-2, "bf16 mismatch vs pure-JAX reference"

    # f32 weight path (tighter numerical parity with the PyTorch f32 model).
    prepared_f32 = prepare_params(params, weight_dtype=jnp.float32)
    out_f32 = jax.block_until_ready(escape_model_forward(x, prepared_f32))
    assert jnp.max(jnp.abs(out_f32 - ref)) < 1e-4, "f32 mismatch vs reference"

    # Non-tile-aligned batch (exercises the pad/slice tail path, no hard assert).
    out_odd = jax.block_until_ready(escape_model_forward(x[:333], prepared))
    assert out_odd.shape == (333, DIM)
    assert jnp.max(jnp.abs(out_odd - ref[:333])) < 2e-2, "tail mismatch vs reference"

    print("KERNEL_OK")
</pallas_src>

<mosaic_0001>
module attributes {stable_mosaic.version = 11 : i64} {
  func.func @escape_mlp_kernel(%arg0: i32, %arg1: memref<512x1xf32, #tpu.memory_space<vmem>>, %arg2: memref<1x256xf32, #tpu.memory_space<vmem>>, %arg3: memref<1x256xf32, #tpu.memory_space<vmem>>, %arg4: memref<256x256xbf16, #tpu.memory_space<vmem>>, %arg5: memref<1x256xf32, #tpu.memory_space<vmem>>, %arg6: memref<256x256xbf16, #tpu.memory_space<vmem>>, %arg7: memref<1x256xf32, #tpu.memory_space<vmem>>, %arg8: memref<1x256xf32, #tpu.memory_space<vmem>>, %arg9: memref<1x1xf32, #tpu.memory_space<vmem>>, %arg10: memref<512x1xf32, #tpu.memory_space<vmem>>) attributes {dimension_semantics = [#tpu.dimension_semantics<parallel>], iteration_bounds = array<i64: 1>, scalar_prefetch = 0 : i64, scratch_operands = 0 : i64, tpu.core_type = #tpu.core_type<tc>, window_params = [{transform_indices = @transform_0, window_bounds = array<i64: 512, 1>}, {pipeline_mode = #tpu.pipeline_mode<synchronous>, transform_indices = @transform_1, window_bounds = array<i64: 1, 256>}, {pipeline_mode = #tpu.pipeline_mode<synchronous>, transform_indices = @transform_2, window_bounds = array<i64: 1, 256>}, {pipeline_mode = #tpu.pipeline_mode<synchronous>, transform_indices = @transform_3, window_bounds = array<i64: 256, 256>}, {pipeline_mode = #tpu.pipeline_mode<synchronous>, transform_indices = @transform_4, window_bounds = array<i64: 1, 256>}, {pipeline_mode = #tpu.pipeline_mode<synchronous>, transform_indices = @transform_5, window_bounds = array<i64: 256, 256>}, {pipeline_mode = #tpu.pipeline_mode<synchronous>, transform_indices = @transform_6, window_bounds = array<i64: 1, 256>}, {pipeline_mode = #tpu.pipeline_mode<synchronous>, transform_indices = @transform_7, window_bounds = array<i64: 1, 256>}, {pipeline_mode = #tpu.pipeline_mode<synchronous>, transform_indices = @transform_8, window_bounds = array<i64: 1, 1>}, {transform_indices = @transform_9, window_bounds = array<i64: 512, 1>}]} {
    %c0 = arith.constant 0 : index
    %c0_0 = arith.constant 0 : index
    %0 = vector.load %arg1[%c0, %c0_0] : memref<512x1xf32, #tpu.memory_space<vmem>>, vector<512x1xf32>
    %c0_1 = arith.constant 0 : index
    %c0_2 = arith.constant 0 : index
    %1 = vector.load %arg2[%c0_1, %c0_2] : memref<1x256xf32, #tpu.memory_space<vmem>>, vector<1x256xf32>
    %2 = vector.broadcast %0 : vector<512x1xf32> to vector<512x256xf32>
    %3 = vector.broadcast %1 : vector<1x256xf32> to vector<512x256xf32>
    %4 = arith.mulf %2, %3 : vector<512x256xf32>
    %c0_3 = arith.constant 0 : index
    %c0_4 = arith.constant 0 : index
    %5 = vector.load %arg3[%c0_3, %c0_4] : memref<1x256xf32, #tpu.memory_space<vmem>>, vector<1x256xf32>
    %6 = vector.broadcast %5 : vector<1x256xf32> to vector<512x256xf32>
    %7 = arith.addf %4, %6 : vector<512x256xf32>
    %cst = arith.constant 0.00999999977 : f32
    %8 = vector.broadcast %cst : f32 to vector<512x256xf32>
    %9 = arith.mulf %8, %7 : vector<512x256xf32>
    %10 = arith.maximumf %7, %9 : vector<512x256xf32>
    %11 = arith.truncf %10 : vector<512x256xf32> to vector<512x256xbf16>
    %c0_5 = arith.constant 0 : index
    %c0_6 = arith.constant 0 : index
    %12 = vector.load %arg4[%c0_5, %c0_6] : memref<256x256xbf16, #tpu.memory_space<vmem>>, vector<256x256xbf16>
    %cst_7 = arith.constant dense<0.000000e+00> : vector<512x256xf32>
    %13 = tpu.matmul %11, %12, %cst_7 {dimension_numbers = #tpu.dot_dimension_numbers<[1], [0], [0], [1], [0, 0, 1, 1], [], []>} : vector<512x256xbf16>, vector<256x256xbf16>, vector<512x256xf32> -> vector<512x256xf32>
    %c0_8 = arith.constant 0 : index
    %c0_9 = arith.constant 0 : index
    %14 = vector.load %arg5[%c0_8, %c0_9] : memref<1x256xf32, #tpu.memory_space<vmem>>, vector<1x256xf32>
    %15 = vector.broadcast %14 : vector<1x256xf32> to vector<512x256xf32>
    %16 = arith.addf %13, %15 : vector<512x256xf32>
    %cst_10 = arith.constant 0.00999999977 : f32
    %17 = vector.broadcast %cst_10 : f32 to vector<512x256xf32>
    %18 = arith.mulf %17, %16 : vector<512x256xf32>
    %19 = arith.maximumf %16, %18 : vector<512x256xf32>
    %20 = arith.truncf %19 : vector<512x256xf32> to vector<512x256xbf16>
    %c0_11 = arith.constant 0 : index
    %c0_12 = arith.constant 0 : index
    %21 = vector.load %arg6[%c0_11, %c0_12] : memref<256x256xbf16, #tpu.memory_space<vmem>>, vector<256x256xbf16>
    %cst_13 = arith.constant dense<0.000000e+00> : vector<512x256xf32>
    %22 = tpu.matmul %20, %21, %cst_13 {dimension_numbers = #tpu.dot_dimension_numbers<[1], [0], [0], [1], [0, 0, 1, 1], [], []>} : vector<512x256xbf16>, vector<256x256xbf16>, vector<512x256xf32> -> vector<512x256xf32>
    %c0_14 = arith.constant 0 : index
    %c0_15 = arith.constant 0 : index
    %23 = vector.load %arg7[%c0_14, %c0_15] : memref<1x256xf32, #tpu.memory_space<vmem>>, vector<1x256xf32>
    %24 = vector.broadcast %23 : vector<1x256xf32> to vector<512x256xf32>
    %25 = arith.addf %22, %24 : vector<512x256xf32>
    %cst_16 = arith.constant 0.00999999977 : f32
    %26 = vector.broadcast %cst_16 : f32 to vector<512x256xf32>
    %27 = arith.mulf %26, %25 : vector<512x256xf32>
    %28 = arith.maximumf %25, %27 : vector<512x256xf32>
    %c0_17 = arith.constant 0 : index
    %c0_18 = arith.constant 0 : index
    %29 = vector.load %arg8[%c0_17, %c0_18] : memref<1x256xf32, #tpu.memory_space<vmem>>, vector<1x256xf32>
    %30 = vector.broadcast %29 : vector<1x256xf32> to vector<512x256xf32>
    %31 = arith.mulf %28, %30 : vector<512x256xf32>
    %cst_19 = arith.constant dense<0.000000e+00> : vector<512xf32>
    %32 = vector.multi_reduction <add>, %31, %cst_19 [1] : vector<512x256xf32> to vector<512xf32>
    %33 = vector.shape_cast %32 : vector<512xf32> to vector<512x1xf32>
    %c0_20 = arith.constant 0 : index
    %c0_21 = arith.constant 0 : index
    %34 = vector.load %arg9[%c0_20, %c0_21] : memref<1x1xf32, #tpu.memory_space<vmem>>, vector<1x1xf32>
    %35 = vector.broadcast %34 : vector<1x1xf32> to vector<512x1xf32>
    %36 = arith.addf %33, %35 : vector<512x1xf32>
    %37 = arith.negf %36 : vector<512x1xf32>
    %38 = math.exp %37 : vector<512x1xf32>
    %cst_22 = arith.constant 1.000000e+00 : f32
    %39 = vector.broadcast %cst_22 : f32 to vector<512x1xf32>
    %40 = arith.addf %39, %38 : vector<512x1xf32>
    %41 = arith.divf %39, %40 : vector<512x1xf32>
    %c0_23 = arith.constant 0 : index
    %c0_24 = arith.constant 0 : index
    %42 = vector.load %arg10[%c0_23, %c0_24] : memref<512x1xf32, #tpu.memory_space<vmem>>, vector<512x1xf32>
    tpu.vector_store %arg10[%c0_23, %c0_24], %41 {strides = array<i32>} : memref<512x1xf32, #tpu.memory_space<vmem>>, vector<512x1xf32>,
    return
  }
  func.func @transform_0(%arg0: i32) -> (i32, i32) {
    %c0_i32 = arith.constant 0 : i32
    %c0_i32_0 = arith.constant 0 : i32
    return %arg0, %c0_i32 : i32, i32
  }
  func.func @transform_1(%arg0: i32) -> (i32, i32) {
    %c0_i32 = arith.constant 0 : i32
    %c0_i32_0 = arith.constant 0 : i32
    %c0_i32_1 = arith.constant 0 : i32
    return %c0_i32, %c0_i32_0 : i32, i32
  }
  func.func @transform_2(%arg0: i32) -> (i32, i32) {
    %c0_i32 = arith.constant 0 : i32
    %c0_i32_0 = arith.constant 0 : i32
    %c0_i32_1 = arith.constant 0 : i32
    return %c0_i32, %c0_i32_0 : i32, i32
  }
  func.func @transform_3(%arg0: i32) -> (i32, i32) {
    %c0_i32 = arith.constant 0 : i32
    %c0_i32_0 = arith.constant 0 : i32
    %c0_i32_1 = arith.constant 0 : i32
    return %c0_i32, %c0_i32_0 : i32, i32
  }
  func.func @transform_4(%arg0: i32) -> (i32, i32) {
    %c0_i32 = arith.constant 0 : i32
    %c0_i32_0 = arith.constant 0 : i32
    %c0_i32_1 = arith.constant 0 : i32
    return %c0_i32, %c0_i32_0 : i32, i32
  }
  func.func @transform_5(%arg0: i32) -> (i32, i32) {
    %c0_i32 = arith.constant 0 : i32
    %c0_i32_0 = arith.constant 0 : i32
    %c0_i32_1 = arith.constant 0 : i32
    return %c0_i32, %c0_i32_0 : i32, i32
  }
  func.func @transform_6(%arg0: i32) -> (i32, i32) {
    %c0_i32 = arith.constant 0 : i32
    %c0_i32_0 = arith.constant 0 : i32
    %c0_i32_1 = arith.constant 0 : i32
    return %c0_i32, %c0_i32_0 : i32, i32
  }
  func.func @transform_7(%arg0: i32) -> (i32, i32) {
    %c0_i32 = arith.constant 0 : i32
    %c0_i32_0 = arith.constant 0 : i32
    %c0_i32_1 = arith.constant 0 : i32
    return %c0_i32, %c0_i32_0 : i32, i32
  }
  func.func @transform_8(%arg0: i32) -> (i32, i32) {
    %c0_i32 = arith.constant 0 : i32
    %c0_i32_0 = arith.constant 0 : i32
    %c0_i32_1 = arith.constant 0 : i32
    return %c0_i32, %c0_i32_0 : i32, i32
  }
  func.func @transform_9(%arg0: i32) -> (i32, i32) {
    %c0_i32 = arith.constant 0 : i32
    %c0_i32_0 = arith.constant 0 : i32
    return %arg0, %c0_i32 : i32, i32
  }
}

</mosaic_0001>

<bundles_post_ra>
// kernel: escape_model_forward.1
= control target key start
LH: loop header
LB: loop body
LE: loop exit
PB: predicated region body
PF: predicated region fallthrough
CT: control target
= control target key end

     0   :  { %v4049_v0 = vmov 0   ;;  %vm3495_vm0 = vcmask 7168   ;;  %s5544_s0 = inlined_call_operand.vmem [shape: f32[512,1], index: 0, kind: input, shape index: {}]   ;;  %s5545_s3 = inlined_call_operand.vmem [shape: bf16[256,256], index: 3, kind: input, shape index: {}]   ;;  %s5546_s1 = inlined_call_operand.vmem [shape: f32[1,256], index: 1, kind: input, shape index: {}]   ;;  %s5547_s2 = inlined_call_operand.vmem [shape: f32[1,256], index: 2, kind: input, shape index: {}]   ;;  %s5548_s5 = inlined_call_operand.vmem [shape: bf16[256,256], index: 5, kind: input, shape index: {}]   ;;  %s5549_s4 = inlined_call_operand.vmem [shape: f32[1,256], index: 4, kind: input, shape index: {}]   ;;  %s5550_s6 = inlined_call_operand.vmem [shape: f32[1,256], index: 6, kind: input, shape index: {}]   ;;  %s5551_s7 = inlined_call_operand.vmem [shape: f32[1,256], index: 7, kind: input, shape index: {}]   ;;  %s5552_s8 = inlined_call_operand.<no memory space> [shape: f32[1,1], index: 8, kind: input, shape index: {}]   ;;  %s5553_s9 = inlined_call_operand.vmem [shape: f32[512,1], index: 9, kind: output, shape index: {}]  }
   0x1   :  { %3695 = vset.pattern.permute.xlu1 %v4049_v0  ;;  %3694 = vset.pattern.permute.xlu0 %v4049_v0  ;;  %v36_v1 = vld [vmem:[%s5544_s0 + $0x10] sm:$0xff]  ;;  %v34_v2 = vld [vmem:[%s5544_s0] sm:$0xff]  ;;  %v37_v3 = vld [vmem:[%s5544_s0 + $0x18] sm:$0xff] }
   0x2   :  { %111 = vperm.xlu1 %3695, %v36_v1   ;;  %101 = vperm.xlu0 %3694, %v34_v2   ;;  %v35_v4 = vld [vmem:[%s5544_s0 + $0x8] sm:$0xff]  ;;  %v38_v6 = vld [vmem:[%s5544_s0 + $0x20] sm:$0xff]  ;;  %v41_v7 = vld [vmem:[%s5544_s0 + $0x38] sm:$0xff] }
   0x3   :  { %v39_v5 = vld [vmem:[%s5544_s0 + $0x28] sm:$0xff]  ;;  %v40_v8 = vld [vmem:[%s5544_s0 + $0x30] sm:$0xff]  ;;  %v42_v10 = vld [vmem:[%s5544_s0 + $0x40] sm:$0xff] }
   0x4   :  { %v43_v9 = vld [vmem:[%s5544_s0 + $0x48] sm:$0xff]  ;;  %v3699_v13 = vld [vmem:[%s5545_s3 + $0x14] ss:$8 sps:$4 sm:$0xff]   ;;  %v3701_v16 = vld [vmem:[%s5545_s3 + $0x10] ss:$8 sps:$4 sm:$0xff]  }
   0x5   :  { %v3696_v11 = vld [vmem:[%s5545_s3 + $0x4] ss:$8 sps:$4 sm:$0xff]   ;;  %v3698_v12 = vld [vmem:[%s5545_s3] ss:$8 sps:$4 sm:$0xff]   ;;  %v45_v14 = vld [vmem:[%s5544_s0 + $0x58] sm:$0xff] }
   0x6   :  { %116 = vperm.xlu1 %3695, %v37_v3   ;;  %106 = vperm.xlu0 %3694, %v35_v4   ;;  %v44_v15 = vld [vmem:[%s5544_s0 + $0x50] sm:$0xff]  ;;  %v3702_v17 = vld [vmem:[%s5545_s3 + $0x24] ss:$8 sps:$4 sm:$0xff]   ;;  %v3704_v20 = vld [vmem:[%s5545_s3 + $0x20] ss:$8 sps:$4 sm:$0xff]  }
   0x7   :  { %1222 = vmatprep.subr.bf16.mxu0 %v3696_v11  ;;  %v47_v18 = vld [vmem:[%s5544_s0 + $0x68] sm:$0xff]  ;;  %v46_v19 = vld [vmem:[%s5544_s0 + $0x60] sm:$0xff]  ;;  %v3705_v21 = vld [vmem:[%s5545_s3 + $0x34] ss:$8 sps:$4 sm:$0xff]  }
   0x8   :  { %1223 = vmatpush1.bf16.msra.mxu0 %v3698_v12  ;;  %v49_v22 = vld [vmem:[%s5544_s0 + $0x78] sm:$0xff]  ;;  %v48_v23 = vld [vmem:[%s5544_s0 + $0x70] sm:$0xff]  ;;  %v3708_v25 = vld [vmem:[%s5545_s3 + $0x44] ss:$8 sps:$4 sm:$0xff]  }
   0x9   :  { %1224 = vmatprep.subr.bf16.mxu0 %v3699_v13  ;;  %v3707_v24 = vld [vmem:[%s5545_s3 + $0x30] ss:$8 sps:$4 sm:$0xff]   ;;  %v51_v26 = vld [vmem:[%s5544_s0 + $0x88] sm:$0xff]  ;;  %v50_v27 = vld [vmem:[%s5544_s0 + $0x80] sm:$0xff] }
   0xa   :  { %126 = vperm.xlu1 %3695, %v39_v5   ;;  %121 = vperm.xlu0 %3694, %v38_v6   ;;  %v3710_v28 = vld [vmem:[%s5545_s3 + $0x40] ss:$8 sps:$4 sm:$0xff]   ;;  %v3711_v29 = vld [vmem:[%s5545_s3 + $0x54] ss:$8 sps:$4 sm:$0xff]   ;;  %v3713_v32 = vld [vmem:[%s5545_s3 + $0x50] ss:$8 sps:$4 sm:$0xff]  }
   0xb   :  { %v53_v30 = vld [vmem:[%s5544_s0 + $0x98] sm:$0xff]  ;;  %v52_v31 = vld [vmem:[%s5544_s0 + $0x90] sm:$0xff]  ;;  %v3714_v33 = vld [vmem:[%s5545_s3 + $0x64] ss:$8 sps:$4 sm:$0xff]  }
   0xc   :  { %1225 = vmatpush1.bf16.msra.mxu0 %v3701_v16  ;;  %v55_v34 = vld [vmem:[%s5544_s0 + $0xa8] sm:$0xff]  ;;  %v54_v35 = vld [vmem:[%s5544_s0 + $0xa0] sm:$0xff]  ;;  %v3717_v37 = vld [vmem:[%s5545_s3 + $0x74] ss:$8 sps:$4 sm:$0xff]  }
   0xd   :  { %1226 = vmatprep.subr.bf16.mxu0 %v3702_v17  ;;  %v3716_v36 = vld [vmem:[%s5545_s3 + $0x60] ss:$8 sps:$4 sm:$0xff]   ;;  %v57_v38 = vld [vmem:[%s5544_s0 + $0xb8] sm:$0xff]  ;;  %v56_v39 = vld [vmem:[%s5544_s0 + $0xb0] sm:$0xff] }
   0xe   :  { %136 = vperm.xlu1 %3695, %v41_v7   ;;  %131 = vperm.xlu0 %3694, %v40_v8   ;;  %v3719_v40 = vld [vmem:[%s5545_s3 + $0x70] ss:$8 sps:$4 sm:$0xff]   ;;  %v3720_v41 = vld [vmem:[%s5545_s3 + $0x84] ss:$8 sps:$4 sm:$0xff]   ;;  %v3722_v44 = vld [vmem:[%s5545_s3 + $0x80] ss:$8 sps:$4 sm:$0xff]  }
   0xf   :  { %v59_v42 = vld [vmem:[%s5544_s0 + $0xc8] sm:$0xff]  ;;  %v58_v43 = vld [vmem:[%s5544_s0 + $0xc0] sm:$0xff]  ;;  %v3723_v45 = vld [vmem:[%s5545_s3 + $0x94] ss:$8 sps:$4 sm:$0xff]  }
  0x10   :  { %1227 = vmatpush1.bf16.msra.mxu0 %v3704_v20  ;;  %v61_v46 = vld [vmem:[%s5544_s0 + $0xd8] sm:$0xff]  ;;  %v60_v47 = vld [vmem:[%s5544_s0 + $0xd0] sm:$0xff]  ;;  %v3726_v49 = vld [vmem:[%s5545_s3 + $0xa4] ss:$8 sps:$4 sm:$0xff]  }
  0x11   :  { %1228 = vmatprep.subr.bf16.mxu0 %v3705_v21  ;;  %v3725_v48 = vld [vmem:[%s5545_s3 + $0x90] ss:$8 sps:$4 sm:$0xff]   ;;  %v63_v50 = vld [vmem:[%s5544_s0 + $0xe8] sm:$0xff]  ;;  %v62_v51 = vld [vmem:[%s5544_s0 + $0xe0] sm:$0xff] }
  0x12   :  { %146 = vperm.xlu1 %3695, %v43_v9   ;;  %141 = vperm.xlu0 %3694, %v42_v10   ;;  %v3728_v52 = vld [vmem:[%s5545_s3 + $0xa0] ss:$8 sps:$4 sm:$0xff]   ;;  %v3729_v53 = vld [vmem:[%s5545_s3 + $0xb4] ss:$8 sps:$4 sm:$0xff]   ;;  %v3731_v56 = vld [vmem:[%s5545_s3 + $0xb0] ss:$8 sps:$4 sm:$0xff]  }
  0x13   :  { %v65_v54 = vld [vmem:[%s5544_s0 + $0xf8] sm:$0xff]  ;;  %v64_v55 = vld [vmem:[%s5544_s0 + $0xf0] sm:$0xff]  ;;  %v3732_v57 = vld [vmem:[%s5545_s3 + $0xc4] ss:$8 sps:$4 sm:$0xff]  }
  0x14   :  { %1229 = vmatpush1.bf16.msra.mxu0 %v3707_v24  ;;  %v67_v58 = vld [vmem:[%s5544_s0 + $0x108] sm:$0xff]  ;;  %v66_v59 = vld [vmem:[%s5544_s0 + $0x100] sm:$0xff]  ;;  %v3735_v61 = vld [vmem:[%s5545_s3 + $0xd4] ss:$8 sps:$4 sm:$0xff]  }
  0x15   :  { %1230 = vmatprep.subr.bf16.mxu0 %v3708_v25  ;;  %v3734_v60 = vld [vmem:[%s5545_s3 + $0xc0] ss:$8 sps:$4 sm:$0xff]   ;;  %v69_v62 = vld [vmem:[%s5544_s0 + $0x118] sm:$0xff]  ;;  %v68_v63 = vld [vmem:[%s5544_s0 + $0x110] sm:$0xff] }
  0x16   :  { %156 = vperm.xlu1 %3695, %v45_v14   ;;  %151 = vperm.xlu0 %3694, %v44_v15   ;;  %v3737_v0 = vld [vmem:[%s5545_s3 + $0xd0] ss:$8 sps:$4 sm:$0xff]   ;;  %v3738_v1 = vld [vmem:[%s5545_s3 + $0xe4] ss:$8 sps:$4 sm:$0xff]   ;;  %v3740_v4 = vld [vmem:[%s5545_s3 + $0xe0] ss:$8 sps:$4 sm:$0xff]  }
  0x17   :  { %v71_v2 = vld [vmem:[%s5544_s0 + $0x128] sm:$0xff]  ;;  %v70_v3 = vld [vmem:[%s5544_s0 + $0x120] sm:$0xff]  ;;  %v3741_v5 = vld [vmem:[%s5545_s3 + $0xf4] ss:$8 sps:$4 sm:$0xff]  }
  0x18   :  { %1231 = vmatpush1.bf16.msra.mxu0 %v3710_v28  ;;  %v73_v6 = vld [vmem:[%s5544_s0 + $0x138] sm:$0xff]  ;;  %v72_v7 = vld [vmem:[%s5544_s0 + $0x130] sm:$0xff]  ;;  %v75_v9 = vld [vmem:[%s5544_s0 + $0x148] sm:$0xff] }
  0x19   :  { %1232 = vmatprep.subr.bf16.mxu0 %v3711_v29  ;;  %v3743_v8 = vld [vmem:[%s5545_s3 + $0xf0] ss:$8 sps:$4 sm:$0xff]   ;;  %v74_v10 = vld [vmem:[%s5544_s0 + $0x140] sm:$0xff]  ;;  %v79_v13 = vld [vmem:[%s5544_s0 + $0x168] sm:$0xff] }
  0x1a   :  { %166 = vperm.xlu1 %3695, %v47_v18   ;;  %161 = vperm.xlu0 %3694, %v46_v19   ;;  %v77_v11 = vld [vmem:[%s5544_s0 + $0x158] sm:$0xff]  ;;  %v76_v12 = vld [vmem:[%s5544_s0 + $0x150] sm:$0xff]  ;;  %v78_v14 = vld [vmem:[%s5544_s0 + $0x160] sm:$0xff] }
  0x1b   :  { %v81_v15 = vld [vmem:[%s5544_s0 + $0x178] sm:$0xff]  ;;  %v80_v16 = vld [vmem:[%s5544_s0 + $0x170] sm:$0xff]  ;;  %v83_v17 = vld [vmem:[%s5544_s0 + $0x188] sm:$0xff] }
  0x1c   :  { %1233 = vmatpush1.bf16.msra.mxu0 %v3713_v32  ;;  %v82_v18 = vld [vmem:[%s5544_s0 + $0x180] sm:$0xff]  ;;  %v85_v19 = vld [vmem:[%s5544_s0 + $0x198] sm:$0xff]  ;;  %v84_v20 = vld [vmem:[%s5544_s0 + $0x190] sm:$0xff] }
  0x1d   :  { %1234 = vmatprep.subr.bf16.mxu0 %v3714_v33  ;;  %v87_v21 = vld [vmem:[%s5544_s0 + $0x1a8] sm:$0xff]  ;;  %v88_v24 = vld [vmem:[%s5544_s0 + $0x1b0] sm:$0xff]  ;;  %v93_v28 = vld [vmem:[%s5544_s0 + $0x1d8] sm:$0xff] }
  0x1e   :  { %176 = vperm.xlu1 %3695, %v49_v22   ;;  %171 = vperm.xlu0 %3694, %v48_v23   ;;  %v86_v22 = vld [vmem:[%s5544_s0 + $0x1a0] sm:$0xff]  ;;  %v89_v23 = vld [vmem:[%s5544_s0 + $0x1b8] sm:$0xff]  ;;  %v91_v25 = vld [vmem:[%s5544_s0 + $0x1c8] sm:$0xff] }
  0x1f   :  { %v92_v29 = vld [vmem:[%s5544_s0 + $0x1d0] sm:$0xff]  ;;  %v94_v32 = vld [vmem:[%s5544_s0 + $0x1e0] sm:$0xff] }
  0x20   :  { %1235 = vmatpush1.bf16.msra.mxu0 %v3716_v36  ;;  %v96_v36 = vld [vmem:[%s5544_s0 + $0x1f0] sm:$0xff] }
  0x21   :  { %1236 = vmatprep.subr.bf16.mxu0 %v3717_v37  ;;  %v98_v37 = vld [vmem:[%s5546_s1] sm:$0x3] }
  0x22   :  { %186 = vperm.xlu1 %3695, %v51_v26   ;;  %181 = vperm.xlu0 %3694, %v50_v27   ;;  %v90_v26 = vld [vmem:[%s5544_s0 + $0x1c0] sm:$0xff]  ;;  %v420_v27 = vlaneseq }
  0x24   :  { %1237 = vmatpush1.bf16.msra.mxu0 %v3719_v40  ;;  %v558_v40 = vld [vmem:[%s5547_s2] sm:$0x3] }
  0x25   :  { %1238 = vmatprep.subr.bf16.mxu0 %v3720_v41 }
  0x26   :  { %196 = vperm.xlu1 %3695, %v53_v30   ;;  %191 = vperm.xlu0 %3694, %v52_v31   ;;  %v421_v30 = vshrl.u32 %v420_v27, 7  ;;  %v95_v31 = vld [vmem:[%s5544_s0 + $0x1e8] sm:$0xff] }
  0x28   :  { %1239 = vmatpush1.bf16.msra.mxu0 %v3722_v44  ;;  %v4382_v33 = vsub.s32 0, %v421_v30 }
  0x29   :  { %1240 = vmatprep.subr.bf16.mxu0 %v3723_v45 }
  0x2a   :  { %206 = vperm.xlu1 %3695, %v55_v34   ;;  %201 = vperm.xlu0 %3694, %v54_v35   ;;  %v4384_v34 = vsub.s32 1, %v421_v30  ;;  %v97_v35 = vld [vmem:[%s5544_s0 + $0x1f8] sm:$0xff]  ;;  %v4405_v41 = vrot.slane %v558_v40, %v4382_v33 }
  0x2c   :  { %1241 = vmatpush1.bf16.msra.mxu0 %v3725_v48  ;;  %v4408_v44 = vrot.slane %v558_v40, %v4384_v34 }
  0x2d   :  { %1242 = vmatprep.subr.bf16.mxu0 %v3726_v49 }
  0x2e   :  { %216 = vperm.xlu1 %3695, %v57_v38   ;;  %211 = vperm.xlu0 %3694, %v56_v39   ;;  %v4396_v38 = vrot.slane %v98_v37, %v4382_v33  ;;  %v4399_v39 = vrot.slane %v98_v37, %v4384_v34 }
  0x30   :  { %1243 = vmatpush1.bf16.msra.mxu0 %v3728_v52 }
  0x31   :  { %1244 = vmatprep.subr.bf16.mxu0 %v3729_v53 }
  0x32   :  { %226 = vperm.xlu1 %3695, %v59_v42   ;;  %221 = vperm.xlu0 %3694, %v58_v43  }
  0x34   :  { %1245 = vmatpush1.bf16.msra.mxu0 %v3731_v56 }
  0x35   :  { %1246 = vmatprep.subr.bf16.mxu0 %v3732_v57 }
  0x36   :  { %236 = vperm.xlu1 %3695, %v61_v46   ;;  %231 = vperm.xlu0 %3694, %v60_v47  }
  0x38   :  { %1247 = vmatpush1.bf16.msra.mxu0 %v3734_v60 }
  0x39   :  { %1248 = vmatprep.subr.bf16.mxu0 %v3735_v61 }
  0x3a   :  { %246 = vperm.xlu1 %3695, %v63_v50   ;;  %241 = vperm.xlu0 %3694, %v62_v51  }
  0x3c   :  { %1249 = vmatpush1.bf16.msra.mxu0 %v3737_v0 }
  0x3d   :  { %1250 = vmatprep.subr.bf16.mxu0 %v3738_v1 }
  0x3e   :  { %256 = vperm.xlu1 %3695, %v65_v54   ;;  %251 = vperm.xlu0 %3694, %v64_v55  }
  0x40   :  { %1251 = vmatpush1.bf16.msra.mxu0 %v3740_v4 }
  0x41   :  { %1252 = vmatprep.subr.bf16.mxu0 %v3741_v5 }
  0x42   :  { %266 = vperm.xlu1 %3695, %v67_v58   ;;  %261 = vperm.xlu0 %3694, %v66_v59  }
  0x44   :  { %1253 = vmatpush1.bf16.msra.mxu0 %v3743_v8 }
  0x46   :  { %276 = vperm.xlu1 %3695, %v69_v62   ;;  %271 = vperm.xlu0 %3694, %v68_v63  }
  0x4a   :  { %286 = vperm.xlu1 %3695, %v71_v2   ;;  %281 = vperm.xlu0 %3694, %v70_v3  }
  0x4e   :  { %296 = vperm.xlu1 %3695, %v73_v6   ;;  %291 = vperm.xlu0 %3694, %v72_v7  }
  0x52   :  { %306 = vperm.xlu1 %3695, %v75_v9   ;;  %301 = vperm.xlu0 %3694, %v74_v10  }
  0x56   :  { %316 = vperm.xlu1 %3695, %v77_v11   ;;  %311 = vperm.xlu0 %3694, %v76_v12  }
  0x5a   :  { %326 = vperm.xlu1 %3695, %v79_v13   ;;  %321 = vperm.xlu0 %3694, %v78_v14  }
  0x5e   :  { %336 = vperm.xlu1 %3695, %v81_v15   ;;  %331 = vperm.xlu0 %3694, %v80_v16  }
  0x62   :  { %346 = vperm.xlu1 %3695, %v83_v17   ;;  %341 = vperm.xlu0 %3694, %v82_v18  }
  0x66   :  { %356 = vperm.xlu1 %3695, %v85_v19   ;;  %351 = vperm.xlu0 %3694, %v84_v20  }
  0x6a   :  { %366 = vperm.xlu1 %3695, %v87_v21   ;;  %361 = vperm.xlu0 %3694, %v86_v22  }
  0x6e   :  { %376 = vperm.xlu1 %3695, %v89_v23   ;;  %371 = vperm.xlu0 %3694, %v88_v24  }
  0x72   :  { %386 = vperm.xlu1 %3695, %v91_v25   ;;  %381 = vperm.xlu0 %3694, %v90_v26  }
  0x76   :  { %396 = vperm.xlu1 %3695, %v93_v28   ;;  %391 = vperm.xlu0 %3694, %v92_v29  }
  0x7a   :  { %406 = vperm.xlu1 %3695, %v95_v31   ;;  %401 = vperm.xlu0 %3694, %v94_v32  }
  0x7e   :  { %416 = vperm.xlu1 %3695, %v97_v35   ;;  %411 = vperm.xlu0 %3694, %v96_v36  }
  0x81   :  { %v112_v42 = vpop.permute.xlu1 %111  ;;  %v102_v43 = vpop.permute.xlu0 %101 }
  0x82   :  { %v435_v45 = vmul.f32 %v4399_v39, %v112_v42  ;;  %v430_v46 = vmul.f32 %v4396_v38, %v102_v43  ;;  %v431_v47 = vmul.f32 %v4399_v39, %v102_v43  ;;  %v434_v56 = vmul.f32 %v4396_v38, %v112_v42 }
  0x84   :  { %v575_v48 = vadd.f32 %v4408_v44, %v435_v45  ;;  %v570_v51 = vadd.f32 %v4405_v41, %v430_v46  ;;  %v571_v52 = vadd.f32 %v4408_v44, %v431_v47  ;;  %v574_v7 = vadd.f32 %v4405_v41, %v434_v56 }
  0x85   :  { %v117_v49 = vpop.permute.xlu1 %116  ;;  %v107_v50 = vpop.permute.xlu0 %106 }
  0x86   :  { %v437_v53 = vmul.f32 %v4399_v39, %v117_v49  ;;  %v432_v54 = vmul.f32 %v4396_v38, %v107_v50  ;;  %v433_v55 = vmul.f32 %v4399_v39, %v107_v50  ;;  %v703_v57 = vmul.f32 0.01, %v575_v48 }
  0x87   :  { %v436_v58 = vmul.f32 %v4396_v38, %v117_v49  ;;  %v698_v0 = vmul.f32 0.01, %v570_v51  ;;  %v699_v2 = vmul.f32 0.01, %v571_v52  ;;  %v702_v23 = vmul.f32 0.01, %v574_v7 }
  0x88   :  { %v577_v59 = vadd.f32 %v4408_v44, %v437_v53  ;;  %v572_v60 = vadd.f32 %v4405_v41, %v432_v54  ;;  %v573_v63 = vadd.f32 %v4408_v44, %v433_v55  ;;  %v831_v8 = vmax.f32 %v575_v48, %v703_v57 }
  0x89   :  { %v127_v61 = vpop.permute.xlu1 %126  ;;  %v122_v62 = vpop.permute.xlu0 %121  ;;  %v576_v9 = vadd.f32 %v4405_v41, %v436_v58  ;;  %v827_v15 = vmax.f32 %v571_v52, %v699_v2  ;;  %v826_v16 = vmax.f32 %v570_v51, %v698_v0  ;;  %v830_v32 = vmax.f32 %v574_v7, %v702_v23 }
  0x8a   :  { %v441_v1 = vmul.f32 %v4399_v39, %v127_v61  ;;  %v705_v3 = vmul.f32 0.01, %v577_v59  ;;  %v700_v4 = vmul.f32 0.01, %v572_v60  ;;  %v439_v5 = vmul.f32 %v4399_v39, %v122_v62 }
  0x8b   :  { %v701_v6 = vmul.f32 0.01, %v573_v63  ;;  %v440_v19 = vmul.f32 %v4396_v38, %v127_v61  ;;  %v704_v24 = vmul.f32 0.01, %v576_v9  ;;  %v438_v25 = vmul.f32 %v4396_v38, %v122_v62 }
  0x8c   :  { %v828_v11 = vmax.f32 %v572_v60, %v700_v4  ;;  %v833_v12 = vmax.f32 %v577_v59, %v705_v3  ;;  %v581_v13 = vadd.f32 %v4408_v44, %v441_v1  ;;  %v579_v14 = vadd.f32 %v4408_v44, %v439_v5 }
  0x8d   :  { %v829_v10 = vmax.f32 %v573_v63, %v701_v6  ;;  %v137_v17 = vpop.permute.xlu1 %136  ;;  %v132_v18 = vpop.permute.xlu0 %131  ;;  %v580_v30 = vadd.f32 %v4405_v41, %v440_v19  ;;  %v578_v31 = vadd.f32 %v4405_v41, %v438_v25  ;;  %v832_v35 = vmax.f32 %v576_v9, %v704_v24 }
  0x8e   :  { %v954_v21 = vpack.c.bf16 %v828_v11, %v826_v16  ;;  %v957_v22 = vpack.c.bf16 %v833_v12, %v831_v8  ;;  %v709_v26 = vmul.f32 0.01, %v581_v13  ;;  %v707_v27 = vmul.f32 0.01, %v579_v14 }
  0x8f   :  { %v955_v20 = vpack.c.bf16 %v829_v10, %v827_v15  ;;  %v445_v28 = vmul.f32 %v4399_v39, %v137_v17  ;;  %v443_v29 = vmul.f32 %v4399_v39, %v132_v18  ;;  %v708_v46 = vmul.f32 0.01, %v580_v30 }
  0x90   :  { %v835_v42 = vmax.f32 %v579_v14, %v707_v27  ;;  %v837_v43 = vmax.f32 %v581_v13, %v709_v26  ;;  %v444_v47 = vmul.f32 %v4396_v38, %v137_v17  ;;  %v706_v48 = vmul.f32 0.01, %v578_v31 }
  0x91   :  { %1254 = vmatprep.mubr.bf16.mxu0 %v955_v20  ;;  %v585_v36 = vadd.f32 %v4408_v44, %v445_v28  ;;  %v583_v37 = vadd.f32 %v4408_v44, %v443_v29  ;;  %v147_v40 = vpop.permute.xlu1 %146  ;;  %v142_v45 = vpop.permute.xlu0 %141  ;;  %v442_v49 = vmul.f32 %v4396_v38, %v132_v18  ;;  %v956_v51 = vpack.c.bf16 %v832_v35, %v830_v32 }
  0x92   :  { %1255 = vmatmul.mubr.bf16.vlgmr.msra.gmra.mrb[0].mxu0 %v954_v21  ;;  %v449_v50 = vmul.f32 %v4399_v39, %v147_v40  ;;  %v447_v54 = vmul.f32 %v4399_v39, %v142_v45  ;;  %v959_v55 = vpack.c.bf16 %v837_v43, %v835_v42  ;;  %v584_v56 = vadd.f32 %v4405_v41, %v444_v47 }
  0x93   :  { %1264 = vmatprep.mubr.bf16.mxu0 %v957_v22  ;;  %v713_v52 = vmul.f32 0.01, %v585_v36  ;;  %v711_v53 = vmul.f32 0.01, %v583_v37  ;;  %v582_v57 = vadd.f32 %v4405_v41, %v442_v49  ;;  %v834_v59 = vmax.f32 %v578_v31, %v706_v48 }
  0x94   :  { %v589_v58 = vadd.f32 %v4408_v44, %v449_v50  ;;  %v836_v60 = vmax.f32 %v580_v30, %v708_v46  ;;  %v587_v61 = vadd.f32 %v4408_v44, %v447_v54  ;;  %v712_v2 = vmul.f32 0.01, %v584_v56 }
  0x95   :  { %v839_v62 = vmax.f32 %v583_v37, %v711_v53  ;;  %v841_v63 = vmax.f32 %v585_v36, %v713_v52  ;;  %v157_v0 = vpop.permute.xlu1 %156  ;;  %v152_v1 = vpop.permute.xlu0 %151  ;;  %v448_v3 = vmul.f32 %v4396_v38, %v147_v40  ;;  %v710_v4 = vmul.f32 0.01, %v582_v57 }
  0x96   :  { %v717_v5 = vmul.f32 0.01, %v589_v58  ;;  %v446_v6 = vmul.f32 %v4396_v38, %v142_v45  ;;  %v958_v7 = vpack.c.bf16 %v836_v60, %v834_v59  ;;  %v715_v8 = vmul.f32 0.01, %v587_v61 }
  0x97   :  { %v453_v9 = vmul.f32 %v4399_v39, %v157_v0  ;;  %v451_v10 = vmul.f32 %v4399_v39, %v152_v1  ;;  %v961_v11 = vpack.c.bf16 %v841_v63, %v839_v62  ;;  %v588_v12 = vadd.f32 %v4405_v41, %v448_v3 }
  0x98   :  { %v586_v13 = vadd.f32 %v4405_v41, %v446_v6  ;;  %v838_v14 = vmax.f32 %v582_v57, %v710_v4  ;;  %v840_v15 = vmax.f32 %v584_v56, %v712_v2  ;;  %v843_v19 = vmax.f32 %v587_v61, %v715_v8 }
  0x99   :  { %v593_v16 = vadd.f32 %v4408_v44, %v453_v9  ;;  %v591_v17 = vadd.f32 %v4408_v44, %v451_v10  ;;  %v167_v18 = vpop.permute.xlu1 %166  ;;  %v845_v20 = vmax.f32 %v589_v58, %v717_v5  ;;  %v162_v21 = vpop.permute.xlu0 %161  ;;  %v716_v22 = vmul.f32 0.01, %v588_v12 }
  0x9a   :  { %1265 = vmatmul.mubr.bf16.gmra.mrb[4].mxu0 %v956_v51  ;;  %v452_v23 = vmul.f32 %v4396_v38, %v157_v0  ;;  %v714_v24 = vmul.f32 0.01, %v586_v13  ;;  %v450_v25 = vmul.f32 %v4396_v38, %v152_v1  ;;  %v457_v26 = vmul.f32 %v4399_v39, %v167_v18 }
  0x9b   :  { %1274 = vmatprep.mubr.bf16.mxu0 %v959_v55  ;;  %v960_v27 = vpack.c.bf16 %v840_v15, %v838_v14  ;;  %v721_v28 = vmul.f32 0.01, %v593_v16  ;;  %v719_v29 = vmul.f32 0.01, %v591_v17  ;;  %v455_v30 = vmul.f32 %v4399_v39, %v162_v21 }
  0x9c   :  { %v963_v31 = vpack.c.bf16 %v845_v20, %v843_v19  ;;  %v592_v32 = vadd.f32 %v4405_v41, %v452_v23  ;;  %v590_v35 = vadd.f32 %v4405_v41, %v450_v25  ;;  %v597_v36 = vadd.f32 %v4408_v44, %v457_v26 }
  0x9d   :  { %v842_v37 = vmax.f32 %v586_v13, %v714_v24  ;;  %v844_v40 = vmax.f32 %v588_v12, %v716_v22  ;;  %v595_v42 = vadd.f32 %v4408_v44, %v455_v30  ;;  %v847_v43 = vmax.f32 %v591_v17, %v719_v29  ;;  %v177_v46 = vpop.permute.xlu1 %176  ;;  %v172_v47 = vpop.permute.xlu0 %171  ;;  %v3746_v30 = vld [vmem:[%s5548_s5] ss:$8 sps:$4 sm:$0xff]  }
  0x9e   :  { %v849_v45 = vmax.f32 %v593_v16, %v721_v28  ;;  %v720_v48 = vmul.f32 0.01, %v592_v32  ;;  %v456_v49 = vmul.f32 %v4396_v38, %v167_v18  ;;  %v718_v50 = vmul.f32 0.01, %v590_v35  ;;  %v3744_v28 = vld [vmem:[%s5548_s5 + $0x4] ss:$8 sps:$4 sm:$0xff]  }
  0x9f   :  { %v725_v51 = vmul.f32 0.01, %v597_v36  ;;  %v454_v52 = vmul.f32 %v4396_v38, %v162_v21  ;;  %v962_v53 = vpack.c.bf16 %v844_v40, %v842_v37  ;;  %v723_v54 = vmul.f32 0.01, %v595_v42  ;;  %2099 = vmatprep.subr.bf16.mxu1 %v3744_v28  ;;  %v3765_v28 = vld [vmem:[%s5548_s5 + $0x74] ss:$8 sps:$4 sm:$0xff]  }
  0xa0   :  { %v461_v55 = vmul.f32 %v4399_v39, %v177_v46  ;;  %v459_v56 = vmul.f32 %v4399_v39, %v172_v47  ;;  %v965_v57 = vpack.c.bf16 %v849_v45, %v847_v43  ;;  %v596_v58 = vadd.f32 %v4405_v41, %v456_v49  ;;  %2100 = vmatpush1.bf16.msra.mxu1 %v3746_v30 }
  0xa1   :  { %v594_v59 = vadd.f32 %v4405_v41, %v454_v52  ;;  %v460_v60 = vmul.f32 %v4396_v38, %v177_v46  ;;  %v187_v61 = vpop.permute.xlu1 %186  ;;  %v846_v62 = vmax.f32 %v590_v35, %v718_v50  ;;  %v848_v63 = vmax.f32 %v592_v32, %v720_v48  ;;  %v182_v5 = vpop.permute.xlu0 %181  ;;  %v3747_v35 = vld [vmem:[%s5548_s5 + $0x14] ss:$8 sps:$4 sm:$0xff]  }
  0xa2   :  { %1275 = vmatmul.mubr.bf16.gmra.mrb[8].mxu0 %v958_v7  ;;  %v601_v0 = vadd.f32 %v4408_v44, %v461_v55  ;;  %v599_v1 = vadd.f32 %v4408_v44, %v459_v56  ;;  %v851_v2 = vmax.f32 %v595_v42, %v723_v54  ;;  %v853_v3 = vmax.f32 %v597_v36, %v725_v51  ;;  %v3749_v36 = vld [vmem:[%s5548_s5 + $0x10] ss:$8 sps:$4 sm:$0xff]   ;;  %v3750_v54 = vld [vmem:[%s5548_s5 + $0x24] ss:$8 sps:$4 sm:$0xff]   ;;  %v3752_v55 = vld [vmem:[%s5548_s5 + $0x20] ss:$8 sps:$4 sm:$0xff]  }
  0xa3   :  { %1284 = vmatprep.mubr.bf16.mxu0 %v961_v11  ;;  %v458_v4 = vmul.f32 %v4396_v38, %v172_v47  ;;  %v465_v6 = vmul.f32 %v4399_v39, %v187_v61  ;;  %v724_v7 = vmul.f32 0.01, %v596_v58  ;;  %v722_v8 = vmul.f32 0.01, %v594_v59  ;;  %2101 = vmatprep.subr.bf16.mxu1 %v3747_v35  ;;  %v3753_v56 = vld [vmem:[%s5548_s5 + $0x34] ss:$8 sps:$4 sm:$0xff]  }
  0xa4   :  { %v600_v9 = vadd.f32 %v4405_v41, %v460_v60  ;;  %v964_v10 = vpack.c.bf16 %v848_v63, %v846_v62  ;;  %v729_v11 = vmul.f32 0.01, %v601_v0  ;;  %v727_v12 = vmul.f32 0.01, %v599_v1  ;;  %2102 = vmatpush1.bf16.msra.mxu1 %v3749_v36 }
  0xa5   :  { %v463_v13 = vmul.f32 %v4399_v39, %v182_v5  ;;  %v967_v14 = vpack.c.bf16 %v853_v3, %v851_v2  ;;  %v598_v15 = vadd.f32 %v4405_v41, %v458_v4  ;;  %v605_v16 = vadd.f32 %v4408_v44, %v465_v6  ;;  %v197_v22 = vpop.permute.xlu1 %196  ;;  %2103 = vmatprep.subr.bf16.mxu1 %v3750_v54 }
  0xa6   :  { %v728_v17 = vmul.f32 0.01, %v600_v9  ;;  %v850_v18 = vmax.f32 %v594_v59, %v722_v8  ;;  %v852_v19 = vmax.f32 %v596_v58, %v724_v7  ;;  %v464_v20 = vmul.f32 %v4396_v38, %v187_v61  ;;  %v3756_v8 = vld [vmem:[%s5548_s5 + $0x44] ss:$8 sps:$4 sm:$0xff]  }
  0xa7   :  { %v603_v21 = vadd.f32 %v4408_v44, %v463_v13  ;;  %v855_v23 = vmax.f32 %v599_v1, %v727_v12  ;;  %v857_v24 = vmax.f32 %v601_v0, %v729_v11  ;;  %v726_v25 = vmul.f32 0.01, %v598_v15  ;;  %v3759_v11 = vld [vmem:[%s5548_s5 + $0x54] ss:$8 sps:$4 sm:$0xff]  }
  0xa8   :  { %v462_v26 = vmul.f32 %v4396_v38, %v182_v5  ;;  %v733_v29 = vmul.f32 0.01, %v605_v16  ;;  %v966_v32 = vpack.c.bf16 %v852_v19, %v850_v18  ;;  %v604_v37 = vadd.f32 %v4405_v41, %v464_v20  ;;  %2104 = vmatpush1.bf16.msra.mxu1 %v3752_v55 }
  0xa9   :  { %v731_v40 = vmul.f32 0.01, %v603_v21  ;;  %v969_v43 = vpack.c.bf16 %v857_v24, %v855_v23  ;;  %v854_v47 = vmax.f32 %v598_v15, %v726_v25  ;;  %v856_v48 = vmax.f32 %v600_v9, %v728_v17  ;;  %2105 = vmatprep.subr.bf16.mxu1 %v3753_v56  ;;  %v207_v7 = vpop.permute.xlu1 %206  ;;  %v3758_v9 = vld [vmem:[%s5548_s5 + $0x40] ss:$8 sps:$4 sm:$0xff]   ;;  %v3761_v17 = vld [vmem:[%s5548_s5 + $0x50] ss:$8 sps:$4 sm:$0xff]  }
  0xaa   :  { %1285 = vmatmul.mubr.bf16.gmra.mrb[12].mxu0 %v960_v27  ;;  %v192_v27 = vpop.permute.xlu0 %191  ;;  %v602_v45 = vadd.f32 %v4405_v41, %v462_v26  ;;  %v732_v49 = vmul.f32 0.01, %v604_v37  ;;  %v861_v52 = vmax.f32 %v605_v16, %v733_v29  ;;  %v468_v58 = vmul.f32 %v4396_v38, %v197_v22  ;;  %v3762_v23 = vld [vmem:[%s5548_s5 + $0x64] ss:$8 sps:$4 sm:$0xff]   ;;  %v3764_v24 = vld [vmem:[%s5548_s5 + $0x60] ss:$8 sps:$4 sm:$0xff]  }
  0xab   :  { %1294 = vmatprep.mubr.bf16.mxu0 %v963_v31  ;;  %v469_v31 = vmul.f32 %v4399_v39, %v197_v22  ;;  %v467_v42 = vmul.f32 %v4399_v39, %v192_v27  ;;  %v859_v51 = vmax.f32 %v603_v21, %v731_v40  ;;  %v968_v60 = vpack.c.bf16 %v856_v48, %v854_v47  ;;  %v3770_v48 = vld [vmem:[%s5548_s5 + $0x80] ss:$8 sps:$4 sm:$0xff]  }
  0xac   :  { %v466_v61 = vmul.f32 %v4396_v38, %v192_v27  ;;  %v608_v0 = vadd.f32 %v4405_v41, %v468_v58  ;;  %v860_v3 = vmax.f32 %v604_v37, %v732_v49  ;;  %v473_v15 = vmul.f32 %v4399_v39, %v207_v7 }
  0xad   :  { %v609_v46 = vadd.f32 %v4408_v44, %v469_v31  ;;  %v607_v50 = vadd.f32 %v4408_v44, %v467_v42  ;;  %v971_v63 = vpack.c.bf16 %v861_v52, %v859_v51  ;;  %v472_v25 = vmul.f32 %v4396_v38, %v207_v7  ;;  %v217_v29 = vpop.permute.xlu1 %216  ;;  %v3771_v52 = vld [vmem:[%s5548_s5 + $0x94] ss:$8 sps:$4 sm:$0xff]  }
  0xae   :  { %v202_v1 = vpop.permute.xlu0 %201  ;;  %v606_v4 = vadd.f32 %v4405_v41, %v466_v61  ;;  %v736_v12 = vmul.f32 0.01, %v608_v0  ;;  %v613_v19 = vadd.f32 %v4408_v44, %v473_v15  ;;  %v477_v40 = vmul.f32 %v4399_v39, %v217_v29  ;;  %v3777_v7 = vld [vmem:[%s5548_s5 + $0xb4] ss:$8 sps:$4 sm:$0xff]   ;;  %v3779_v15 = vld [vmem:[%s5548_s5 + $0xb0] ss:$8 sps:$4 sm:$0xff]  }
  0xaf   :  { %v737_v59 = vmul.f32 0.01, %v609_v46  ;;  %v735_v62 = vmul.f32 0.01, %v607_v50  ;;  %v470_v22 = vmul.f32 %v4396_v38, %v202_v1  ;;  %v612_v37 = vadd.f32 %v4405_v41, %v472_v25 }
  0xb0   :  { %v864_v21 = vmax.f32 %v608_v0, %v736_v12  ;;  %v741_v30 = vmul.f32 0.01, %v613_v19  ;;  %v476_v56 = vmul.f32 %v4396_v38, %v217_v29 }
  0xb1   :  { %v863_v5 = vmax.f32 %v607_v50, %v735_v62  ;;  %v865_v6 = vmax.f32 %v609_v46, %v737_v59  ;;  %v610_v35 = vadd.f32 %v4405_v41, %v470_v22  ;;  %v740_v49 = vmul.f32 0.01, %v612_v37  ;;  %v227_v54 = vpop.permute.xlu1 %226  ;;  %v3773_v59 = vld [vmem:[%s5548_s5 + $0x90] ss:$8 sps:$4 sm:$0xff]   ;;  %v3780_v22 = vld [vmem:[%s5548_s5 + $0xc4] ss:$8 sps:$4 sm:$0xff]  }
  0xb2   :  { %1295 = vmatmul.mubr.bf16.gmra.mrb[16].mxu0 %v962_v53  ;;  %v730_v53 = vmul.f32 0.01, %v602_v45  ;;  %v212_v27 = vpop.permute.xlu0 %211  ;;  %v617_v50 = vadd.f32 %v4408_v44, %v477_v40 }
  0xb3   :  { %1304 = vmatprep.mubr.bf16.mxu0 %v965_v57  ;;  %v3755_v57 = vld [vmem:[%s5548_s5 + $0x30] ss:$8 sps:$4 sm:$0xff]   ;;  %v973_v16 = vpack.c.bf16 %v865_v6, %v863_v5  ;;  %v475_v36 = vmul.f32 %v4399_v39, %v212_v27  ;;  %v738_v46 = vmul.f32 0.01, %v610_v35  ;;  %v868_v61 = vmax.f32 %v612_v37, %v740_v49  ;;  %v3776_v5 = vld [vmem:[%s5548_s5 + $0xa0] ss:$8 sps:$4 sm:$0xff]  }
  0xb4   :  { %v858_v2 = vmax.f32 %v602_v45, %v730_v53  ;;  %2106 = vmatpush1.bf16.msra.mxu1 %v3755_v57  ;;  %v3768_v45 = vld [vmem:[%s5548_s5 + $0x84] ss:$8 sps:$4 sm:$0xff]   ;;  %v474_v53 = vmul.f32 %v4396_v38, %v212_v27 }
  0xb5   :  { %2107 = vmatprep.subr.bf16.mxu1 %v3756_v8  ;;  %v615_v47 = vadd.f32 %v4408_v44, %v475_v36  ;;  %v866_v58 = vmax.f32 %v610_v35, %v738_v46 }
  0xb6   :  { %v970_v13 = vpack.c.bf16 %v860_v3, %v858_v2  ;;  %v222_v55 = vpop.permute.xlu0 %221  ;;  %v614_v62 = vadd.f32 %v4405_v41, %v474_v53  ;;  %v3774_v2 = vld [vmem:[%s5548_s5 + $0xa4] ss:$8 sps:$4 sm:$0xff]   ;;  %v616_v3 = vadd.f32 %v4405_v41, %v476_v56  ;;  %v3788_v53 = vld [vmem:[%s5548_s5 + $0xe0] ss:$8 sps:$4 sm:$0xff]  }
  0xb7   :  { %v743_v57 = vmul.f32 0.01, %v615_v47  ;;  %v479_v0 = vmul.f32 %v4399_v39, %v222_v55 }
  0xb8   :  { %2108 = vmatpush1.bf16.msra.mxu1 %v3758_v9  ;;  %v742_v8 = vmul.f32 0.01, %v614_v62  ;;  %v744_v12 = vmul.f32 0.01, %v616_v3 }
  0xb9   :  { %2109 = vmatprep.subr.bf16.mxu1 %v3759_v11 }
  0xba   :  { %1305 = vmatmul.mubr.bf16.gmra.mrb[20].mxu0 %v964_v10  ;;  %v471_v10 = vmul.f32 %v4399_v39, %v202_v1  ;;  %v974_v1 = vpack.c.bf16 %v868_v61, %v866_v58  ;;  %v872_v25 = vmax.f32 %v616_v3, %v744_v12  ;;  %v3791_v3 = vld [vmem:[%s5548_s5 + $0xf0] ss:$8 sps:$4 sm:$0xff]  }
  0xbb   :  { %1314 = vmatprep.mubr.bf16.mxu0 %v967_v14  ;;  %v734_v14 = vmul.f32 0.01, %v606_v4 }
  0xbc   :  { %v611_v18 = vadd.f32 %v4408_v44, %v471_v10  ;;  %2110 = vmatpush1.bf16.msra.mxu1 %v3761_v17  ;;  %v619_v10 = vadd.f32 %v4408_v44, %v479_v0  ;;  %v237_v17 = vpop.permute.xlu1 %236 }
  0xbd   :  { %v862_v20 = vmax.f32 %v606_v4, %v734_v14  ;;  %2111 = vmatprep.subr.bf16.mxu1 %v3762_v23  ;;  %v871_v4 = vmax.f32 %v615_v47, %v743_v57  ;;  %v232_v14 = vpop.permute.xlu0 %231  ;;  %v484_v47 = vmul.f32 %v4396_v38, %v237_v17  ;;  %v3789_v57 = vld [vmem:[%s5548_s5 + $0xf4] ss:$8 sps:$4 sm:$0xff]  }
  0xbe   :  { %v739_v26 = vmul.f32 0.01, %v611_v18  ;;  %v482_v46 = vmul.f32 %v4396_v38, %v232_v14 }
  0xbf   :  { %v972_v31 = vpack.c.bf16 %v864_v21, %v862_v20  ;;  %v870_v20 = vmax.f32 %v614_v62, %v742_v8  ;;  %v483_v21 = vmul.f32 %v4399_v39, %v232_v14  ;;  %v624_v58 = vadd.f32 %v4405_v41, %v484_v47 }
  0xc0   :  { %2112 = vmatpush1.bf16.msra.mxu1 %v3764_v24  ;;  %v867_v42 = vmax.f32 %v611_v18, %v739_v26  ;;  %v485_v24 = vmul.f32 %v4399_v39, %v237_v17  ;;  %v3782_v26 = vld [vmem:[%s5548_s5 + $0xc0] ss:$8 sps:$4 sm:$0xff]   ;;  %v247_v37 = vpop.permute.xlu1 %246  ;;  %v622_v56 = vadd.f32 %v4405_v41, %v482_v46 }
  0xc1   :  { %2113 = vmatprep.subr.bf16.mxu1 %v3765_v28  ;;  %v3783_v28 = vld [vmem:[%s5548_s5 + $0xd4] ss:$8 sps:$4 sm:$0xff]   ;;  %v976_v29 = vpack.c.bf16 %v872_v25, %v870_v20  ;;  %v489_v49 = vmul.f32 %v4399_v39, %v247_v37  ;;  %v488_v0 = vmul.f32 %v4396_v38, %v247_v37 }
  0xc2   :  { %1315 = vmatmul.mubr.bf16.gmra.mrb[24].mxu0 %v966_v32  ;;  %v3767_v32 = vld [vmem:[%s5548_s5 + $0x70] ss:$8 sps:$4 sm:$0xff]   ;;  %v625_v36 = vadd.f32 %v4408_v44, %v485_v24 }
  0xc3   :  { %1324 = vmatprep.mubr.bf16.mxu0 %v969_v43  ;;  %v869_v43 = vmax.f32 %v613_v19, %v741_v30  ;;  %v747_v19 = vmul.f32 0.01, %v619_v10 }
  0xc4   :  { %2114 = vmatpush1.bf16.msra.mxu1 %v3767_v32  ;;  %v623_v32 = vadd.f32 %v4408_v44, %v483_v21 }
  0xc5   :  { %v975_v51 = vpack.c.bf16 %v869_v43, %v867_v42  ;;  %2115 = vmatprep.subr.bf16.mxu1 %v3768_v45  ;;  %v875_v30 = vmax.f32 %v619_v10, %v747_v19  ;;  %v3785_v42 = vld [vmem:[%s5548_s5 + $0xd0] ss:$8 sps:$4 sm:$0xff]   ;;  %v242_v45 = vpop.permute.xlu0 %241 }
  0xc8   :  { %2116 = vmatpush1.bf16.msra.mxu1 %v3770_v48  ;;  %v751_v48 = vmul.f32 0.01, %v623_v32 }
  0xc9   :  { %2117 = vmatprep.subr.bf16.mxu1 %v3771_v52  ;;  %v252_v61 = vpop.permute.xlu0 %251 }
  0xca   :  { %1325 = vmatmul.mubr.bf16.gmra.mrb[28].mxu0 %v968_v60  ;;  %v745_v60 = vmul.f32 0.01, %v617_v50  ;;  %v490_v24 = vmul.f32 %v4396_v38, %v252_v61 }
  0xcb   :  { %1334 = vmatprep.mubr.bf16.mxu0 %v971_v63  ;;  %v481_v63 = vmul.f32 %v4399_v39, %v227_v54 }
  0xcc   :  { %2118 = vmatpush1.bf16.msra.mxu1 %v3773_v59  ;;  %v873_v6 = vmax.f32 %v617_v50, %v745_v60  ;;  %v3786_v50 = vld [vmem:[%s5548_s5 + $0xe4] ss:$8 sps:$4 sm:$0xff]   ;;  %v629_v59 = vadd.f32 %v4408_v44, %v489_v49  ;;  %v257_v60 = vpop.permute.xlu1 %256 }
  0xcd   :  { %v621_v9 = vadd.f32 %v4408_v44, %v481_v63  ;;  %2119 = vmatprep.subr.bf16.mxu1 %v3774_v2  ;;  %v879_v63 = vmax.f32 %v623_v32, %v751_v48  ;;  %v262_v19 = vpop.permute.xlu0 %261 }
  0xce   :  { %v977_v11 = vpack.c.bf16 %v873_v6, %v871_v4  ;;  %v493_v6 = vmul.f32 %v4399_v39, %v257_v60  ;;  %v757_v10 = vmul.f32 0.01, %v629_v59 }
  0xcf   :  { %v749_v18 = vmul.f32 0.01, %v621_v9 }
  0xd0   :  { %2120 = vmatpush1.bf16.msra.mxu1 %v3776_v5  ;;  %v750_v5 = vmul.f32 0.01, %v622_v56  ;;  %v633_v14 = vadd.f32 %v4408_v44, %v493_v6 }
  0xd1   :  { %2121 = vmatprep.subr.bf16.mxu1 %v3777_v7  ;;  %v491_v7 = vmul.f32 %v4399_v39, %v252_v61  ;;  %v272_v47 = vpop.permute.xlu0 %271 }
  0xd2   :  { %1335 = vmatmul.mubr.bf16.gmra.mrb[32].mxu0 %v970_v13  ;;  %v478_v13 = vmul.f32 %v4396_v38, %v222_v55  ;;  %v878_v17 = vmax.f32 %v622_v56, %v750_v5  ;;  %v499_v56 = vmul.f32 %v4399_v39, %v272_v47 }
  0xd3   :  { %1344 = vmatprep.mubr.bf16.mxu0 %v973_v16  ;;  %v480_v16 = vmul.f32 %v4396_v38, %v227_v54  ;;  %v487_v54 = vmul.f32 %v4399_v39, %v242_v45 }
  0xd4   :  { %v618_v23 = vadd.f32 %v4405_v41, %v478_v13  ;;  %2122 = vmatpush1.bf16.msra.mxu1 %v3779_v15  ;;  %v631_v15 = vadd.f32 %v4408_v44, %v491_v7  ;;  %v498_v7 = vmul.f32 %v4396_v38, %v272_v47 }
  0xd5   :  { %v620_v27 = vadd.f32 %v4405_v41, %v480_v16  ;;  %2123 = vmatprep.subr.bf16.mxu1 %v3780_v22  ;;  %v627_v4 = vadd.f32 %v4408_v44, %v487_v54  ;;  %v267_v16 = vpop.permute.xlu1 %266 }
  0xd6   :  { %v746_v35 = vmul.f32 0.01, %v618_v23  ;;  %v497_v25 = vmul.f32 %v4399_v39, %v267_v16  ;;  %v496_v49 = vmul.f32 %v4396_v38, %v267_v16 }
  0xd7   :  { %v748_v43 = vmul.f32 0.01, %v620_v27  ;;  %v755_v13 = vmul.f32 0.01, %v627_v4 }
  0xd8   :  { %2124 = vmatpush1.bf16.msra.mxu1 %v3782_v26  ;;  %v874_v52 = vmax.f32 %v618_v23, %v746_v35  ;;  %v492_v23 = vmul.f32 %v4396_v38, %v257_v60  ;;  %v637_v37 = vadd.f32 %v4408_v44, %v497_v25 }
  0xd9   :  { %2125 = vmatprep.subr.bf16.mxu1 %v3783_v28  ;;  %v876_v55 = vmax.f32 %v620_v27, %v748_v43  ;;  %v883_v27 = vmax.f32 %v627_v4, %v755_v13  ;;  %v761_v28 = vmul.f32 0.01, %v633_v14  ;;  %v277_v46 = vpop.permute.xlu1 %276 }
  0xda   :  { %1345 = vmatmul.mubr.bf16.gmra.mrb[36].mxu0 %v972_v31  ;;  %v877_v31 = vmax.f32 %v621_v9, %v749_v18  ;;  %v752_v9 = vmul.f32 0.01, %v624_v58  ;;  %v885_v18 = vmax.f32 %v629_v59, %v757_v10  ;;  %v632_v32 = vadd.f32 %v4405_v41, %v492_v23 }
  0xdb   :  { %1354 = vmatprep.mubr.bf16.mxu0 %v975_v51  ;;  %v753_v51 = vmul.f32 0.01, %v625_v36  ;;  %v978_v62 = vpack.c.bf16 %v876_v55, %v874_v52  ;;  %v494_v52 = vmul.f32 %v4396_v38, %v262_v19  ;;  %v501_v55 = vmul.f32 %v4399_v39, %v277_v46 }
  0xdc   :  { %v979_v40 = vpack.c.bf16 %v877_v31, %v875_v30  ;;  %2126 = vmatpush1.bf16.msra.mxu1 %v3785_v42  ;;  %v880_v20 = vmax.f32 %v624_v58, %v752_v9  ;;  %v495_v30 = vmul.f32 %v4399_v39, %v262_v19  ;;  %v983_v31 = vpack.c.bf16 %v885_v18, %v883_v27 }
  0xdd   :  { %2127 = vmatprep.subr.bf16.mxu1 %v3786_v50  ;;  %v881_v2 = vmax.f32 %v625_v36, %v753_v51  ;;  %v630_v36 = vadd.f32 %v4405_v41, %v490_v24  ;;  %v889_v42 = vmax.f32 %v633_v14, %v761_v28  ;;  %v760_v48 = vmul.f32 0.01, %v632_v32 }
  0xde   :  { %v980_v26 = vpack.c.bf16 %v880_v20, %v878_v17  ;;  %v635_v43 = vadd.f32 %v4408_v44, %v495_v30  ;;  %v765_v51 = vmul.f32 0.01, %v637_v37  ;;  %v636_v58 = vadd.f32 %v4405_v41, %v496_v49 }
  0xdf   :  { %v981_v8 = vpack.c.bf16 %v881_v2, %v879_v63  ;;  %v758_v50 = vmul.f32 0.01, %v630_v36  ;;  %v888_v59 = vmax.f32 %v632_v32, %v760_v48  ;;  %v634_v60 = vadd.f32 %v4405_v41, %v494_v52  ;;  %v287_v2 = vpop.permute.xlu1 %286 }
  0xe0   :  { %2128 = vmatpush1.bf16.msra.mxu1 %v3788_v53  ;;  %v763_v54 = vmul.f32 0.01, %v635_v43  ;;  %v764_v4 = vmul.f32 0.01, %v636_v58  ;;  %v500_v5 = vmul.f32 %v4396_v38, %v277_v46  ;;  %v638_v17 = vadd.f32 %v4405_v41, %v498_v7 }
  0xe1   :  { %2129 = vmatprep.subr.bf16.mxu1 %v3789_v57  ;;  %v886_v61 = vmax.f32 %v630_v36, %v758_v50  ;;  %v762_v6 = vmul.f32 0.01, %v634_v60  ;;  %v504_v25 = vmul.f32 %v4396_v38, %v287_v2 }
  0xe2   :  { %1355 = vmatmul.mubr.bf16.gmra.mrb[40].mxu0 %v974_v1  ;;  %v486_v1 = vmul.f32 %v4396_v38, %v242_v45  ;;  %v891_v63 = vmax.f32 %v635_v43, %v763_v54  ;;  %v640_v14 = vadd.f32 %v4405_v41, %v500_v5 }
  0xe3   :  { %1364 = vmatprep.mubr.bf16.mxu0 %v977_v11  ;;  %v628_v11 = vadd.f32 %v4405_v41, %v488_v0  ;;  %v641_v0 = vadd.f32 %v4408_v44, %v501_v55  ;;  %v984_v9 = vpack.c.bf16 %v888_v59, %v886_v61  ;;  %v890_v16 = vmax.f32 %v634_v60, %v762_v6 }
  0xe4   :  { %v626_v12 = vadd.f32 %v4405_v41, %v486_v1  ;;  %2130 = vmatpush1.bf16.msra.mxu1 %v3791_v3  ;;  %v639_v1 = vadd.f32 %v4408_v44, %v499_v56  ;;  %v282_v3 = vpop.permute.xlu0 %281  ;;  %v768_v24 = vmul.f32 0.01, %v640_v14  ;;  %v644_v36 = vadd.f32 %v4405_v41, %v504_v25 }
  0xe5   :  { %v756_v21 = vmul.f32 0.01, %v628_v11  ;;  %v769_v10 = vmul.f32 0.01, %v641_v0  ;;  %v502_v28 = vmul.f32 %v4396_v38, %v282_v3 }
  0xe6   :  { %v754_v22 = vmul.f32 0.01, %v626_v12  ;;  %v772_v50 = vmul.f32 0.01, %v644_v36 }
  0xe7   :  { %v884_v35 = vmax.f32 %v628_v11, %v756_v21  ;;  %v767_v11 = vmul.f32 0.01, %v639_v1  ;;  %v897_v19 = vmax.f32 %v641_v0, %v769_v10 }
  0xe8   :  { %v292_v23 = vpop.permute.xlu0 %291  ;;  %v900_v61 = vmax.f32 %v644_v36, %v772_v50 }
  0xe9   :  { %v895_v20 = vmax.f32 %v639_v1, %v767_v11  ;;  %v507_v32 = vmul.f32 %v4399_v39, %v292_v23 }
  0xea   :  { %1365 = vmatmul.mubr.bf16.gmra.mrb[44].mxu0 %v976_v29  ;;  %v759_v29 = vmul.f32 0.01, %v631_v15 }
  0xeb   :  { %1374 = vmatprep.mubr.bf16.mxu0 %v979_v40  ;;  %v882_v40 = vmax.f32 %v626_v12, %v754_v22  ;;  %v503_v12 = vmul.f32 %v4399_v39, %v282_v3  ;;  %v297_v22 = vpop.permute.xlu1 %296  ;;  %v647_v47 = vadd.f32 %v4408_v44, %v507_v32 }
  0xec   :  { %v887_v45 = vmax.f32 %v631_v15, %v759_v29  ;;  %v892_v15 = vmax.f32 %v636_v58, %v764_v4  ;;  %v302_v49 = vpop.permute.xlu0 %301 }
  0xed   :  { %v982_v53 = vpack.c.bf16 %v884_v35, %v882_v40  ;;  %v643_v21 = vadd.f32 %v4408_v44, %v503_v12  ;;  %v989_v35 = vpack.c.bf16 %v897_v19, %v895_v20  ;;  %v511_v58 = vmul.f32 %v4399_v39, %v302_v49 }
  0xee   :  { %v985_v57 = vpack.c.bf16 %v889_v42, %v887_v45  ;;  %v986_v29 = vpack.c.bf16 %v892_v15, %v890_v16  ;;  %v642_v42 = vadd.f32 %v4405_v41, %v502_v28  ;;  %v510_v10 = vmul.f32 %v4396_v38, %v302_v49 }
  0xef   :  { %v771_v30 = vmul.f32 0.01, %v643_v21  ;;  %v307_v48 = vpop.permute.xlu1 %306  ;;  %v651_v3 = vadd.f32 %v4408_v44, %v511_v58 }
  0xf0   :  { %v770_v52 = vmul.f32 0.01, %v642_v42  ;;  %v513_v54 = vmul.f32 %v4399_v39, %v307_v48  ;;  %v312_v5 = vpop.permute.xlu0 %311  ;;  %v512_v7 = vmul.f32 %v4396_v38, %v307_v48  ;;  %v650_v19 = vadd.f32 %v4405_v41, %v510_v10 }
  0xf1   :  { %v899_v45 = vmax.f32 %v643_v21, %v771_v30  ;;  %v779_v12 = vmul.f32 0.01, %v651_v3 }
  0xf2   :  { %1375 = vmatmul.mubr.bf16.gmra.mrb[48].mxu0 %v978_v62  ;;  %v893_v62 = vmax.f32 %v637_v37, %v765_v51  ;;  %v896_v37 = vmax.f32 %v640_v14, %v768_v24  ;;  %v508_v51 = vmul.f32 %v4396_v38, %v297_v22  ;;  %v653_v0 = vadd.f32 %v4408_v44, %v513_v54 }
  0xf3   :  { %1384 = vmatprep.mubr.bf16.mxu0 %v981_v8  ;;  %v505_v8 = vmul.f32 %v4399_v39, %v287_v2  ;;  %v317_v4 = vpop.permute.xlu1 %316  ;;  %v515_v14 = vmul.f32 %v4399_v39, %v312_v5  ;;  %v652_v16 = vadd.f32 %v4405_v41, %v512_v7  ;;  %v907_v21 = vmax.f32 %v651_v3, %v779_v12 }
  0xf4   :  { %v987_v13 = vpack.c.bf16 %v893_v62, %v891_v63  ;;  %v648_v60 = vadd.f32 %v4405_v41, %v508_v51  ;;  %v898_v62 = vmax.f32 %v642_v42, %v770_v52  ;;  %v322_v25 = vpop.permute.xlu0 %321  ;;  %v778_v28 = vmul.f32 0.01, %v650_v19 }
  0xf5   :  { %v645_v18 = vadd.f32 %v4408_v44, %v505_v8  ;;  %v519_v36 = vmul.f32 %v4399_v39, %v322_v25 }
  0xf6   :  { %v776_v6 = vmul.f32 0.01, %v648_v60  ;;  %v990_v11 = vpack.c.bf16 %v900_v61, %v898_v62 }
  0xf7   :  { %v773_v27 = vmul.f32 0.01, %v645_v18  ;;  %v327_v24 = vpop.permute.xlu1 %326  ;;  %v659_v49 = vadd.f32 %v4408_v44, %v519_v36 }
  0xf8   :  { %v521_v30 = vmul.f32 %v4399_v39, %v327_v24  ;;  %v332_v51 = vpop.permute.xlu0 %331 }
  0xf9   :  { %v901_v43 = vmax.f32 %v645_v18, %v773_v27  ;;  %v516_v27 = vmul.f32 %v4396_v38, %v317_v4  ;;  %v787_v58 = vmul.f32 0.01, %v659_v49 }
  0xfa   :  { %1385 = vmatmul.mubr.bf16.gmra.mrb[52].mxu0 %v980_v26  ;;  %v766_v26 = vmul.f32 0.01, %v638_v17 }
  0xfb   :  { %1394 = vmatprep.mubr.bf16.mxu0 %v983_v31  ;;  %v509_v31 = vmul.f32 %v4399_v39, %v297_v22  ;;  %v991_v59 = vpack.c.bf16 %v901_v43, %v899_v45  ;;  %v906_v43 = vmax.f32 %v650_v19, %v778_v28  ;;  %v337_v50 = vpop.permute.xlu1 %336  ;;  %v915_v3 = vmax.f32 %v659_v49, %v787_v58 }
  0xfc   :  { %v894_v40 = vmax.f32 %v638_v17, %v766_v26  ;;  %v904_v17 = vmax.f32 %v648_v60, %v776_v6  ;;  %v780_v26 = vmul.f32 0.01, %v652_v16  ;;  %v523_v60 = vmul.f32 %v4399_v39, %v332_v51  ;;  %v342_v7 = vpop.permute.xlu0 %341 }
  0xfd   :  { %v649_v46 = vadd.f32 %v4408_v44, %v509_v31 }
  0xfe   :  { %v988_v55 = vpack.c.bf16 %v896_v37, %v894_v40  ;;  %v656_v40 = vadd.f32 %v4405_v41, %v516_v27  ;;  %v908_v42 = vmax.f32 %v652_v16, %v780_v26  ;;  %v527_v16 = vmul.f32 %v4399_v39, %v342_v7 }
  0xff   :  { %v777_v56 = vmul.f32 0.01, %v649_v46  ;;  %v347_v6 = vpop.permute.xlu1 %346 }
 0x100   :  { %v784_v52 = vmul.f32 0.01, %v656_v40  ;;  %v529_v12 = vmul.f32 %v4399_v39, %v347_v6  ;;  %v352_v27 = vpop.permute.xlu0 %351 }
 0x101   :  { %v905_v1 = vmax.f32 %v649_v46, %v777_v56  ;;  %v661_v46 = vadd.f32 %v4408_v44, %v521_v30  ;;  %v518_v56 = vmul.f32 %v4396_v38, %v322_v25  ;;  %v667_v25 = vadd.f32 %v4408_v44, %v527_v16 }
 0x102   :  { %1395 = vmatmul.mubr.bf16.gmra.mrb[56].mxu0 %v982_v53  ;;  %v506_v53 = vmul.f32 %v4396_v38, %v292_v23  ;;  %v655_v23 = vadd.f32 %v4408_v44, %v515_v14 }
 0x103   :  { %1404 = vmatprep.mubr.bf16.mxu0 %v985_v57  ;;  %v775_v57 = vmul.f32 0.01, %v647_v47  ;;  %v357_v26 = vpop.permute.xlu1 %356  ;;  %v795_v36 = vmul.f32 0.01, %v667_v25 }
 0x104   :  { %v646_v63 = vadd.f32 %v4405_v41, %v506_v53  ;;  %v520_v53 = vmul.f32 %v4396_v38, %v327_v24 }
 0x105   :  { %v903_v2 = vmax.f32 %v647_v47, %v775_v57  ;;  %v994_v57 = vpack.c.bf16 %v908_v42, %v906_v43  ;;  %v923_v49 = vmax.f32 %v667_v25, %v795_v36 }
 0x106   :  { %v774_v8 = vmul.f32 0.01, %v646_v63  ;;  %v660_v62 = vadd.f32 %v4405_v41, %v520_v53  ;;  %v362_v53 = vpop.permute.xlu0 %361 }
 0x107   :  { %v993_v15 = vpack.c.bf16 %v905_v1, %v903_v2  ;;  %v658_v1 = vadd.f32 %v4405_v41, %v518_v56 }
 0x108   :  { %v902_v18 = vmax.f32 %v646_v63, %v774_v8  ;;  %v912_v63 = vmax.f32 %v656_v40, %v784_v52  ;;  %v788_v8 = vmul.f32 0.01, %v660_v62  ;;  %v531_v40 = vmul.f32 %v4399_v39, %v352_v27  ;;  %v367_v52 = vpop.permute.xlu1 %366 }
 0x109   :  { %v786_v10 = vmul.f32 0.01, %v658_v1  ;;  %v537_v58 = vmul.f32 %v4399_v39, %v367_v52 }
 0x10a   :  { %1405 = vmatmul.mubr.bf16.gmra.mrb[60].mxu0 %v984_v9  ;;  %v781_v9 = vmul.f32 0.01, %v653_v0  ;;  %v992_v31 = vpack.c.bf16 %v904_v17, %v902_v18  ;;  %v916_v19 = vmax.f32 %v660_v62, %v788_v8  ;;  %v535_v62 = vmul.f32 %v4399_v39, %v362_v53 }
 0x10b   :  { %1414 = vmatprep.mubr.bf16.mxu0 %v987_v13  ;;  %v517_v13 = vmul.f32 %v4399_v39, %v317_v4 }
 0x10c   :  { %v909_v20 = vmax.f32 %v653_v0, %v781_v9  ;;  %v524_v9 = vmul.f32 %v4396_v38, %v337_v50  ;;  %v377_v8 = vpop.permute.xlu1 %376 }
 0x10d   :  { %v657_v22 = vadd.f32 %v4408_v44, %v517_v13 }
 0x10e   :  { %v995_v37 = vpack.c.bf16 %v909_v20, %v907_v21  ;;  %v664_v18 = vadd.f32 %v4405_v41, %v524_v9  ;;  %v914_v20 = vmax.f32 %v658_v1, %v786_v10  ;;  %v372_v9 = vpop.permute.xlu0 %371 }
 0x10f   :  { %v785_v32 = vmul.f32 0.01, %v657_v22 }
 0x110   :  { %v792_v28 = vmul.f32 0.01, %v664_v18  ;;  %v387_v25 = vpop.permute.xlu1 %386 }
 0x111   :  { %v913_v47 = vmax.f32 %v657_v22, %v785_v32  ;;  %v669_v22 = vadd.f32 %v4408_v44, %v529_v12  ;;  %v526_v32 = vmul.f32 %v4396_v38, %v342_v7  ;;  %v675_v7 = vadd.f32 %v4408_v44, %v535_v62 }
 0x112   :  { %1415 = vmatmul.mubr.bf16.gmra.mrb[64].mxu0 %v986_v29  ;;  %v514_v29 = vmul.f32 %v4396_v38, %v312_v5  ;;  %v663_v5 = vadd.f32 %v4408_v44, %v523_v60  ;;  %v545_v36 = vmul.f32 %v4399_v39, %v387_v25 }
 0x113   :  { %1424 = vmatprep.mubr.bf16.mxu0 %v989_v35  ;;  %v783_v35 = vmul.f32 0.01, %v655_v23 }
 0x114   :  { %v654_v45 = vadd.f32 %v4405_v41, %v514_v29  ;;  %v528_v29 = vmul.f32 %v4396_v38, %v347_v6  ;;  %v677_v6 = vadd.f32 %v4408_v44, %v537_v58  ;;  %v397_v58 = vpop.permute.xlu1 %396 }
 0x115   :  { %v911_v48 = vmax.f32 %v655_v23, %v783_v35  ;;  %v998_v35 = vpack.c.bf16 %v916_v19, %v914_v20 }
 0x116   :  { %v782_v54 = vmul.f32 0.01, %v654_v45  ;;  %v668_v43 = vadd.f32 %v4405_v41, %v528_v29  ;;  %v805_v16 = vmul.f32 0.01, %v677_v6 }
 0x117   :  { %v997_v61 = vpack.c.bf16 %v913_v47, %v911_v48  ;;  %v666_v47 = vadd.f32 %v4405_v41, %v526_v32 }
 0x118   :  { %v910_v0 = vmax.f32 %v654_v45, %v782_v54  ;;  %v920_v45 = vmax.f32 %v664_v18, %v792_v28  ;;  %v796_v54 = vmul.f32 0.01, %v668_v43  ;;  %v539_v18 = vmul.f32 %v4399_v39, %v372_v9 }
 0x119   :  { %v794_v56 = vmul.f32 0.01, %v666_v47 }
 0x11a   :  { %1425 = vmatmul.mubr.bf16.gmra.mrb[68].mxu0 %v988_v55  ;;  %v789_v55 = vmul.f32 0.01, %v661_v46  ;;  %v996_v13 = vpack.c.bf16 %v912_v63, %v910_v0  ;;  %v924_v1 = vmax.f32 %v668_v43, %v796_v54  ;;  %v679_v29 = vadd.f32 %v4408_v44, %v539_v18 }
 0x11b   :  { %1434 = vmatprep.mubr.bf16.mxu0 %v991_v59  ;;  %v525_v59 = vmul.f32 %v4399_v39, %v337_v50 }
 0x11c   :  { %v917_v2 = vmax.f32 %v661_v46, %v789_v55  ;;  %v532_v55 = vmul.f32 %v4396_v38, %v357_v26 }
 0x11d   :  { %v665_v4 = vadd.f32 %v4408_v44, %v525_v59 }
 0x11e   :  { %v999_v17 = vpack.c.bf16 %v917_v2, %v915_v3  ;;  %v672_v0 = vadd.f32 %v4405_v41, %v532_v55  ;;  %v922_v2 = vmax.f32 %v666_v47, %v794_v56 }
 0x11f   :  { %v793_v14 = vmul.f32 0.01, %v665_v4 }
 0x120   :  { %v800_v10 = vmul.f32 0.01, %v672_v0 }
 0x121   :  { %v921_v23 = vmax.f32 %v665_v4, %v793_v14  ;;  %v541_v14 = vmul.f32 %v4399_v39, %v377_v8 }
 0x122   :  { %1435 = vmatmul.mubr.bf16.gmra.mrb[72].mxu0 %v990_v11  ;;  %v522_v11 = vmul.f32 %v4396_v38, %v332_v51  ;;  %v671_v51 = vadd.f32 %v4408_v44, %v531_v40 }
 0x123   :  { %1444 = vmatprep.mubr.bf16.mxu0 %v993_v15  ;;  %v791_v15 = vmul.f32 0.01, %v663_v5 }
 0x124   :  { %v662_v21 = vadd.f32 %v4405_v41, %v522_v11  ;;  %v536_v11 = vmul.f32 %v4396_v38, %v367_v52  ;;  %v4746_v52 = vadd.f32 %v4408_v44, %v545_v36 }
 0x125   :  { %v919_v24 = vmax.f32 %v663_v5, %v791_v15  ;;  %v1002_v15 = vpack.c.bf16 %v924_v1, %v922_v2 }
 0x126   :  { %v790_v30 = vmul.f32 0.01, %v662_v21  ;;  %v676_v20 = vadd.f32 %v4405_v41, %v536_v11  ;;  %v549_v11 = vmul.f32 %v4399_v39, %v397_v58 }
 0x127   :  { %v1001_v42 = vpack.c.bf16 %v921_v23, %v919_v24  ;;  %v681_v24 = vadd.f32 %v4408_v44, %v541_v14 }
 0x128   :  { %v918_v46 = vmax.f32 %v662_v21, %v790_v30  ;;  %v928_v21 = vmax.f32 %v672_v0, %v800_v10  ;;  %v540_v30 = vmul.f32 %v4396_v38, %v377_v8  ;;  %v804_v32 = vmul.f32 0.01, %v676_v20 }
 0x129   :  { %v813_v8 = vmul.f32 0.01, %v4746_v52 }
 0x12a   :  { %1445 = vmatmul.mubr.bf16.gmra.mrb[76].mxu0 %v992_v31  ;;  %v797_v31 = vmul.f32 0.01, %v669_v22  ;;  %v1000_v59 = vpack.c.bf16 %v920_v45, %v918_v46  ;;  %v807_v46 = vmul.f32 0.01, %v679_v29  ;;  %v932_v55 = vmax.f32 %v676_v20, %v804_v32 }
 0x12b   :  { %1454 = vmatprep.mubr.bf16.mxu0 %v995_v37  ;;  %v533_v37 = vmul.f32 %v4399_v39, %v357_v26  ;;  %v1050_v26 = vld [vmem:[%s5549_s4] sm:$0x3] }
 0x12c   :  { %v925_v48 = vmax.f32 %v669_v22, %v797_v31  ;;  %v382_v31 = vpop.permute.xlu0 %381  ;;  %v4736_v45 = vrot.slane %v1050_v26, %v4384_v34 }
 0x12d   :  { %v673_v50 = vadd.f32 %v4408_v44, %v533_v37  ;;  %v4733_v37 = vrot.slane %v1050_v26, %v4382_v33  ;;  %v543_v47 = vmul.f32 %v4399_v39, %v382_v31 }
 0x12e   :  { %v1003_v63 = vpack.c.bf16 %v925_v48, %v923_v49  ;;  %v4740_v49 = vadd.f32 %v4405_v41, %v540_v30 }
 0x12f   :  { %v801_v60 = vmul.f32 0.01, %v673_v50  ;;  %v683_v62 = vadd.f32 %v4408_v44, %v543_v47 }
 0x131   :  { %v929_v4 = vmax.f32 %v673_v50, %v801_v60 }
 0x132   :  { %1455 = vmatmul.mubr.bf16.gmra.mrb[80].mxu0 %v994_v57  ;;  %v530_v57 = vmul.f32 %v4396_v38, %v352_v27  ;;  %v933_v27 = vmax.f32 %v677_v6, %v805_v16 }
 0x133   :  { %1464 = vmatprep.mubr.bf16.mxu0 %v997_v61  ;;  %v799_v61 = vmul.f32 0.01, %v671_v51 }
 0x134   :  { %v670_v3 = vadd.f32 %v4405_v41, %v530_v57 }
 0x135   :  { %v927_v5 = vmax.f32 %v671_v51, %v799_v61  ;;  %v935_v61 = vmax.f32 %v679_v29, %v807_v46  ;;  %v4770_v29 = vadd.f32 %v4408_v44, %v549_v11 }
 0x136   :  { %v798_v12 = vmul.f32 0.01, %v670_v3 }
 0x137   :  { %v1005_v19 = vpack.c.bf16 %v929_v4, %v927_v5  ;;  %v544_v4 = vmul.f32 %v4396_v38, %v387_v25 }
 0x138   :  { %v926_v22 = vmax.f32 %v670_v3, %v798_v12  ;;  %v808_v3 = vmul.f32 0.01, %v4740_v49 }
 0x139   :  { %v4762_v20 = vadd.f32 %v4405_v41, %v544_v4 }
 0x13a   :  { %1465 = vmatmul.mubr.bf16.gmra.mrb[84].mxu0 %v996_v13  ;;  %v534_v13 = vmul.f32 %v4396_v38, %v362_v53  ;;  %v1004_v43 = vpack.c.bf16 %v928_v21, %v926_v22 }
 0x13b   :  { %1474 = vmatprep.mubr.bf16.mxu0 %v999_v17  ;;  %v803_v17 = vmul.f32 0.01, %v675_v7 }
 0x13c   :  { %v674_v23 = vadd.f32 %v4405_v41, %v534_v13 }
 0x13d   :  { %v931_v28 = vmax.f32 %v675_v7, %v803_v17 }
 0x13e   :  { %v802_v40 = vmul.f32 0.01, %v674_v23 }
 0x13f   :  { %v1007_v48 = vpack.c.bf16 %v933_v27, %v931_v28 }
 0x140   :  { %v930_v56 = vmax.f32 %v674_v23, %v802_v40  ;;  %v941_v40 = vmax.f32 %v4746_v52, %v813_v8 }
 0x142   :  { %1475 = vmatmul.mubr.bf16.gmra.mrb[88].mxu0 %v998_v35  ;;  %v538_v35 = vmul.f32 %v4396_v38, %v372_v9  ;;  %v542_v9 = vmul.f32 %v4396_v38, %v382_v31  ;;  %v1006_v13 = vpack.c.bf16 %v932_v55, %v930_v56  ;;  %v407_v31 = vpop.permute.xlu1 %406 }
 0x143   :  { %1484 = vmatprep.mubr.bf16.mxu0 %v1001_v42  ;;  %v809_v42 = vmul.f32 0.01, %v681_v24  ;;  %v553_v52 = vmul.f32 %v4399_v39, %v407_v31 }
 0x144   :  { %v4743_v51 = vadd.f32 %v4405_v41, %v538_v35  ;;  %v4766_v25 = vadd.f32 %v4405_v41, %v542_v9 }
 0x145   :  { %v937_v57 = vmax.f32 %v681_v24, %v809_v42 }
 0x146   :  { %v806_v7 = vmul.f32 0.01, %v4743_v51 }
 0x147   :  { %v1009_v16 = vpack.c.bf16 %v937_v57, %v935_v61  ;;  %v817_v57 = vmul.f32 0.01, %v4770_v29 }
 0x148   :  { %v934_v24 = vmax.f32 %v4743_v51, %v806_v7  ;;  %v4795_v7 = vadd.f32 %v4408_v44, %v553_v52 }
 0x14a   :  { %1485 = vmatmul.mubr.bf16.gmra.mrb[92].mxu0 %v1000_v59 }
 0x14b   :  { %1494 = vmatprep.mubr.bf16.mxu0 %v1003_v63  ;;  %v392_v63 = vpop.permute.xlu0 %391 }
 0x14c   :  { %v547_v12 = vmul.f32 %v4399_v39, %v392_v63  ;;  %v546_v55 = vmul.f32 %v4396_v38, %v392_v63 }
 0x14e   :  { %v4773_v30 = vadd.f32 %v4408_v44, %v547_v12  ;;  %v945_v12 = vmax.f32 %v4770_v29, %v817_v57 }
 0x152   :  { %1495 = vmatmul.mubr.bf16.gmra.mrb[96].mxu0 %v1002_v15  ;;  %v811_v15 = vmul.f32 0.01, %v683_v62 }
 0x153   :  { %1504 = vmatprep.mubr.bf16.mxu0 %v1005_v19  ;;  %v936_v19 = vmax.f32 %v4740_v49, %v808_v3  ;;  %v548_v49 = vmul.f32 %v4396_v38, %v397_v58 }
 0x154   :  { %v939_v42 = vmax.f32 %v683_v62, %v811_v15 }
 0x155   :  { %v4789_v3 = vadd.f32 %v4405_v41, %v548_v49 }
 0x156   :  { %v1011_v62 = vpack.c.bf16 %v941_v40, %v939_v42 }
 0x15a   :  { %1505 = vmatmul.mubr.bf16.gmra.mrb[100].mxu0 %v1004_v43 }
 0x15b   :  { %1514 = vmatprep.mubr.bf16.mxu0 %v1007_v48  ;;  %v812_v48 = vmul.f32 0.01, %v4762_v20 }
 0x162   :  { %1515 = vmatmul.mubr.bf16.gmra.mrb[104].mxu0 %v1006_v13  ;;  %v417_v13 = vpop.permute.xlu1 %416 }
 0x163   :  { %1524 = vmatprep.mubr.bf16.mxu0 %v1009_v16 }
 0x165   :  { %v1256_v50 = vpop.f32.mrb[0].mxu0 }
 0x166   :  { %v1257_v53 = vadd.f32 %v1256_v50, %v4733_v37  ;;  %v1258_v54 = vpop.f32.mrb[1].mxu0  ;;  %v402_v50 = vpop.permute.xlu0 %401 }
 0x167   :  { %v1259_v59 = vadd.f32 %v1258_v54, %v4736_v45  ;;  %v1260_v60 = vpop.f32.mrb[2].mxu0  ;;  %v810_v54 = vmul.f32 0.01, %v4766_v25  ;;  %v551_v58 = vmul.f32 %v4399_v39, %v402_v50  ;;  %v550_v29 = vmul.f32 %v4396_v38, %v402_v50 }
 0x168   :  { %v1575_v0 = vmul.f32 0.01, %v1257_v53  ;;  %v1261_v1 = vadd.f32 %v1260_v60, %v4733_v37  ;;  %v1262_v2 = vpop.f32.mrb[3].mxu0  ;;  %v1008_v60 = vpack.c.bf16 %v936_v19, %v934_v24  ;;  %v552_v24 = vmul.f32 %v4396_v38, %v407_v31 }
 0x169   :  { %v1576_v5 = vmul.f32 0.01, %v1259_v59  ;;  %v1263_v6 = vadd.f32 %v1262_v2, %v4736_v45  ;;  %v940_v2 = vmax.f32 %v4762_v20, %v812_v48  ;;  %v938_v11 = vmax.f32 %v4766_v25, %v810_v54 }
 0x16a   :  { %v1577_v10 = vmul.f32 0.01, %v1261_v1  ;;  %v1703_v17 = vmax.f32 %v1257_v53, %v1575_v0  ;;  %1525 = vmatmul.mubr.bf16.gmra.mrb[108].mxu0 %v1008_v60  ;;  %v412_v19 = vpop.permute.xlu0 %411  ;;  %v4814_v48 = vadd.f32 %v4405_v41, %v552_v24 }
 0x16b   :  { %v1578_v14 = vmul.f32 0.01, %v1263_v6  ;;  %v1704_v22 = vmax.f32 %v1259_v59, %v1576_v5  ;;  %v815_v59 = vmul.f32 0.01, %v4773_v30  ;;  %1534 = vmatprep.mubr.bf16.mxu0 %v1011_v62 }
 0x16c   :  { %v1705_v18 = vmax.f32 %v1261_v1, %v1577_v10 }
 0x16d   :  { %v1266_v21 = vpop.f32.mrb[4].mxu0  ;;  %v1706_v23 = vmax.f32 %v1263_v6, %v1578_v14  ;;  %v4792_v6 = vadd.f32 %v4405_v41, %v546_v55 }
 0x16e   :  { %v1267_v26 = vadd.f32 %v1266_v21, %v4733_v37  ;;  %v1268_v27 = vpop.f32.mrb[5].mxu0  ;;  %v1831_v28 = vpack.c.bf16 %v1705_v18, %v1703_v17  ;;  %v943_v17 = vmax.f32 %v4773_v30, %v815_v59  ;;  %v691_v18 = vadd.f32 %v4408_v44, %v551_v58 }
 0x16f   :  { %v1269_v32 = vadd.f32 %v1268_v27, %v4736_v45  ;;  %v1270_v35 = vpop.f32.mrb[6].mxu0  ;;  %v1832_v36 = vpack.c.bf16 %v1706_v23, %v1704_v22  ;;  %v816_v23 = vmul.f32 0.01, %v4789_v3  ;;  %v814_v27 = vmul.f32 0.01, %v4792_v6 }
 0x170   :  { %v1579_v43 = vmul.f32 0.01, %v1267_v26  ;;  %v1271_v46 = vadd.f32 %v1270_v35, %v4733_v37  ;;  %v1272_v47 = vpop.f32.mrb[7].mxu0  ;;  %v555_v35 = vmul.f32 %v4399_v39, %v412_v19  ;;  %v819_v42 = vmul.f32 0.01, %v691_v18 }
 0x171   :  { %v1580_v51 = vmul.f32 0.01, %v1269_v32  ;;  %v1273_v53 = vadd.f32 %v1272_v47, %v4736_v45  ;;  %2131 = vmatprep.mubr.bf16.mxu1 %v1832_v36  ;;  %v1010_v36 = vpack.c.bf16 %v940_v2, %v938_v11  ;;  %v1013_v31 = vpack.c.bf16 %v945_v12, %v943_v17 }
 0x172   :  { %v1581_v56 = vmul.f32 0.01, %v1271_v46  ;;  %2132 = vmatmul.mubr.bf16.vlgmr.msra.gmra.mrb[0].mxu1 %v1831_v28  ;;  %v1707_v0 = vmax.f32 %v1267_v26, %v1579_v43  ;;  %v821_v28 = vmul.f32 0.01, %v4795_v7  ;;  %v944_v47 = vmax.f32 %v4789_v3, %v816_v23 }
 0x173   :  { %v1582_v61 = vmul.f32 0.01, %v1273_v53  ;;  %v1708_v63 = vmax.f32 %v1269_v32, %v1580_v51  ;;  %v557_v32 = vmul.f32 %v4399_v39, %v417_v13  ;;  %1535 = vmatmul.mubr.bf16.gmra.mrb[112].mxu0 %v1010_v36  ;;  %v947_v58 = vmax.f32 %v691_v18, %v819_v42 }
 0x174   :  { %v1709_v1 = vmax.f32 %v1271_v46, %v1581_v56  ;;  %v949_v54 = vmax.f32 %v4795_v7, %v821_v28  ;;  %1544 = vmatprep.mubr.bf16.mxu0 %v1013_v31  ;;  %v690_v56 = vadd.f32 %v4405_v41, %v550_v29  ;;  %v695_v62 = vadd.f32 %v4408_v44, %v555_v35 }
 0x175   :  { %v1710_v4 = vmax.f32 %v1273_v53, %v1582_v61  ;;  %v1276_v5 = vpop.f32.mrb[8].mxu0  ;;  %v942_v53 = vmax.f32 %v4792_v6, %v814_v27  ;;  %v697_v57 = vadd.f32 %v4408_v44, %v557_v32  ;;  %v554_v6 = vmul.f32 %v4396_v38, %v412_v19 }
 0x176   :  { %v1277_v8 = vadd.f32 %v1276_v5, %v4733_v37  ;;  %v1278_v9 = vpop.f32.mrb[9].mxu0  ;;  %v1833_v10 = vpack.c.bf16 %v1709_v1, %v1707_v0  ;;  %v556_v5 = vmul.f32 %v4396_v38, %v417_v13  ;;  %v823_v11 = vmul.f32 0.01, %v695_v62 }
 0x177   :  { %v1279_v14 = vadd.f32 %v1278_v9, %v4736_v45  ;;  %v1280_v15 = vpop.f32.mrb[10].mxu0  ;;  %v1834_v16 = vpack.c.bf16 %v1710_v4, %v1708_v63  ;;  %v820_v4 = vmul.f32 0.01, %v4814_v48  ;;  %v825_v9 = vmul.f32 0.01, %v697_v57 }
 0x178   :  { %v1583_v20 = vmul.f32 0.01, %v1277_v8  ;;  %v1281_v21 = vadd.f32 %v1280_v15, %v4733_v37  ;;  %v1282_v22 = vpop.f32.mrb[11].mxu0  ;;  %v1015_v12 = vpack.c.bf16 %v949_v54, %v947_v58  ;;  %v696_v13 = vadd.f32 %v4405_v41, %v556_v5 }
 0x179   :  { %v1584_v25 = vmul.f32 0.01, %v1279_v14  ;;  %v1283_v26 = vadd.f32 %v1282_v22, %v4736_v45  ;;  %2141 = vmatprep.mubr.bf16.mxu1 %v1834_v16  ;;  %v694_v23 = vadd.f32 %v4405_v41, %v554_v6  ;;  %v953_v27 = vmax.f32 %v697_v57, %v825_v9 }
 0x17a   :  { %v1585_v30 = vmul.f32 0.01, %v1281_v21  ;;  %2142 = vmatmul.mubr.bf16.gmra.mrb[4].mxu1 %v1833_v10  ;;  %v1711_v43 = vmax.f32 %v1277_v8, %v1583_v20  ;;  %v818_v8 = vmul.f32 0.01, %v690_v56  ;;  %v1012_v10 = vpack.c.bf16 %v944_v47, %v942_v53 }
 0x17b   :  { %v1586_v40 = vmul.f32 0.01, %v1283_v26  ;;  %v1712_v49 = vmax.f32 %v1279_v14, %v1584_v25  ;;  %v948_v20 = vmax.f32 %v4814_v48, %v820_v4  ;;  %v951_v28 = vmax.f32 %v695_v62, %v823_v11 }
 0x17c   :  { %v1713_v46 = vmax.f32 %v1281_v21, %v1585_v30  ;;  %1545 = vmatmul.mubr.bf16.gmra.mrb[116].mxu0 %v1012_v10  ;;  %v946_v22 = vmax.f32 %v690_v56, %v818_v8  ;;  %v824_v42 = vmul.f32 0.01, %v696_v13  ;;  %v822_v31 = vmul.f32 0.01, %v694_v23 }
 0x17d   :  { %v1714_v50 = vmax.f32 %v1283_v26, %v1586_v40  ;;  %v1286_v51 = vpop.f32.mrb[12].mxu0  ;;  %1554 = vmatprep.mubr.bf16.mxu0 %v1015_v12 }
 0x17e   :  { %v1287_v39 = vadd.f32 %v1286_v51, %v4733_v37  ;;  %v1288_v55 = vpop.f32.mrb[13].mxu0  ;;  %v1835_v52 = vpack.c.bf16 %v1713_v46, %v1711_v43  ;;  %v1014_v43 = vpack.c.bf16 %v948_v20, %v946_v22  ;;  %v1017_v46 = vpack.c.bf16 %v953_v27, %v951_v28 }
 0x17f   :  { %v1289_v59 = vadd.f32 %v1288_v55, %v4736_v45  ;;  %v1290_v60 = vpop.f32.mrb[14].mxu0  ;;  %v1836_v61 = vpack.c.bf16 %v1714_v50, %v1712_v49  ;;  %v952_v55 = vmax.f32 %v696_v13, %v824_v42 }
 0x180   :  { %v1587_v0 = vmul.f32 0.01, %v1287_v39  ;;  %v1291_v1 = vadd.f32 %v1290_v60, %v4733_v37  ;;  %v1292_v2 = vpop.f32.mrb[15].mxu0 }
 0x181   :  { %v1588_v3 = vmul.f32 0.01, %v1289_v59  ;;  %v1293_v63 = vadd.f32 %v1292_v2, %v4736_v45  ;;  %2151 = vmatprep.mubr.bf16.mxu1 %v1836_v61 }
 0x182   :  { %v1589_v7 = vmul.f32 0.01, %v1291_v1  ;;  %2152 = vmatmul.mubr.bf16.gmra.mrb[8].mxu1 %v1835_v52  ;;  %v1715_v14 = vmax.f32 %v1287_v39, %v1587_v0  ;;  %v950_v52 = vmax.f32 %v694_v23, %v822_v31 }
 0x183   :  { %v1590_v44 = vmul.f32 0.01, %v1293_v63  ;;  %v1716_v16 = vmax.f32 %v1289_v59, %v1588_v3 }
 0x184   :  { %v1717_v15 = vmax.f32 %v1291_v1, %v1589_v7  ;;  %1555 = vmatmul.mubr.bf16.gmra.mrb[120].mxu0 %v1014_v43  ;;  %v1016_v2 = vpack.c.bf16 %v952_v55, %v950_v52 }
 0x185   :  { %v1718_v17 = vmax.f32 %v1293_v63, %v1590_v44  ;;  %v1296_v18 = vpop.f32.mrb[16].mxu0  ;;  %1564 = vmatprep.mubr.bf16.mxu0 %v1017_v46 }
 0x186   :  { %v1297_v38 = vadd.f32 %v1296_v18, %v4733_v37  ;;  %v1298_v19 = vpop.f32.mrb[17].mxu0  ;;  %v1837_v21 = vpack.c.bf16 %v1717_v15, %v1715_v14 }
 0x187   :  { %v1299_v24 = vadd.f32 %v1298_v19, %v4736_v45  ;;  %v1300_v25 = vpop.f32.mrb[18].mxu0  ;;  %v1838_v26 = vpack.c.bf16 %v1718_v17, %v1716_v16 }
 0x188   :  { %v1591_v29 = vmul.f32 0.01, %v1297_v38  ;;  %v1301_v30 = vadd.f32 %v1300_v25, %v4733_v37  ;;  %v1302_v32 = vpop.f32.mrb[19].mxu0 }
 0x189   :  { %v1592_v35 = vmul.f32 0.01, %v1299_v24  ;;  %v1303_v36 = vadd.f32 %v1302_v32, %v4736_v45  ;;  %2161 = vmatprep.mubr.bf16.mxu1 %v1838_v26 }
 0x18a   :  { %v1593_v40 = vmul.f32 0.01, %v1301_v30  ;;  %2162 = vmatmul.mubr.bf16.gmra.mrb[12].mxu1 %v1837_v21  ;;  %v1719_v47 = vmax.f32 %v1297_v38, %v1591_v29 }
 0x18b   :  { %v1594_v41 = vmul.f32 0.01, %v1303_v36  ;;  %v1720_v49 = vmax.f32 %v1299_v24, %v1592_v35 }
 0x18c   :  { %v1721_v48 = vmax.f32 %v1301_v30, %v1593_v40  ;;  %1565 = vmatmul.mubr.bf16.gmra.mrb[124].mxu0 %v1016_v2 }
 0x18d   :  { %v1722_v50 = vmax.f32 %v1303_v36, %v1594_v41  ;;  %v1306_v51 = vpop.f32.mrb[20].mxu0 }
 0x18e   :  { %v1307_v53 = vadd.f32 %v1306_v51, %v4733_v37  ;;  %v1308_v54 = vpop.f32.mrb[21].mxu0  ;;  %v1839_v39 = vpack.c.bf16 %v1721_v48, %v1719_v47 }
 0x18f   :  { %v1309_v56 = vadd.f32 %v1308_v54, %v4736_v45  ;;  %v1310_v57 = vpop.f32.mrb[22].mxu0  ;;  %v1840_v59 = vpack.c.bf16 %v1722_v50, %v1720_v49 }
 0x190   :  { %v1595_v60 = vmul.f32 0.01, %v1307_v53  ;;  %v1311_v61 = vadd.f32 %v1310_v57, %v4733_v37  ;;  %v1312_v58 = vpop.f32.mrb[23].mxu0 }
 0x191   :  { %v1596_v62 = vmul.f32 0.01, %v1309_v56  ;;  %v1313_v0 = vadd.f32 %v1312_v58, %v4736_v45  ;;  %2171 = vmatprep.mubr.bf16.mxu1 %v1840_v59 }
 0x192   :  { %v1597_v1 = vmul.f32 0.01, %v1311_v61  ;;  %2172 = vmatmul.mubr.bf16.gmra.mrb[16].mxu1 %v1839_v39  ;;  %v1723_v63 = vmax.f32 %v1307_v53, %v1595_v60 }
 0x193   :  { %v1598_v3 = vmul.f32 0.01, %v1313_v0  ;;  %v1724_v5 = vmax.f32 %v1309_v56, %v1596_v62 }
 0x194   :  { %v1725_v4 = vmax.f32 %v1311_v61, %v1597_v1 }
 0x195   :  { %v1726_v6 = vmax.f32 %v1313_v0, %v1598_v3  ;;  %v1316_v7 = vpop.f32.mrb[24].mxu0 }
 0x196   :  { %v1317_v8 = vadd.f32 %v1316_v7, %v4733_v37  ;;  %v1318_v9 = vpop.f32.mrb[25].mxu0  ;;  %v1841_v10 = vpack.c.bf16 %v1725_v4, %v1723_v63 }
 0x197   :  { %v1319_v44 = vadd.f32 %v1318_v9, %v4736_v45  ;;  %v1320_v11 = vpop.f32.mrb[26].mxu0  ;;  %v1842_v12 = vpack.c.bf16 %v1726_v6, %v1724_v5 }
 0x198   :  { %v1599_v14 = vmul.f32 0.01, %v1317_v8  ;;  %v1321_v15 = vadd.f32 %v1320_v11, %v4733_v37  ;;  %v1322_v16 = vpop.f32.mrb[27].mxu0 }
 0x199   :  { %v1600_v17 = vmul.f32 0.01, %v1319_v44  ;;  %v1323_v18 = vadd.f32 %v1322_v16, %v4736_v45  ;;  %2181 = vmatprep.mubr.bf16.mxu1 %v1842_v12 }
 0x19a   :  { %v1601_v20 = vmul.f32 0.01, %v1321_v15  ;;  %2182 = vmatmul.mubr.bf16.gmra.mrb[20].mxu1 %v1841_v10  ;;  %v1727_v38 = vmax.f32 %v1317_v8, %v1599_v14 }
 0x19b   :  { %v1602_v13 = vmul.f32 0.01, %v1323_v18  ;;  %v1728_v21 = vmax.f32 %v1319_v44, %v1600_v17 }
 0x19c   :  { %v1729_v19 = vmax.f32 %v1321_v15, %v1601_v20 }
 0x19d   :  { %v1730_v22 = vmax.f32 %v1323_v18, %v1602_v13  ;;  %v1326_v23 = vpop.f32.mrb[28].mxu0 }
 0x19e   :  { %v1327_v24 = vadd.f32 %v1326_v23, %v4733_v37  ;;  %v1328_v25 = vpop.f32.mrb[29].mxu0  ;;  %v1843_v26 = vpack.c.bf16 %v1729_v19, %v1727_v38 }
 0x19f   :  { %v1329_v27 = vadd.f32 %v1328_v25, %v4736_v45  ;;  %v1330_v28 = vpop.f32.mrb[30].mxu0  ;;  %v1844_v29 = vpack.c.bf16 %v1730_v22, %v1728_v21 }
 0x1a0   :  { %v1603_v30 = vmul.f32 0.01, %v1327_v24  ;;  %v1331_v32 = vadd.f32 %v1330_v28, %v4733_v37  ;;  %v1332_v35 = vpop.f32.mrb[31].mxu0 }
 0x1a1   :  { %v1604_v36 = vmul.f32 0.01, %v1329_v27  ;;  %v1333_v40 = vadd.f32 %v1332_v35, %v4736_v45  ;;  %2191 = vmatprep.mubr.bf16.mxu1 %v1844_v29 }
 0x1a2   :  { %v1605_v42 = vmul.f32 0.01, %v1331_v32  ;;  %2192 = vmatmul.mubr.bf16.gmra.mrb[24].mxu1 %v1843_v26  ;;  %v1731_v43 = vmax.f32 %v1327_v24, %v1603_v30 }
 0x1a3   :  { %v1606_v31 = vmul.f32 0.01, %v1333_v40  ;;  %v1732_v46 = vmax.f32 %v1329_v27, %v1604_v36 }
 0x1a4   :  { %v1733_v41 = vmax.f32 %v1331_v32, %v1605_v42 }
 0x1a5   :  { %v1734_v47 = vmax.f32 %v1333_v40, %v1606_v31  ;;  %v1336_v48 = vpop.f32.mrb[32].mxu0 }
 0x1a6   :  { %v1337_v49 = vadd.f32 %v1336_v48, %v4733_v37  ;;  %v1338_v50 = vpop.f32.mrb[33].mxu0  ;;  %v1845_v51 = vpack.c.bf16 %v1733_v41, %v1731_v43 }
 0x1a7   :  { %v1339_v53 = vadd.f32 %v1338_v50, %v4736_v45  ;;  %v1340_v54 = vpop.f32.mrb[34].mxu0  ;;  %v1846_v39 = vpack.c.bf16 %v1734_v47, %v1732_v46 }
 0x1a8   :  { %v1607_v55 = vmul.f32 0.01, %v1337_v49  ;;  %v1341_v52 = vadd.f32 %v1340_v54, %v4733_v37  ;;  %v1342_v56 = vpop.f32.mrb[35].mxu0 }
 0x1a9   :  { %v1608_v57 = vmul.f32 0.01, %v1339_v53  ;;  %v1343_v59 = vadd.f32 %v1342_v56, %v4736_v45  ;;  %2201 = vmatprep.mubr.bf16.mxu1 %v1846_v39 }
 0x1aa   :  { %v1609_v60 = vmul.f32 0.01, %v1341_v52  ;;  %2202 = vmatmul.mubr.bf16.gmra.mrb[28].mxu1 %v1845_v51  ;;  %v1735_v58 = vmax.f32 %v1337_v49, %v1607_v55 }
 0x1ab   :  { %v1610_v61 = vmul.f32 0.01, %v1343_v59  ;;  %v1736_v0 = vmax.f32 %v1339_v53, %v1608_v57 }
 0x1ac   :  { %v1737_v62 = vmax.f32 %v1341_v52, %v1609_v60 }
 0x1ad   :  { %v1738_v1 = vmax.f32 %v1343_v59, %v1610_v61  ;;  %v1346_v2 = vpop.f32.mrb[36].mxu0 }
 0x1ae   :  { %v1847_v3 = vpack.c.bf16 %v1737_v62, %v1735_v58  ;;  %v1347_v63 = vadd.f32 %v1346_v2, %v4733_v37  ;;  %v1348_v4 = vpop.f32.mrb[37].mxu0 }
 0x1af   :  { %v1848_v5 = vpack.c.bf16 %v1738_v1, %v1736_v0  ;;  %v1349_v6 = vadd.f32 %v1348_v4, %v4736_v45  ;;  %v1350_v7 = vpop.f32.mrb[38].mxu0 }
 0x1b0   :  { %v1611_v8 = vmul.f32 0.01, %v1347_v63  ;;  %v1351_v9 = vadd.f32 %v1350_v7, %v4733_v37  ;;  %v1352_v10 = vpop.f32.mrb[39].mxu0 }
 0x1b1   :  { %2211 = vmatprep.mubr.bf16.mxu1 %v1848_v5  ;;  %v1612_v44 = vmul.f32 0.01, %v1349_v6  ;;  %v1353_v11 = vadd.f32 %v1352_v10, %v4736_v45 }
 0x1b2   :  { %2212 = vmatmul.mubr.bf16.gmra.mrb[32].mxu1 %v1847_v3  ;;  %v1613_v12 = vmul.f32 0.01, %v1351_v9  ;;  %v1739_v15 = vmax.f32 %v1347_v63, %v1611_v8 }
 0x1b3   :  { %v1614_v14 = vmul.f32 0.01, %v1353_v11  ;;  %v1740_v17 = vmax.f32 %v1349_v6, %v1612_v44 }
 0x1b4   :  { %v1741_v16 = vmax.f32 %v1351_v9, %v1613_v12 }
 0x1b5   :  { %v1742_v18 = vmax.f32 %v1353_v11, %v1614_v14  ;;  %v1356_v38 = vpop.f32.mrb[40].mxu0 }
 0x1b6   :  { %v1849_v20 = vpack.c.bf16 %v1741_v16, %v1739_v15  ;;  %v1357_v19 = vadd.f32 %v1356_v38, %v4733_v37  ;;  %v1358_v21 = vpop.f32.mrb[41].mxu0 }
 0x1b7   :  { %v1850_v13 = vpack.c.bf16 %v1742_v18, %v1740_v17  ;;  %v1359_v22 = vadd.f32 %v1358_v21, %v4736_v45  ;;  %v1360_v23 = vpop.f32.mrb[42].mxu0 }
 0x1b8   :  { %v1615_v24 = vmul.f32 0.01, %v1357_v19  ;;  %v1361_v25 = vadd.f32 %v1360_v23, %v4733_v37  ;;  %v1362_v26 = vpop.f32.mrb[43].mxu0 }
 0x1b9   :  { %2221 = vmatprep.mubr.bf16.mxu1 %v1850_v13  ;;  %v1616_v27 = vmul.f32 0.01, %v1359_v22  ;;  %v1363_v28 = vadd.f32 %v1362_v26, %v4736_v45 }
 0x1ba   :  { %2222 = vmatmul.mubr.bf16.gmra.mrb[36].mxu1 %v1849_v20  ;;  %v1617_v29 = vmul.f32 0.01, %v1361_v25  ;;  %v1743_v32 = vmax.f32 %v1357_v19, %v1615_v24 }
 0x1bb   :  { %v1618_v30 = vmul.f32 0.01, %v1363_v28  ;;  %v1744_v36 = vmax.f32 %v1359_v22, %v1616_v27 }
 0x1bc   :  { %v1745_v35 = vmax.f32 %v1361_v25, %v1617_v29 }
 0x1bd   :  { %v1746_v40 = vmax.f32 %v1363_v28, %v1618_v30  ;;  %v1366_v43 = vpop.f32.mrb[44].mxu0 }
 0x1be   :  { %v1851_v42 = vpack.c.bf16 %v1745_v35, %v1743_v32  ;;  %v1367_v41 = vadd.f32 %v1366_v43, %v4733_v37  ;;  %v1368_v46 = vpop.f32.mrb[45].mxu0 }
 0x1bf   :  { %v1852_v31 = vpack.c.bf16 %v1746_v40, %v1744_v36  ;;  %v1369_v47 = vadd.f32 %v1368_v46, %v4736_v45  ;;  %v1370_v48 = vpop.f32.mrb[46].mxu0 }
 0x1c0   :  { %v1619_v49 = vmul.f32 0.01, %v1367_v41  ;;  %v1371_v50 = vadd.f32 %v1370_v48, %v4733_v37  ;;  %v1372_v51 = vpop.f32.mrb[47].mxu0 }
 0x1c1   :  { %2231 = vmatprep.mubr.bf16.mxu1 %v1852_v31  ;;  %v1620_v53 = vmul.f32 0.01, %v1369_v47  ;;  %v1373_v54 = vadd.f32 %v1372_v51, %v4736_v45 }
 0x1c2   :  { %2232 = vmatmul.mubr.bf16.gmra.mrb[40].mxu1 %v1851_v42  ;;  %v1621_v39 = vmul.f32 0.01, %v1371_v50  ;;  %v1747_v52 = vmax.f32 %v1367_v41, %v1619_v49 }
 0x1c3   :  { %v1622_v55 = vmul.f32 0.01, %v1373_v54  ;;  %v1748_v57 = vmax.f32 %v1369_v47, %v1620_v53 }
 0x1c4   :  { %v1749_v56 = vmax.f32 %v1371_v50, %v1621_v39 }
 0x1c5   :  { %v1750_v59 = vmax.f32 %v1373_v54, %v1622_v55  ;;  %v1376_v60 = vpop.f32.mrb[48].mxu0 }
 0x1c6   :  { %v1853_v61 = vpack.c.bf16 %v1749_v56, %v1747_v52  ;;  %v1377_v58 = vadd.f32 %v1376_v60, %v4733_v37  ;;  %v1378_v62 = vpop.f32.mrb[49].mxu0 }
 0x1c7   :  { %v1854_v0 = vpack.c.bf16 %v1750_v59, %v1748_v57  ;;  %v1379_v1 = vadd.f32 %v1378_v62, %v4736_v45  ;;  %v1380_v2 = vpop.f32.mrb[50].mxu0 }
 0x1c8   :  { %v1623_v3 = vmul.f32 0.01, %v1377_v58  ;;  %v1381_v63 = vadd.f32 %v1380_v2, %v4733_v37  ;;  %v1382_v4 = vpop.f32.mrb[51].mxu0 }
 0x1c9   :  { %2241 = vmatprep.mubr.bf16.mxu1 %v1854_v0  ;;  %v1624_v5 = vmul.f32 0.01, %v1379_v1  ;;  %v1383_v6 = vadd.f32 %v1382_v4, %v4736_v45 }
 0x1ca   :  { %2242 = vmatmul.mubr.bf16.gmra.mrb[44].mxu1 %v1853_v61  ;;  %v1625_v7 = vmul.f32 0.01, %v1381_v63  ;;  %v1751_v9 = vmax.f32 %v1377_v58, %v1623_v3 }
 0x1cb   :  { %v1626_v8 = vmul.f32 0.01, %v1383_v6  ;;  %v1752_v44 = vmax.f32 %v1379_v1, %v1624_v5 }
 0x1cc   :  { %v1753_v10 = vmax.f32 %v1381_v63, %v1625_v7 }
 0x1cd   :  { %v1754_v11 = vmax.f32 %v1383_v6, %v1626_v8  ;;  %v1386_v14 = vpop.f32.mrb[52].mxu0 }
 0x1ce   :  { %v1855_v12 = vpack.c.bf16 %v1753_v10, %v1751_v9  ;;  %v1387_v16 = vadd.f32 %v1386_v14, %v4733_v37  ;;  %v1388_v17 = vpop.f32.mrb[53].mxu0 }
 0x1cf   :  { %v1856_v15 = vpack.c.bf16 %v1754_v11, %v1752_v44  ;;  %v1389_v18 = vadd.f32 %v1388_v17, %v4736_v45  ;;  %v1390_v20 = vpop.f32.mrb[54].mxu0 }
 0x1d0   :  { %v1627_v13 = vmul.f32 0.01, %v1387_v16  ;;  %v1391_v38 = vadd.f32 %v1390_v20, %v4733_v37  ;;  %v1392_v19 = vpop.f32.mrb[55].mxu0 }
 0x1d1   :  { %2251 = vmatprep.mubr.bf16.mxu1 %v1856_v15  ;;  %v1628_v21 = vmul.f32 0.01, %v1389_v18  ;;  %v1393_v22 = vadd.f32 %v1392_v19, %v4736_v45 }
 0x1d2   :  { %2252 = vmatmul.mubr.bf16.gmra.mrb[48].mxu1 %v1855_v12  ;;  %v1629_v23 = vmul.f32 0.01, %v1391_v38  ;;  %v1755_v25 = vmax.f32 %v1387_v16, %v1627_v13 }
 0x1d3   :  { %v1630_v24 = vmul.f32 0.01, %v1393_v22  ;;  %v1756_v27 = vmax.f32 %v1389_v18, %v1628_v21 }
 0x1d4   :  { %v1757_v26 = vmax.f32 %v1391_v38, %v1629_v23 }
 0x1d5   :  { %v1758_v28 = vmax.f32 %v1393_v22, %v1630_v24  ;;  %v1396_v29 = vpop.f32.mrb[56].mxu0 }
 0x1d6   :  { %v1397_v30 = vadd.f32 %v1396_v29, %v4733_v37  ;;  %v1398_v32 = vpop.f32.mrb[57].mxu0  ;;  %v1857_v35 = vpack.c.bf16 %v1757_v26, %v1755_v25 }
 0x1d7   :  { %v1399_v36 = vadd.f32 %v1398_v32, %v4736_v45  ;;  %v1400_v40 = vpop.f32.mrb[58].mxu0  ;;  %v1858_v42 = vpack.c.bf16 %v1758_v28, %v1756_v27 }
 0x1d8   :  { %v1631_v31 = vmul.f32 0.01, %v1397_v30  ;;  %v1401_v43 = vadd.f32 %v1400_v40, %v4733_v37  ;;  %v1402_v41 = vpop.f32.mrb[59].mxu0 }
 0x1d9   :  { %v1632_v46 = vmul.f32 0.01, %v1399_v36  ;;  %v1403_v47 = vadd.f32 %v1402_v41, %v4736_v45  ;;  %2261 = vmatprep.mubr.bf16.mxu1 %v1858_v42 }
 0x1da   :  { %v1633_v48 = vmul.f32 0.01, %v1401_v43  ;;  %2262 = vmatmul.mubr.bf16.gmra.mrb[52].mxu1 %v1857_v35  ;;  %v1759_v50 = vmax.f32 %v1397_v30, %v1631_v31 }
 0x1db   :  { %v1634_v49 = vmul.f32 0.01, %v1403_v47  ;;  %v1760_v53 = vmax.f32 %v1399_v36, %v1632_v46 }
 0x1dc   :  { %v1761_v51 = vmax.f32 %v1401_v43, %v1633_v48 }
 0x1dd   :  { %v1762_v54 = vmax.f32 %v1403_v47, %v1634_v49  ;;  %v1406_v39 = vpop.f32.mrb[60].mxu0 }
 0x1de   :  { %v1407_v55 = vadd.f32 %v1406_v39, %v4733_v37  ;;  %v1408_v52 = vpop.f32.mrb[61].mxu0  ;;  %v1859_v56 = vpack.c.bf16 %v1761_v51, %v1759_v50 }
 0x1df   :  { %v1409_v57 = vadd.f32 %v1408_v52, %v4736_v45  ;;  %v1410_v59 = vpop.f32.mrb[62].mxu0  ;;  %v1860_v60 = vpack.c.bf16 %v1762_v54, %v1760_v53 }
 0x1e0   :  { %v1635_v61 = vmul.f32 0.01, %v1407_v55  ;;  %v1411_v58 = vadd.f32 %v1410_v59, %v4733_v37  ;;  %v1412_v62 = vpop.f32.mrb[63].mxu0 }
 0x1e1   :  { %v1636_v0 = vmul.f32 0.01, %v1409_v57  ;;  %v1413_v1 = vadd.f32 %v1412_v62, %v4736_v45  ;;  %2271 = vmatprep.mubr.bf16.mxu1 %v1860_v60 }
 0x1e2   :  { %v1637_v2 = vmul.f32 0.01, %v1411_v58  ;;  %2272 = vmatmul.mubr.bf16.gmra.mrb[56].mxu1 %v1859_v56  ;;  %v1763_v63 = vmax.f32 %v1407_v55, %v1635_v61 }
 0x1e3   :  { %v1638_v3 = vmul.f32 0.01, %v1413_v1  ;;  %v1764_v5 = vmax.f32 %v1409_v57, %v1636_v0 }
 0x1e4   :  { %v1765_v4 = vmax.f32 %v1411_v58, %v1637_v2 }
 0x1e5   :  { %v1766_v6 = vmax.f32 %v1413_v1, %v1638_v3  ;;  %v1416_v7 = vpop.f32.mrb[64].mxu0 }
 0x1e6   :  { %v1417_v8 = vadd.f32 %v1416_v7, %v4733_v37  ;;  %v1418_v9 = vpop.f32.mrb[65].mxu0  ;;  %v1861_v10 = vpack.c.bf16 %v1765_v4, %v1763_v63 }
 0x1e7   :  { %v1419_v44 = vadd.f32 %v1418_v9, %v4736_v45  ;;  %v1420_v11 = vpop.f32.mrb[66].mxu0  ;;  %v1862_v12 = vpack.c.bf16 %v1766_v6, %v1764_v5 }
 0x1e8   :  { %v1639_v14 = vmul.f32 0.01, %v1417_v8  ;;  %v1421_v15 = vadd.f32 %v1420_v11, %v4733_v37  ;;  %v1422_v16 = vpop.f32.mrb[67].mxu0 }
 0x1e9   :  { %v1640_v17 = vmul.f32 0.01, %v1419_v44  ;;  %v1423_v18 = vadd.f32 %v1422_v16, %v4736_v45  ;;  %2281 = vmatprep.mubr.bf16.mxu1 %v1862_v12 }
 0x1ea   :  { %v1641_v20 = vmul.f32 0.01, %v1421_v15  ;;  %2282 = vmatmul.mubr.bf16.gmra.mrb[60].mxu1 %v1861_v10  ;;  %v1767_v38 = vmax.f32 %v1417_v8, %v1639_v14 }
 0x1eb   :  { %v1642_v13 = vmul.f32 0.01, %v1423_v18  ;;  %v1768_v21 = vmax.f32 %v1419_v44, %v1640_v17 }
 0x1ec   :  { %v1769_v19 = vmax.f32 %v1421_v15, %v1641_v20 }
 0x1ed   :  { %v1770_v22 = vmax.f32 %v1423_v18, %v1642_v13  ;;  %v1426_v23 = vpop.f32.mrb[68].mxu0 }
 0x1ee   :  { %v1427_v24 = vadd.f32 %v1426_v23, %v4733_v37  ;;  %v1428_v25 = vpop.f32.mrb[69].mxu0  ;;  %v1863_v26 = vpack.c.bf16 %v1769_v19, %v1767_v38 }
 0x1ef   :  { %v1429_v27 = vadd.f32 %v1428_v25, %v4736_v45  ;;  %v1430_v28 = vpop.f32.mrb[70].mxu0  ;;  %v1864_v29 = vpack.c.bf16 %v1770_v22, %v1768_v21 }
 0x1f0   :  { %v1643_v30 = vmul.f32 0.01, %v1427_v24  ;;  %v1431_v32 = vadd.f32 %v1430_v28, %v4733_v37  ;;  %v1432_v35 = vpop.f32.mrb[71].mxu0 }
 0x1f1   :  { %v1644_v36 = vmul.f32 0.01, %v1429_v27  ;;  %v1433_v40 = vadd.f32 %v1432_v35, %v4736_v45  ;;  %2291 = vmatprep.mubr.bf16.mxu1 %v1864_v29 }
 0x1f2   :  { %v1645_v42 = vmul.f32 0.01, %v1431_v32  ;;  %2292 = vmatmul.mubr.bf16.gmra.mrb[64].mxu1 %v1863_v26  ;;  %v1771_v43 = vmax.f32 %v1427_v24, %v1643_v30 }
 0x1f3   :  { %v1646_v31 = vmul.f32 0.01, %v1433_v40  ;;  %v1772_v46 = vmax.f32 %v1429_v27, %v1644_v36 }
 0x1f4   :  { %v1773_v41 = vmax.f32 %v1431_v32, %v1645_v42 }
 0x1f5   :  { %v1774_v47 = vmax.f32 %v1433_v40, %v1646_v31  ;;  %v1436_v48 = vpop.f32.mrb[72].mxu0 }
 0x1f6   :  { %v1437_v49 = vadd.f32 %v1436_v48, %v4733_v37  ;;  %v1438_v50 = vpop.f32.mrb[73].mxu0  ;;  %v1865_v51 = vpack.c.bf16 %v1773_v41, %v1771_v43 }
 0x1f7   :  { %v1439_v53 = vadd.f32 %v1438_v50, %v4736_v45  ;;  %v1440_v54 = vpop.f32.mrb[74].mxu0  ;;  %v1866_v39 = vpack.c.bf16 %v1774_v47, %v1772_v46 }
 0x1f8   :  { %v1647_v55 = vmul.f32 0.01, %v1437_v49  ;;  %v1441_v52 = vadd.f32 %v1440_v54, %v4733_v37  ;;  %v1442_v56 = vpop.f32.mrb[75].mxu0 }
 0x1f9   :  { %v1648_v57 = vmul.f32 0.01, %v1439_v53  ;;  %v1443_v59 = vadd.f32 %v1442_v56, %v4736_v45  ;;  %2301 = vmatprep.mubr.bf16.mxu1 %v1866_v39 }
 0x1fa   :  { %v1649_v60 = vmul.f32 0.01, %v1441_v52  ;;  %2302 = vmatmul.mubr.bf16.gmra.mrb[68].mxu1 %v1865_v51  ;;  %v1775_v58 = vmax.f32 %v1437_v49, %v1647_v55 }
 0x1fb   :  { %v1650_v61 = vmul.f32 0.01, %v1443_v59  ;;  %v1776_v0 = vmax.f32 %v1439_v53, %v1648_v57 }
 0x1fc   :  { %v1777_v62 = vmax.f32 %v1441_v52, %v1649_v60 }
 0x1fd   :  { %v1778_v1 = vmax.f32 %v1443_v59, %v1650_v61  ;;  %v1446_v2 = vpop.f32.mrb[76].mxu0 }
 0x1fe   :  { %v1447_v3 = vadd.f32 %v1446_v2, %v4733_v37  ;;  %v1448_v63 = vpop.f32.mrb[77].mxu0  ;;  %v1867_v4 = vpack.c.bf16 %v1777_v62, %v1775_v58 }
 0x1ff   :  { %v1449_v5 = vadd.f32 %v1448_v63, %v4736_v45  ;;  %v1450_v6 = vpop.f32.mrb[78].mxu0  ;;  %v1868_v7 = vpack.c.bf16 %v1778_v1, %v1776_v0 }
 0x200   :  { %v1651_v8 = vmul.f32 0.01, %v1447_v3  ;;  %v1451_v9 = vadd.f32 %v1450_v6, %v4733_v37  ;;  %v1452_v10 = vpop.f32.mrb[79].mxu0 }
 0x201   :  { %v1652_v44 = vmul.f32 0.01, %v1449_v5  ;;  %v1453_v11 = vadd.f32 %v1452_v10, %v4736_v45  ;;  %2311 = vmatprep.mubr.bf16.mxu1 %v1868_v7 }
 0x202   :  { %v1653_v12 = vmul.f32 0.01, %v1451_v9  ;;  %2312 = vmatmul.mubr.bf16.gmra.mrb[72].mxu1 %v1867_v4  ;;  %v1779_v15 = vmax.f32 %v1447_v3, %v1651_v8 }
 0x203   :  { %v1654_v14 = vmul.f32 0.01, %v1453_v11  ;;  %v1780_v17 = vmax.f32 %v1449_v5, %v1652_v44 }
 0x204   :  { %v1781_v16 = vmax.f32 %v1451_v9, %v1653_v12 }
 0x205   :  { %v1782_v18 = vmax.f32 %v1453_v11, %v1654_v14  ;;  %v1456_v20 = vpop.f32.mrb[80].mxu0 }
 0x206   :  { %v1457_v13 = vadd.f32 %v1456_v20, %v4733_v37  ;;  %v1458_v38 = vpop.f32.mrb[81].mxu0  ;;  %v1869_v19 = vpack.c.bf16 %v1781_v16, %v1779_v15 }
 0x207   :  { %v1459_v21 = vadd.f32 %v1458_v38, %v4736_v45  ;;  %v1460_v22 = vpop.f32.mrb[82].mxu0  ;;  %v1870_v23 = vpack.c.bf16 %v1782_v18, %v1780_v17 }
 0x208   :  { %v1655_v24 = vmul.f32 0.01, %v1457_v13  ;;  %v1461_v25 = vadd.f32 %v1460_v22, %v4733_v37  ;;  %v1462_v26 = vpop.f32.mrb[83].mxu0 }
 0x209   :  { %v1656_v27 = vmul.f32 0.01, %v1459_v21  ;;  %v1463_v28 = vadd.f32 %v1462_v26, %v4736_v45  ;;  %2321 = vmatprep.mubr.bf16.mxu1 %v1870_v23 }
 0x20a   :  { %v1657_v29 = vmul.f32 0.01, %v1461_v25  ;;  %2322 = vmatmul.mubr.bf16.gmra.mrb[76].mxu1 %v1869_v19  ;;  %v1783_v32 = vmax.f32 %v1457_v13, %v1655_v24 }
 0x20b   :  { %v1658_v30 = vmul.f32 0.01, %v1463_v28  ;;  %v1784_v36 = vmax.f32 %v1459_v21, %v1656_v27 }
 0x20c   :  { %v1785_v35 = vmax.f32 %v1461_v25, %v1657_v29 }
 0x20d   :  { %v1786_v40 = vmax.f32 %v1463_v28, %v1658_v30  ;;  %v1466_v42 = vpop.f32.mrb[84].mxu0 }
 0x20e   :  { %v1467_v31 = vadd.f32 %v1466_v42, %v4733_v37  ;;  %v1468_v43 = vpop.f32.mrb[85].mxu0  ;;  %v1871_v41 = vpack.c.bf16 %v1785_v35, %v1783_v32 }
 0x20f   :  { %v1469_v46 = vadd.f32 %v1468_v43, %v4736_v45  ;;  %v1470_v47 = vpop.f32.mrb[86].mxu0  ;;  %v1872_v48 = vpack.c.bf16 %v1786_v40, %v1784_v36 }
 0x210   :  { %v1659_v49 = vmul.f32 0.01, %v1467_v31  ;;  %v1471_v50 = vadd.f32 %v1470_v47, %v4733_v37  ;;  %v1472_v51 = vpop.f32.mrb[87].mxu0 }
 0x211   :  { %v1660_v53 = vmul.f32 0.01, %v1469_v46  ;;  %v1473_v54 = vadd.f32 %v1472_v51, %v4736_v45  ;;  %2331 = vmatprep.mubr.bf16.mxu1 %v1872_v48 }
 0x212   :  { %v1661_v39 = vmul.f32 0.01, %v1471_v50  ;;  %2332 = vmatmul.mubr.bf16.gmra.mrb[80].mxu1 %v1871_v41  ;;  %v1787_v52 = vmax.f32 %v1467_v31, %v1659_v49 }
 0x213   :  { %v1662_v55 = vmul.f32 0.01, %v1473_v54  ;;  %v1788_v57 = vmax.f32 %v1469_v46, %v1660_v53 }
 0x214   :  { %v1789_v56 = vmax.f32 %v1471_v50, %v1661_v39 }
 0x215   :  { %v1790_v59 = vmax.f32 %v1473_v54, %v1662_v55  ;;  %v1476_v60 = vpop.f32.mrb[88].mxu0 }
 0x216   :  { %v1477_v61 = vadd.f32 %v1476_v60, %v4733_v37  ;;  %v1478_v58 = vpop.f32.mrb[89].mxu0  ;;  %v1873_v62 = vpack.c.bf16 %v1789_v56, %v1787_v52 }
 0x217   :  { %v1479_v0 = vadd.f32 %v1478_v58, %v4736_v45  ;;  %v1480_v1 = vpop.f32.mrb[90].mxu0  ;;  %v1874_v2 = vpack.c.bf16 %v1790_v59, %v1788_v57 }
 0x218   :  { %v1663_v3 = vmul.f32 0.01, %v1477_v61  ;;  %v1481_v63 = vadd.f32 %v1480_v1, %v4733_v37  ;;  %v1482_v4 = vpop.f32.mrb[91].mxu0 }
 0x219   :  { %v1664_v5 = vmul.f32 0.01, %v1479_v0  ;;  %v1483_v6 = vadd.f32 %v1482_v4, %v4736_v45  ;;  %2341 = vmatprep.mubr.bf16.mxu1 %v1874_v2 }
 0x21a   :  { %v1665_v7 = vmul.f32 0.01, %v1481_v63  ;;  %2342 = vmatmul.mubr.bf16.gmra.mrb[84].mxu1 %v1873_v62  ;;  %v1791_v9 = vmax.f32 %v1477_v61, %v1663_v3 }
 0x21b   :  { %v1666_v8 = vmul.f32 0.01, %v1483_v6  ;;  %v1792_v44 = vmax.f32 %v1479_v0, %v1664_v5  ;;  %v1927_v5 = vld [vmem:[%s5550_s6] sm:$0x3] }
 0x21c   :  { %v1793_v10 = vmax.f32 %v1481_v63, %v1665_v7 }
 0x21d   :  { %v1794_v11 = vmax.f32 %v1483_v6, %v1666_v8  ;;  %v1486_v12 = vpop.f32.mrb[92].mxu0 }
 0x21e   :  { %v1487_v14 = vadd.f32 %v1486_v12, %v4733_v37  ;;  %v1488_v15 = vpop.f32.mrb[93].mxu0  ;;  %v1875_v16 = vpack.c.bf16 %v1793_v10, %v1791_v9 }
 0x21f   :  { %v1489_v17 = vadd.f32 %v1488_v15, %v4736_v45  ;;  %v1490_v18 = vpop.f32.mrb[94].mxu0  ;;  %v1876_v20 = vpack.c.bf16 %v1794_v11, %v1792_v44  ;;  %v4925_v15 = vrot.slane %v1927_v5, %v4382_v33 }
 0x220   :  { %v1667_v13 = vmul.f32 0.01, %v1487_v14  ;;  %v1491_v38 = vadd.f32 %v1490_v18, %v4733_v37  ;;  %v1492_v19 = vpop.f32.mrb[95].mxu0 }
 0x221   :  { %v1668_v21 = vmul.f32 0.01, %v1489_v17  ;;  %v1493_v22 = vadd.f32 %v1492_v19, %v4736_v45  ;;  %2351 = vmatprep.mubr.bf16.mxu1 %v1876_v20  ;;  %v4929_v20 = vrot.slane %v1927_v5, %v4384_v34 }
 0x222   :  { %v1669_v23 = vmul.f32 0.01, %v1491_v38  ;;  %2352 = vmatmul.mubr.bf16.gmra.mrb[88].mxu1 %v1875_v16  ;;  %v1795_v25 = vmax.f32 %v1487_v14, %v1667_v13  ;;  %v2708_v13 = vld [vmem:[%s5551_s7] sm:$0x3] }
 0x223   :  { %v1670_v24 = vmul.f32 0.01, %v1493_v22  ;;  %v1796_v27 = vmax.f32 %v1489_v17, %v1668_v21 }
 0x224   :  { %v1797_v26 = vmax.f32 %v1491_v38, %v1669_v23 }
 0x225   :  { %v1798_v28 = vmax.f32 %v1493_v22, %v1670_v24  ;;  %v1496_v29 = vpop.f32.mrb[96].mxu0 }
 0x226   :  { %v1497_v30 = vadd.f32 %v1496_v29, %v4733_v37  ;;  %v1498_v32 = vpop.f32.mrb[97].mxu0  ;;  %v1877_v35 = vpack.c.bf16 %v1797_v26, %v1795_v25  ;;  %v4937_v26 = vrot.slane %v2708_v13, %v4382_v33 }
 0x227   :  { %v1499_v36 = vadd.f32 %v1498_v32, %v4736_v45  ;;  %v1500_v40 = vpop.f32.mrb[98].mxu0  ;;  %v1878_v42 = vpack.c.bf16 %v1798_v28, %v1796_v27  ;;  %v4941_v32 = vrot.slane %v2708_v13, %v4384_v34 }
 0x228   :  { %v1671_v31 = vmul.f32 0.01, %v1497_v30  ;;  %v1501_v43 = vadd.f32 %v1500_v40, %v4733_v37  ;;  %v1502_v41 = vpop.f32.mrb[99].mxu0 }
 0x229   :  { %v1672_v46 = vmul.f32 0.01, %v1499_v36  ;;  %v1503_v47 = vadd.f32 %v1502_v41, %v4736_v45  ;;  %2361 = vmatprep.mubr.bf16.mxu1 %v1878_v42 }
 0x22a   :  { %v1673_v48 = vmul.f32 0.01, %v1501_v43  ;;  %2362 = vmatmul.mubr.bf16.gmra.mrb[92].mxu1 %v1877_v35  ;;  %v1799_v50 = vmax.f32 %v1497_v30, %v1671_v31 }
 0x22b   :  { %v1674_v49 = vmul.f32 0.01, %v1503_v47  ;;  %v1800_v53 = vmax.f32 %v1499_v36, %v1672_v46 }
 0x22c   :  { %v1801_v51 = vmax.f32 %v1501_v43, %v1673_v48 }
 0x22d   :  { %v1802_v54 = vmax.f32 %v1503_v47, %v1674_v49  ;;  %v1506_v39 = vpop.f32.mrb[100].mxu0 }
 0x22e   :  { %v1507_v55 = vadd.f32 %v1506_v39, %v4733_v37  ;;  %v1508_v52 = vpop.f32.mrb[101].mxu0  ;;  %v1879_v56 = vpack.c.bf16 %v1801_v51, %v1799_v50 }
 0x22f   :  { %v1509_v57 = vadd.f32 %v1508_v52, %v4736_v45  ;;  %v1510_v59 = vpop.f32.mrb[102].mxu0  ;;  %v1880_v60 = vpack.c.bf16 %v1802_v54, %v1800_v53 }
 0x230   :  { %v1675_v61 = vmul.f32 0.01, %v1507_v55  ;;  %v1511_v58 = vadd.f32 %v1510_v59, %v4733_v37  ;;  %v1512_v62 = vpop.f32.mrb[103].mxu0 }
 0x231   :  { %v1676_v0 = vmul.f32 0.01, %v1509_v57  ;;  %v1513_v1 = vadd.f32 %v1512_v62, %v4736_v45  ;;  %2371 = vmatprep.mubr.bf16.mxu1 %v1880_v60 }
 0x232   :  { %v1677_v2 = vmul.f32 0.01, %v1511_v58  ;;  %2372 = vmatmul.mubr.bf16.gmra.mrb[96].mxu1 %v1879_v56  ;;  %v1803_v63 = vmax.f32 %v1507_v55, %v1675_v61 }
 0x233   :  { %v1678_v3 = vmul.f32 0.01, %v1513_v1  ;;  %v1804_v6 = vmax.f32 %v1509_v57, %v1676_v0 }
 0x234   :  { %v1805_v4 = vmax.f32 %v1511_v58, %v1677_v2 }
 0x235   :  { %v1806_v7 = vmax.f32 %v1513_v1, %v1678_v3  ;;  %v1516_v8 = vpop.f32.mrb[104].mxu0 }
 0x236   :  { %v1517_v9 = vadd.f32 %v1516_v8, %v4733_v37  ;;  %v1518_v10 = vpop.f32.mrb[105].mxu0  ;;  %v1881_v44 = vpack.c.bf16 %v1805_v4, %v1803_v63 }
 0x237   :  { %v1519_v11 = vadd.f32 %v1518_v10, %v4736_v45  ;;  %v1520_v12 = vpop.f32.mrb[106].mxu0  ;;  %v1882_v14 = vpack.c.bf16 %v1806_v7, %v1804_v6 }
 0x238   :  { %v1679_v16 = vmul.f32 0.01, %v1517_v9  ;;  %v1521_v17 = vadd.f32 %v1520_v12, %v4733_v37  ;;  %v1522_v18 = vpop.f32.mrb[107].mxu0 }
 0x239   :  { %v1680_v38 = vmul.f32 0.01, %v1519_v11  ;;  %v1523_v19 = vadd.f32 %v1522_v18, %v4736_v45  ;;  %2381 = vmatprep.mubr.bf16.mxu1 %v1882_v14 }
 0x23a   :  { %v1681_v21 = vmul.f32 0.01, %v1521_v17  ;;  %2382 = vmatmul.mubr.bf16.gmra.mrb[100].mxu1 %v1881_v44  ;;  %v1807_v27 = vmax.f32 %v1517_v9, %v1679_v16 }
 0x23b   :  { %v1682_v23 = vmul.f32 0.01, %v1523_v19  ;;  %v1808_v35 = vmax.f32 %v1519_v11, %v1680_v38 }
 0x23c   :  { %v1809_v28 = vmax.f32 %v1521_v17, %v1681_v21 }
 0x23d   :  { %v1810_v36 = vmax.f32 %v1523_v19, %v1682_v23  ;;  %v1526_v40 = vpop.f32.mrb[108].mxu0 }
 0x23e   :  { %v1527_v41 = vadd.f32 %v1526_v40, %v4733_v37  ;;  %v1528_v46 = vpop.f32.mrb[109].mxu0  ;;  %v1883_v33 = vpack.c.bf16 %v1809_v28, %v1807_v27 }
 0x23f   :  { %v1529_v49 = vadd.f32 %v1528_v46, %v4736_v45  ;;  %v1530_v50 = vpop.f32.mrb[110].mxu0  ;;  %v1884_v51 = vpack.c.bf16 %v1810_v36, %v1808_v35 }
 0x240   :  { %v1683_v54 = vmul.f32 0.01, %v1527_v41  ;;  %v1531_v39 = vadd.f32 %v1530_v50, %v4733_v37  ;;  %v1532_v55 = vpop.f32.mrb[111].mxu0 }
 0x241   :  { %v1684_v57 = vmul.f32 0.01, %v1529_v49  ;;  %v1533_v59 = vadd.f32 %v1532_v55, %v4736_v45  ;;  %2391 = vmatprep.mubr.bf16.mxu1 %v1884_v51 }
 0x242   :  { %v1685_v58 = vmul.f32 0.01, %v1531_v39  ;;  %2392 = vmatmul.mubr.bf16.gmra.mrb[104].mxu1 %v1883_v33  ;;  %v1811_v2 = vmax.f32 %v1527_v41, %v1683_v54 }
 0x243   :  { %v1812_v3 = vmax.f32 %v1529_v49, %v1684_v57  ;;  %v1686_v63 = vmul.f32 0.01, %v1533_v59 }
 0x244   :  { %v1813_v6 = vmax.f32 %v1531_v39, %v1685_v58 }
 0x245   :  { %v2133_v22 = vpop.f32.mrb[0].mxu1  ;;  %v1814_v44 = vmax.f32 %v1533_v59, %v1686_v63 }
 0x246   :  { %v2134_v24 = vadd.f32 %v2133_v22, %v4925_v15  ;;  %v2135_v25 = vpop.f32.mrb[1].mxu1  ;;  %v1536_v11 = vpop.f32.mrb[112].mxu0  ;;  %v1885_v38 = vpack.c.bf16 %v1813_v6, %v1811_v2 }
 0x247   :  { %v2136_v29 = vadd.f32 %v2135_v25, %v4929_v20  ;;  %v2137_v30 = vpop.f32.mrb[2].mxu1  ;;  %v1537_v18 = vadd.f32 %v1536_v11, %v4733_v37  ;;  %v1538_v13 = vpop.f32.mrb[113].mxu0 }
 0x248   :  { %v2452_v42 = vmul.f32 0.01, %v2134_v24  ;;  %v2138_v31 = vadd.f32 %v2137_v30, %v4925_v15  ;;  %v2139_v43 = vpop.f32.mrb[3].mxu1  ;;  %v1539_v22 = vadd.f32 %v1538_v13, %v4736_v45  ;;  %v1540_v23 = vpop.f32.mrb[114].mxu0 }
 0x249   :  { %v2453_v47 = vmul.f32 0.01, %v2136_v29  ;;  %v2140_v48 = vadd.f32 %v2139_v43, %v4929_v20  ;;  %v1687_v28 = vmul.f32 0.01, %v1537_v18  ;;  %v1542_v30 = vpop.f32.mrb[115].mxu0 }
 0x24a   :  { %v2580_v34 = vmax.f32 %v2134_v24, %v2452_v42  ;;  %v2454_v53 = vmul.f32 0.01, %v2138_v31  ;;  %v1886_v24 = vpack.c.bf16 %v1814_v44, %v1812_v3  ;;  %v1688_v40 = vmul.f32 0.01, %v1539_v22 }
 0x24b   :  { %v2581_v52 = vmax.f32 %v2136_v29, %v2453_v47  ;;  %v2455_v56 = vmul.f32 0.01, %v2140_v48  ;;  %v1541_v29 = vadd.f32 %v1540_v23, %v4733_v37  ;;  %v1543_v42 = vadd.f32 %v1542_v30, %v4736_v45 }
 0x24c   :  { %v2582_v60 = vmax.f32 %v2138_v31, %v2454_v53  ;;  %v2720_v61 = vmul.f32 %v4937_v26, %v2580_v34  ;;  %2401 = vmatprep.mubr.bf16.mxu1 %v1886_v24  ;;  %v1815_v41 = vmax.f32 %v1537_v18, %v1687_v28  ;;  %v1816_v49 = vmax.f32 %v1539_v22, %v1688_v40 }
 0x24d   :  { %v2583_v62 = vmax.f32 %v2140_v48, %v2455_v56  ;;  %v2143_v0 = vpop.f32.mrb[4].mxu1  ;;  %v2721_v1 = vmul.f32 %v4941_v32, %v2581_v52  ;;  %v1689_v46 = vmul.f32 0.01, %v1541_v29  ;;  %2402 = vmatmul.mubr.bf16.gmra.mrb[108].mxu1 %v1885_v38  ;;  %v1690_v50 = vmul.f32 0.01, %v1543_v42 }
 0x24e   :  { %v2144_v4 = vadd.f32 %v2143_v0, %v4925_v15  ;;  %v2145_v5 = vpop.f32.mrb[5].mxu1  ;;  %v2722_v10 = vmul.f32 %v4937_v26, %v2582_v60 }
 0x24f   :  { %v2146_v7 = vadd.f32 %v2145_v5, %v4929_v20  ;;  %v2147_v8 = vpop.f32.mrb[6].mxu1  ;;  %v2848_v9 = vadd.f32 %v2721_v1, %v2720_v61  ;;  %v2723_v17 = vmul.f32 %v4941_v32, %v2583_v62  ;;  %v1817_v54 = vmax.f32 %v1541_v29, %v1689_v46  ;;  %v1546_v59 = vpop.f32.mrb[116].mxu0 }
 0x250   :  { %v2456_v12 = vmul.f32 0.01, %v2144_v4  ;;  %v2148_v14 = vadd.f32 %v2147_v8, %v4925_v15  ;;  %v2149_v16 = vpop.f32.mrb[7].mxu1  ;;  %v1818_v57 = vmax.f32 %v1543_v42, %v1690_v50  ;;  %v1547_v0 = vadd.f32 %v1546_v59, %v4733_v37  ;;  %v1548_v1 = vpop.f32.mrb[117].mxu0 }
 0x251   :  { %v2457_v19 = vmul.f32 0.01, %v2146_v7  ;;  %v2150_v21 = vadd.f32 %v2149_v16, %v4929_v20  ;;  %2849 = vadd.xlane.f32.xlu0 %v2848_v9  ;;  %v2851_v43 = vadd.f32 %v2723_v17, %v2722_v10  ;;  %v1887_v2 = vpack.c.bf16 %v1817_v54, %v1815_v41  ;;  %v1550_v5 = vpop.f32.mrb[118].mxu0 }
 0x252   :  { %v2584_v25 = vmax.f32 %v2144_v4, %v2456_v12  ;;  %v2458_v27 = vmul.f32 0.01, %v2148_v14  ;;  %v1549_v4 = vadd.f32 %v1548_v1, %v4736_v45  ;;  %v1888_v6 = vpack.c.bf16 %v1818_v57, %v1816_v49  ;;  %v1552_v44 = vpop.f32.mrb[119].mxu0 }
 0x253   :  { %v2585_v35 = vmax.f32 %v2146_v7, %v2457_v19  ;;  %v2459_v36 = vmul.f32 0.01, %v2150_v21  ;;  %2852 = vadd.xlane.f32.xlu1 %v2851_v43  ;;  %v1691_v9 = vmul.f32 0.01, %v1547_v0  ;;  %v1551_v10 = vadd.f32 %v1550_v5, %v4733_v37 }
 0x254   :  { %v2586_v31 = vmax.f32 %v2148_v14, %v2458_v27  ;;  %v2724_v48 = vmul.f32 %v4937_v26, %v2584_v25  ;;  %v1692_v14 = vmul.f32 0.01, %v1549_v4  ;;  %v1553_v16 = vadd.f32 %v1552_v44, %v4736_v45  ;;  %2411 = vmatprep.mubr.bf16.mxu1 %v1888_v6 }
 0x255   :  { %v2587_v33 = vmax.f32 %v2150_v21, %v2459_v36  ;;  %v2153_v47 = vpop.f32.mrb[8].mxu1  ;;  %v2725_v53 = vmul.f32 %v4941_v32, %v2585_v35  ;;  %v1819_v13 = vmax.f32 %v1547_v0, %v1691_v9  ;;  %v1693_v38 = vmul.f32 0.01, %v1551_v10  ;;  %2412 = vmatmul.mubr.bf16.gmra.mrb[112].mxu1 %v1887_v2 }
 0x256   :  { %v2154_v51 = vadd.f32 %v2153_v47, %v4925_v15  ;;  %v2155_v34 = vpop.f32.mrb[9].mxu1  ;;  %v2726_v52 = vmul.f32 %v4937_v26, %v2586_v31  ;;  %v1820_v23 = vmax.f32 %v1549_v4, %v1692_v14  ;;  %v1694_v24 = vmul.f32 0.01, %v1553_v16 }
 0x257   :  { %v2156_v39 = vadd.f32 %v2155_v34, %v4929_v20  ;;  %v2157_v55 = vpop.f32.mrb[10].mxu1  ;;  %v2727_v56 = vmul.f32 %v4941_v32, %v2587_v33  ;;  %v2854_v62 = vadd.f32 %v2725_v53, %v2724_v48  ;;  %v1821_v29 = vmax.f32 %v1551_v10, %v1693_v38  ;;  %v1556_v31 = vpop.f32.mrb[120].mxu0 }
 0x258   :  { %v2460_v60 = vmul.f32 0.01, %v2154_v51  ;;  %v2158_v61 = vadd.f32 %v2157_v55, %v4925_v15  ;;  %v2159_v58 = vpop.f32.mrb[11].mxu1  ;;  %v1822_v42 = vmax.f32 %v1553_v16, %v1694_v24  ;;  %v1557_v47 = vadd.f32 %v1556_v31, %v4733_v37  ;;  %v1558_v48 = vpop.f32.mrb[121].mxu0 }
 0x259   :  { %v2461_v3 = vmul.f32 0.01, %v2156_v39  ;;  %v2160_v63 = vadd.f32 %v2159_v58, %v4929_v20  ;;  %2855 = vadd.xlane.f32.xlu0 %v2854_v62  ;;  %v2857_v18 = vadd.f32 %v2727_v56, %v2726_v52  ;;  %v1889_v49 = vpack.c.bf16 %v1821_v29, %v1819_v13  ;;  %v1560_v53 = vpop.f32.mrb[122].mxu0 }
 0x25a   :  { %v2588_v7 = vmax.f32 %v2154_v51, %v2460_v60  ;;  %v2462_v8 = vmul.f32 0.01, %v2158_v61  ;;  %v1559_v34 = vadd.f32 %v1558_v48, %v4736_v45  ;;  %v1890_v54 = vpack.c.bf16 %v1822_v42, %v1820_v23  ;;  %v1562_v57 = vpop.f32.mrb[123].mxu0 }
 0x25b   :  { %v2589_v11 = vmax.f32 %v2156_v39, %v2461_v3  ;;  %v2463_v12 = vmul.f32 0.01, %v2160_v63  ;;  %v1695_v52 = vmul.f32 0.01, %v1557_v47  ;;  %v1561_v56 = vadd.f32 %v1560_v53, %v4733_v37 }
 0x25c   :  { %v2590_v17 = vmax.f32 %v2158_v61, %v2462_v8  ;;  %v2728_v22 = vmul.f32 %v4937_v26, %v2588_v7  ;;  %v1696_v61 = vmul.f32 0.01, %v1559_v34  ;;  %v1563_v58 = vadd.f32 %v1562_v57, %v4736_v45  ;;  %2421 = vmatprep.mubr.bf16.mxu1 %v1890_v54 }
 0x25d   :  { %v2591_v19 = vmax.f32 %v2160_v63, %v2463_v12  ;;  %v2163_v21 = vpop.f32.mrb[12].mxu1  ;;  %2858 = vadd.xlane.f32.xlu0 %v2857_v18  ;;  %v2729_v28 = vmul.f32 %v4941_v32, %v2589_v11  ;;  %v1823_v1 = vmax.f32 %v1557_v47, %v1695_v52  ;;  %v1697_v2 = vmul.f32 0.01, %v1561_v56  ;;  %2422 = vmatmul.mubr.bf16.gmra.mrb[116].mxu1 %v1889_v49 }
 0x25e   :  { %v2164_v25 = vadd.f32 %v2163_v21, %v4925_v15  ;;  %v2165_v27 = vpop.f32.mrb[13].mxu1  ;;  %v2730_v36 = vmul.f32 %v4937_v26, %v2590_v17  ;;  %v1824_v5 = vmax.f32 %v1559_v34, %v1696_v61  ;;  %v1698_v6 = vmul.f32 0.01, %v1563_v58 }
 0x25f   :  { %v2166_v30 = vadd.f32 %v2165_v27, %v4929_v20  ;;  %v2167_v35 = vpop.f32.mrb[14].mxu1  ;;  %v2731_v40 = vmul.f32 %v4941_v32, %v2591_v19  ;;  %v2860_v33 = vadd.f32 %v2729_v28, %v2728_v22  ;;  %v1825_v10 = vmax.f32 %v1561_v56, %v1697_v2  ;;  %v1566_v17 = vpop.f32.mrb[124].mxu0 }
 0x260   :  { %v2464_v43 = vmul.f32 0.01, %v2164_v25  ;;  %v2168_v41 = vadd.f32 %v2167_v35, %v4925_v15  ;;  %v2169_v46 = vpop.f32.mrb[15].mxu1  ;;  %v1826_v16 = vmax.f32 %v1563_v58, %v1698_v6  ;;  %v1567_v21 = vadd.f32 %v1566_v17, %v4733_v37  ;;  %v1568_v22 = vpop.f32.mrb[125].mxu0 }
 0x261   :  { %v2465_v50 = vmul.f32 0.01, %v2166_v30  ;;  %v2170_v51 = vadd.f32 %v2169_v46, %v4929_v20  ;;  %2861 = vadd.xlane.f32.xlu1 %v2860_v33  ;;  %v2863_v0 = vadd.f32 %v2731_v40, %v2730_v36  ;;  %v1891_v23 = vpack.c.bf16 %v1825_v10, %v1823_v1  ;;  %v1570_v28 = vpop.f32.mrb[126].mxu0 }
 0x262   :  { %v2592_v39 = vmax.f32 %v2164_v25, %v2464_v43  ;;  %v2466_v55 = vmul.f32 0.01, %v2168_v41  ;;  %v1569_v27 = vadd.f32 %v1568_v22, %v4736_v45  ;;  %v1892_v29 = vpack.c.bf16 %v1826_v16, %v1824_v5  ;;  %v1572_v42 = vpop.f32.mrb[127].mxu0 }
 0x263   :  { %v2593_v59 = vmax.f32 %v2166_v30, %v2465_v50  ;;  %v2467_v60 = vmul.f32 0.01, %v2170_v51  ;;  %2864 = vadd.xlane.f32.xlu0 %v2863_v0  ;;  %v1699_v36 = vmul.f32 0.01, %v1567_v21  ;;  %v1571_v40 = vadd.f32 %v1570_v28, %v4733_v37 }
 0x264   :  { %v2594_v62 = vmax.f32 %v2168_v41, %v2466_v55  ;;  %v2732_v4 = vmul.f32 %v4937_v26, %v2592_v39  ;;  %v1700_v41 = vmul.f32 0.01, %v1569_v27  ;;  %v1573_v46 = vadd.f32 %v1572_v42, %v4736_v45  ;;  %2431 = vmatprep.mubr.bf16.mxu1 %v1892_v29 }
 0x265   :  { %v2595_v3 = vmax.f32 %v2170_v51, %v2467_v60  ;;  %v2173_v63 = vpop.f32.mrb[16].mxu1  ;;  %v2733_v9 = vmul.f32 %v4941_v32, %v2593_v59  ;;  %v1827_v48 = vmax.f32 %v1567_v21, %v1699_v36  ;;  %v1701_v49 = vmul.f32 0.01, %v1571_v40  ;;  %2432 = vmatmul.mubr.bf16.gmra.mrb[120].mxu1 %v1891_v23 }
 0x266   :  { %v2174_v7 = vadd.f32 %v2173_v63, %v4925_v15  ;;  %v2175_v8 = vpop.f32.mrb[17].mxu1  ;;  %v2734_v12 = vmul.f32 %v4937_v26, %v2594_v62  ;;  %v1828_v53 = vmax.f32 %v1569_v27, %v1700_v41  ;;  %v1702_v54 = vmul.f32 0.01, %v1573_v46 }
 0x267   :  { %v2176_v44 = vadd.f32 %v2175_v8, %v4929_v20  ;;  %v2177_v11 = vpop.f32.mrb[18].mxu1  ;;  %v2735_v14 = vmul.f32 %v4941_v32, %v2595_v3  ;;  %v2866_v19 = vadd.f32 %v2733_v9, %v2732_v4  ;;  %v1829_v52 = vmax.f32 %v1571_v40, %v1701_v49 }
 0x268   :  { %v2468_v18 = vmul.f32 0.01, %v2174_v7  ;;  %v2178_v13 = vadd.f32 %v2177_v11, %v4925_v15  ;;  %v2179_v38 = vpop.f32.mrb[19].mxu1  ;;  %v1830_v60 = vmax.f32 %v1573_v46, %v1702_v54 }
 0x269   :  { %v2469_v24 = vmul.f32 0.01, %v2176_v44  ;;  %v2180_v25 = vadd.f32 %v2179_v38, %v4929_v20  ;;  %2867 = vadd.xlane.f32.xlu1 %v2866_v19  ;;  %v2869_v47 = vadd.f32 %v2735_v14, %v2734_v12  ;;  %v1893_v1 = vpack.c.bf16 %v1829_v52, %v1827_v48 }
 0x26a   :  { %v2596_v30 = vmax.f32 %v2174_v7, %v2468_v18  ;;  %v2470_v35 = vmul.f32 0.01, %v2178_v13  ;;  %v1894_v4 = vpack.c.bf16 %v1830_v60, %v1828_v53  ;;  %v14_v7 = vstv %s5552_s8 }
 0x26b   :  { %v2597_v31 = vmax.f32 %v2176_v44, %v2469_v24  ;;  %v2471_v43 = vmul.f32 0.01, %v2180_v25  ;;  %2870 = vadd.xlane.f32.xlu0 %v2869_v47  ;;  %15 = vst [vmem:[#allocation2] sm:$0x1] %v14_v7 }
 0x26c   :  { %v2598_v33 = vmax.f32 %v2178_v13, %v2470_v35  ;;  %v2736_v34 = vmul.f32 %v4937_v26, %v2596_v30  ;;  %2441 = vmatprep.mubr.bf16.mxu1 %v1894_v4 }
 0x26d   :  { %v2599_v50 = vmax.f32 %v2180_v25, %v2471_v43  ;;  %v2183_v51 = vpop.f32.mrb[20].mxu1  ;;  %v2737_v55 = vmul.f32 %v4941_v32, %v2597_v31  ;;  %2442 = vmatmul.mubr.bf16.gmra.mrb[124].mxu1 %v1893_v1 }
 0x26e   :  { %v2184_v37 = vadd.f32 %v2183_v51, %v4925_v15  ;;  %v2185_v39 = vpop.f32.mrb[21].mxu1  ;;  %v2738_v57 = vmul.f32 %v4937_v26, %v2598_v33 }
 0x26f   :  { %v2186_v45 = vadd.f32 %v2185_v39, %v4929_v20  ;;  %v2187_v56 = vpop.f32.mrb[22].mxu1  ;;  %v2739_v59 = vmul.f32 %v4941_v32, %v2599_v50  ;;  %v2872_v0 = vadd.f32 %v2737_v55, %v2736_v34 }
 0x270   :  { %v2472_v61 = vmul.f32 0.01, %v2184_v37  ;;  %v2188_v58 = vadd.f32 %v2187_v56, %v4925_v15  ;;  %v2189_v62 = vpop.f32.mrb[23].mxu1 }
 0x271   :  { %v2473_v2 = vmul.f32 0.01, %v2186_v45  ;;  %v2190_v3 = vadd.f32 %v2189_v62, %v4929_v20  ;;  %v2875_v63 = vadd.f32 %v2739_v59, %v2738_v57  ;;  %2873 = vadd.xlane.f32.xlu1 %v2872_v0 }
 0x272   :  { %v2600_v5 = vmax.f32 %v2184_v37, %v2472_v61  ;;  %v2474_v6 = vmul.f32 0.01, %v2188_v58 }
 0x273   :  { %v2601_v8 = vmax.f32 %v2186_v45, %v2473_v2  ;;  %v2475_v9 = vmul.f32 0.01, %v2190_v3  ;;  %2876 = vadd.xlane.f32.xlu0 %v2875_v63 }
 0x274   :  { %v2602_v10 = vmax.f32 %v2188_v58, %v2474_v6  ;;  %v2740_v44 = vmul.f32 %v4937_v26, %v2600_v5 }
 0x275   :  { %v2603_v11 = vmax.f32 %v2190_v3, %v2475_v9  ;;  %v2193_v12 = vpop.f32.mrb[24].mxu1  ;;  %v2741_v14 = vmul.f32 %v4941_v32, %v2601_v8 }
 0x276   :  { %v2194_v16 = vadd.f32 %v2193_v12, %v4925_v15  ;;  %v2195_v17 = vpop.f32.mrb[25].mxu1  ;;  %v2742_v18 = vmul.f32 %v4937_v26, %v2602_v10 }
 0x277   :  { %v2196_v13 = vadd.f32 %v2195_v17, %v4929_v20  ;;  %v2197_v38 = vpop.f32.mrb[26].mxu1  ;;  %v2878_v19 = vadd.f32 %v2741_v14, %v2740_v44  ;;  %v2743_v21 = vmul.f32 %v4941_v32, %v2603_v11 }
 0x278   :  { %v2476_v22 = vmul.f32 0.01, %v2194_v16  ;;  %v2198_v23 = vadd.f32 %v2197_v38, %v4925_v15  ;;  %v2199_v24 = vpop.f32.mrb[27].mxu1 }
 0x279   :  { %v2477_v25 = vmul.f32 0.01, %v2196_v13  ;;  %v2200_v27 = vadd.f32 %v2199_v24, %v4929_v20  ;;  %2879 = vadd.xlane.f32.xlu1 %v2878_v19  ;;  %v2881_v28 = vadd.f32 %v2743_v21, %v2742_v18 }
 0x27a   :  { %v2604_v29 = vmax.f32 %v2194_v16, %v2476_v22  ;;  %v2478_v30 = vmul.f32 0.01, %v2198_v23 }
 0x27b   :  { %v2605_v35 = vmax.f32 %v2196_v13, %v2477_v25  ;;  %v2479_v36 = vmul.f32 0.01, %v2200_v27  ;;  %2882 = vadd.xlane.f32.xlu0 %v2881_v28 }
 0x27c   :  { %v2606_v40 = vmax.f32 %v2198_v23, %v2478_v30  ;;  %v2744_v42 = vmul.f32 %v4937_v26, %v2604_v29 }
 0x27d   :  { %v2607_v31 = vmax.f32 %v2200_v27, %v2479_v36  ;;  %v2203_v43 = vpop.f32.mrb[28].mxu1  ;;  %v2745_v41 = vmul.f32 %v4941_v32, %v2605_v35 }
 0x27e   :  { %v2204_v46 = vadd.f32 %v2203_v43, %v4925_v15  ;;  %v2205_v33 = vpop.f32.mrb[29].mxu1  ;;  %v2746_v47 = vmul.f32 %v4937_v26, %v2606_v40 }
 0x27f   :  { %v2206_v48 = vadd.f32 %v2205_v33, %v4929_v20  ;;  %v2207_v49 = vpop.f32.mrb[30].mxu1  ;;  %v2884_v50 = vadd.f32 %v2745_v41, %v2744_v42  ;;  %v2747_v51 = vmul.f32 %v4941_v32, %v2607_v31 }
 0x280   :  { %v2480_v34 = vmul.f32 0.01, %v2204_v46  ;;  %v2208_v53 = vadd.f32 %v2207_v49, %v4925_v15  ;;  %v2209_v54 = vpop.f32.mrb[31].mxu1 }
 0x281   :  { %v2481_v37 = vmul.f32 0.01, %v2206_v48  ;;  %v2210_v39 = vadd.f32 %v2209_v54, %v4929_v20  ;;  %2885 = vadd.xlane.f32.xlu1 %v2884_v50  ;;  %v2887_v55 = vadd.f32 %v2747_v51, %v2746_v47 }
 0x282   :  { %v2608_v52 = vmax.f32 %v2204_v46, %v2480_v34  ;;  %v2482_v45 = vmul.f32 0.01, %v2208_v53 }
 0x283   :  { %v2609_v56 = vmax.f32 %v2206_v48, %v2481_v37  ;;  %v2483_v57 = vmul.f32 0.01, %v2210_v39  ;;  %2888 = vadd.xlane.f32.xlu0 %v2887_v55 }
 0x284   :  { %v2610_v59 = vmax.f32 %v2208_v53, %v2482_v45  ;;  %v2748_v60 = vmul.f32 %v4937_v26, %v2608_v52 }
 0x285   :  { %v2611_v61 = vmax.f32 %v2210_v39, %v2483_v57  ;;  %v2213_v58 = vpop.f32.mrb[32].mxu1  ;;  %v2749_v62 = vmul.f32 %v4941_v32, %v2609_v56 }
 0x286   :  { %v2214_v0 = vadd.f32 %v2213_v58, %v4925_v15  ;;  %v2215_v1 = vpop.f32.mrb[33].mxu1  ;;  %v2750_v2 = vmul.f32 %v4937_v26, %v2610_v59 }
 0x287   :  { %v2216_v3 = vadd.f32 %v2215_v1, %v4929_v20  ;;  %v2217_v63 = vpop.f32.mrb[34].mxu1  ;;  %v2890_v4 = vadd.f32 %v2749_v62, %v2748_v60  ;;  %v2751_v5 = vmul.f32 %v4941_v32, %v2611_v61 }
 0x288   :  { %v2484_v6 = vmul.f32 0.01, %v2214_v0  ;;  %v2218_v7 = vadd.f32 %v2217_v63, %v4925_v15  ;;  %v2219_v8 = vpop.f32.mrb[35].mxu1 }
 0x289   :  { %v2485_v9 = vmul.f32 0.01, %v2216_v3  ;;  %v2220_v10 = vadd.f32 %v2219_v8, %v4929_v20  ;;  %2891 = vadd.xlane.f32.xlu1 %v2890_v4  ;;  %v2893_v44 = vadd.f32 %v2751_v5, %v2750_v2 }
 0x28a   :  { %v2612_v11 = vmax.f32 %v2214_v0, %v2484_v6  ;;  %v2486_v12 = vmul.f32 0.01, %v2218_v7 }
 0x28b   :  { %v2613_v14 = vmax.f32 %v2216_v3, %v2485_v9  ;;  %v2487_v16 = vmul.f32 0.01, %v2220_v10  ;;  %2894 = vadd.xlane.f32.xlu0 %v2893_v44 }
 0x28c   :  { %v2614_v17 = vmax.f32 %v2218_v7, %v2486_v12  ;;  %v2752_v18 = vmul.f32 %v4937_v26, %v2612_v11 }
 0x28d   :  { %v2615_v13 = vmax.f32 %v2220_v10, %v2487_v16  ;;  %v2753_v38 = vmul.f32 %v4941_v32, %v2613_v14  ;;  %v2223_v19 = vpop.f32.mrb[36].mxu1 }
 0x28e   :  { %v2754_v21 = vmul.f32 %v4937_v26, %v2614_v17  ;;  %v2224_v22 = vadd.f32 %v2223_v19, %v4925_v15  ;;  %v2225_v23 = vpop.f32.mrb[37].mxu1 }
 0x28f   :  { %v2896_v24 = vadd.f32 %v2753_v38, %v2752_v18  ;;  %v2755_v25 = vmul.f32 %v4941_v32, %v2615_v13  ;;  %v2226_v27 = vadd.f32 %v2225_v23, %v4929_v20  ;;  %v2227_v28 = vpop.f32.mrb[38].mxu1 }
 0x290   :  { %v2488_v29 = vmul.f32 0.01, %v2224_v22  ;;  %v2228_v30 = vadd.f32 %v2227_v28, %v4925_v15  ;;  %v2229_v35 = vpop.f32.mrb[39].mxu1 }
 0x291   :  { %2897 = vadd.xlane.f32.xlu1 %v2896_v24  ;;  %v2899_v36 = vadd.f32 %v2755_v25, %v2754_v21  ;;  %v2489_v40 = vmul.f32 0.01, %v2226_v27  ;;  %v2230_v42 = vadd.f32 %v2229_v35, %v4929_v20 }
 0x292   :  { %v2616_v31 = vmax.f32 %v2224_v22, %v2488_v29  ;;  %v2490_v43 = vmul.f32 0.01, %v2228_v30 }
 0x293   :  { %2900 = vadd.xlane.f32.xlu0 %v2899_v36  ;;  %v2617_v41 = vmax.f32 %v2226_v27, %v2489_v40  ;;  %v2491_v46 = vmul.f32 0.01, %v2230_v42 }
 0x294   :  { %v2618_v33 = vmax.f32 %v2228_v30, %v2490_v43  ;;  %v2756_v47 = vmul.f32 %v4937_v26, %v2616_v31 }
 0x295   :  { %v2619_v48 = vmax.f32 %v2230_v42, %v2491_v46  ;;  %v2757_v49 = vmul.f32 %v4941_v32, %v2617_v41  ;;  %v2233_v53 = vpop.f32.mrb[40].mxu1 }
 0x296   :  { %v2758_v50 = vmul.f32 %v4937_v26, %v2618_v33  ;;  %v2234_v37 = vadd.f32 %v2233_v53, %v4925_v15  ;;  %v2235_v39 = vpop.f32.mrb[41].mxu1 }
 0x297   :  { %v2902_v51 = vadd.f32 %v2757_v49, %v2756_v47  ;;  %v2759_v34 = vmul.f32 %v4941_v32, %v2619_v48  ;;  %v2236_v55 = vadd.f32 %v2235_v39, %v4929_v20  ;;  %v2237_v52 = vpop.f32.mrb[42].mxu1 }
 0x298   :  { %v2492_v45 = vmul.f32 0.01, %v2234_v37  ;;  %v2238_v56 = vadd.f32 %v2237_v52, %v4925_v15  ;;  %v2239_v57 = vpop.f32.mrb[43].mxu1 }
 0x299   :  { %2903 = vadd.xlane.f32.xlu1 %v2902_v51  ;;  %v2905_v54 = vadd.f32 %v2759_v34, %v2758_v50  ;;  %v2493_v59 = vmul.f32 0.01, %v2236_v55  ;;  %v2240_v60 = vadd.f32 %v2239_v57, %v4929_v20 }
 0x29a   :  { %v2620_v61 = vmax.f32 %v2234_v37, %v2492_v45  ;;  %v2494_v58 = vmul.f32 0.01, %v2238_v56 }
 0x29b   :  { %2906 = vadd.xlane.f32.xlu0 %v2905_v54  ;;  %v2621_v62 = vmax.f32 %v2236_v55, %v2493_v59  ;;  %v2495_v0 = vmul.f32 0.01, %v2240_v60 }
 0x29c   :  { %v2622_v1 = vmax.f32 %v2238_v56, %v2494_v58  ;;  %v2760_v2 = vmul.f32 %v4937_v26, %v2620_v61 }
 0x29d   :  { %v2623_v3 = vmax.f32 %v2240_v60, %v2495_v0  ;;  %v2761_v63 = vmul.f32 %v4941_v32, %v2621_v62  ;;  %v2243_v7 = vpop.f32.mrb[44].mxu1 }
 0x29e   :  { %v2762_v4 = vmul.f32 %v4937_v26, %v2622_v1  ;;  %v2244_v8 = vadd.f32 %v2243_v7, %v4925_v15  ;;  %v2245_v9 = vpop.f32.mrb[45].mxu1 }
 0x29f   :  { %v2908_v5 = vadd.f32 %v2761_v63, %v2760_v2  ;;  %v2763_v6 = vmul.f32 %v4941_v32, %v2623_v3  ;;  %v2246_v44 = vadd.f32 %v2245_v9, %v4929_v20  ;;  %v2247_v11 = vpop.f32.mrb[46].mxu1 }
 0x2a0   :  { %v2496_v12 = vmul.f32 0.01, %v2244_v8  ;;  %v2248_v14 = vadd.f32 %v2247_v11, %v4925_v15  ;;  %v2249_v16 = vpop.f32.mrb[47].mxu1 }
 0x2a1   :  { %2909 = vadd.xlane.f32.xlu1 %v2908_v5  ;;  %v2911_v10 = vadd.f32 %v2763_v6, %v2762_v4  ;;  %v2497_v17 = vmul.f32 0.01, %v2246_v44  ;;  %v2250_v18 = vadd.f32 %v2249_v16, %v4929_v20 }
 0x2a2   :  { %v2624_v13 = vmax.f32 %v2244_v8, %v2496_v12  ;;  %v2498_v38 = vmul.f32 0.01, %v2248_v14 }
 0x2a3   :  { %2912 = vadd.xlane.f32.xlu0 %v2911_v10  ;;  %v2625_v19 = vmax.f32 %v2246_v44, %v2497_v17  ;;  %v2499_v21 = vmul.f32 0.01, %v2250_v18 }
 0x2a4   :  { %v2626_v22 = vmax.f32 %v2248_v14, %v2498_v38  ;;  %v2764_v23 = vmul.f32 %v4937_v26, %v2624_v13 }
 0x2a5   :  { %v2627_v24 = vmax.f32 %v2250_v18, %v2499_v21  ;;  %v2765_v25 = vmul.f32 %v4941_v32, %v2625_v19  ;;  %v2253_v27 = vpop.f32.mrb[48].mxu1 }
 0x2a6   :  { %v2766_v28 = vmul.f32 %v4937_v26, %v2626_v22  ;;  %v2254_v29 = vadd.f32 %v2253_v27, %v4925_v15  ;;  %v2255_v30 = vpop.f32.mrb[49].mxu1 }
 0x2a7   :  { %v2914_v35 = vadd.f32 %v2765_v25, %v2764_v23  ;;  %v2767_v36 = vmul.f32 %v4941_v32, %v2627_v24  ;;  %v2256_v40 = vadd.f32 %v2255_v30, %v4929_v20  ;;  %v2257_v42 = vpop.f32.mrb[50].mxu1 }
 0x2a8   :  { %v2500_v31 = vmul.f32 0.01, %v2254_v29  ;;  %v2258_v43 = vadd.f32 %v2257_v42, %v4925_v15  ;;  %v2259_v41 = vpop.f32.mrb[51].mxu1 }
 0x2a9   :  { %2915 = vadd.xlane.f32.xlu1 %v2914_v35  ;;  %v2917_v46 = vadd.f32 %v2767_v36, %v2766_v28  ;;  %v2501_v33 = vmul.f32 0.01, %v2256_v40  ;;  %v2260_v47 = vadd.f32 %v2259_v41, %v4929_v20 }
 0x2aa   :  { %v2628_v48 = vmax.f32 %v2254_v29, %v2500_v31  ;;  %v2502_v49 = vmul.f32 0.01, %v2258_v43 }
 0x2ab   :  { %2918 = vadd.xlane.f32.xlu0 %v2917_v46  ;;  %v2629_v50 = vmax.f32 %v2256_v40, %v2501_v33  ;;  %v2503_v51 = vmul.f32 0.01, %v2260_v47 }
 0x2ac   :  { %v2630_v34 = vmax.f32 %v2258_v43, %v2502_v49  ;;  %v2768_v53 = vmul.f32 %v4937_v26, %v2628_v48 }
 0x2ad   :  { %v2631_v54 = vmax.f32 %v2260_v47, %v2503_v51  ;;  %v2769_v37 = vmul.f32 %v4941_v32, %v2629_v50  ;;  %v2263_v55 = vpop.f32.mrb[52].mxu1 }
 0x2ae   :  { %v2770_v39 = vmul.f32 %v4937_v26, %v2630_v34  ;;  %v2264_v56 = vadd.f32 %v2263_v55, %v4925_v15  ;;  %v2265_v57 = vpop.f32.mrb[53].mxu1 }
 0x2af   :  { %v2920_v52 = vadd.f32 %v2769_v37, %v2768_v53  ;;  %v2771_v45 = vmul.f32 %v4941_v32, %v2631_v54  ;;  %v2266_v59 = vadd.f32 %v2265_v57, %v4929_v20  ;;  %v2267_v60 = vpop.f32.mrb[54].mxu1 }
 0x2b0   :  { %v2504_v58 = vmul.f32 0.01, %v2264_v56  ;;  %v2268_v62 = vadd.f32 %v2267_v60, %v4925_v15  ;;  %v2269_v0 = vpop.f32.mrb[55].mxu1 }
 0x2b1   :  { %2921 = vadd.xlane.f32.xlu1 %v2920_v52  ;;  %v2923_v61 = vadd.f32 %v2771_v45, %v2770_v39  ;;  %v2505_v1 = vmul.f32 0.01, %v2266_v59  ;;  %v2270_v2 = vadd.f32 %v2269_v0, %v4929_v20 }
 0x2b2   :  { %v2632_v3 = vmax.f32 %v2264_v56, %v2504_v58  ;;  %v2506_v63 = vmul.f32 0.01, %v2268_v62 }
 0x2b3   :  { %2924 = vadd.xlane.f32.xlu0 %v2923_v61  ;;  %v2633_v4 = vmax.f32 %v2266_v59, %v2505_v1  ;;  %v2507_v5 = vmul.f32 0.01, %v2270_v2 }
 0x2b4   :  { %v2634_v6 = vmax.f32 %v2268_v62, %v2506_v63  ;;  %v2772_v7 = vmul.f32 %v4937_v26, %v2632_v3 }
 0x2b5   :  { %v2635_v8 = vmax.f32 %v2270_v2, %v2507_v5  ;;  %v2273_v9 = vpop.f32.mrb[56].mxu1  ;;  %v2773_v10 = vmul.f32 %v4941_v32, %v2633_v4 }
 0x2b6   :  { %v2274_v44 = vadd.f32 %v2273_v9, %v4925_v15  ;;  %v2275_v11 = vpop.f32.mrb[57].mxu1  ;;  %v2774_v12 = vmul.f32 %v4937_v26, %v2634_v6 }
 0x2b7   :  { %v2276_v14 = vadd.f32 %v2275_v11, %v4929_v20  ;;  %v2277_v16 = vpop.f32.mrb[58].mxu1  ;;  %v2926_v17 = vadd.f32 %v2773_v10, %v2772_v7  ;;  %v2775_v18 = vmul.f32 %v4941_v32, %v2635_v8 }
 0x2b8   :  { %v2508_v13 = vmul.f32 0.01, %v2274_v44  ;;  %v2278_v38 = vadd.f32 %v2277_v16, %v4925_v15  ;;  %v2279_v19 = vpop.f32.mrb[59].mxu1 }
 0x2b9   :  { %v2509_v21 = vmul.f32 0.01, %v2276_v14  ;;  %v2280_v22 = vadd.f32 %v2279_v19, %v4929_v20  ;;  %2927 = vadd.xlane.f32.xlu1 %v2926_v17  ;;  %v2929_v23 = vadd.f32 %v2775_v18, %v2774_v12 }
 0x2ba   :  { %v2636_v24 = vmax.f32 %v2274_v44, %v2508_v13  ;;  %v2510_v25 = vmul.f32 0.01, %v2278_v38 }
 0x2bb   :  { %v2637_v27 = vmax.f32 %v2276_v14, %v2509_v21  ;;  %v2511_v28 = vmul.f32 0.01, %v2280_v22  ;;  %2930 = vadd.xlane.f32.xlu0 %v2929_v23 }
 0x2bc   :  { %v2638_v29 = vmax.f32 %v2278_v38, %v2510_v25  ;;  %v2776_v30 = vmul.f32 %v4937_v26, %v2636_v24 }
 0x2bd   :  { %v2639_v35 = vmax.f32 %v2280_v22, %v2511_v28  ;;  %v2283_v36 = vpop.f32.mrb[60].mxu1  ;;  %v2777_v40 = vmul.f32 %v4941_v32, %v2637_v27 }
 0x2be   :  { %v2284_v42 = vadd.f32 %v2283_v36, %v4925_v15  ;;  %v2285_v31 = vpop.f32.mrb[61].mxu1  ;;  %v2778_v43 = vmul.f32 %v4937_v26, %v2638_v29 }
 0x2bf   :  { %v2286_v41 = vadd.f32 %v2285_v31, %v4929_v20  ;;  %v2287_v46 = vpop.f32.mrb[62].mxu1  ;;  %v2932_v33 = vadd.f32 %v2777_v40, %v2776_v30  ;;  %v2779_v47 = vmul.f32 %v4941_v32, %v2639_v35  ;;  %v5104_v35 = vld [vmem:[#allocation2] ss:$0 sm:$0xff] }
 0x2c0   :  { %v2512_v48 = vmul.f32 0.01, %v2284_v42  ;;  %v2288_v49 = vadd.f32 %v2287_v46, %v4925_v15  ;;  %v2289_v50 = vpop.f32.mrb[63].mxu1 }
 0x2c1   :  { %v2513_v51 = vmul.f32 0.01, %v2286_v41  ;;  %v2290_v34 = vadd.f32 %v2289_v50, %v4929_v20  ;;  %2933 = vadd.xlane.f32.xlu1 %v2932_v33  ;;  %v2935_v53 = vadd.f32 %v2779_v47, %v2778_v43 }
 0x2c2   :  { %v2640_v54 = vmax.f32 %v2284_v42, %v2512_v48  ;;  %v2514_v37 = vmul.f32 0.01, %v2288_v49 }
 0x2c3   :  { %v2641_v39 = vmax.f32 %v2286_v41, %v2513_v51  ;;  %v2515_v55 = vmul.f32 0.01, %v2290_v34  ;;  %2936 = vadd.xlane.f32.xlu0 %v2935_v53 }
 0x2c4   :  { %v2642_v52 = vmax.f32 %v2288_v49, %v2514_v37  ;;  %v2780_v45 = vmul.f32 %v4937_v26, %v2640_v54 }
 0x2c5   :  { %v2643_v56 = vmax.f32 %v2290_v34, %v2515_v55  ;;  %v2293_v57 = vpop.f32.mrb[64].mxu1  ;;  %v2781_v59 = vmul.f32 %v4941_v32, %v2641_v39 }
 0x2c6   :  { %v2294_v60 = vadd.f32 %v2293_v57, %v4925_v15  ;;  %v2295_v61 = vpop.f32.mrb[65].mxu1  ;;  %v2782_v58 = vmul.f32 %v4937_v26, %v2642_v52 }
 0x2c7   :  { %v2296_v62 = vadd.f32 %v2295_v61, %v4929_v20  ;;  %v2297_v0 = vpop.f32.mrb[66].mxu1  ;;  %v2938_v1 = vadd.f32 %v2781_v59, %v2780_v45  ;;  %v2783_v2 = vmul.f32 %v4941_v32, %v2643_v56 }
 0x2c8   :  { %v2516_v3 = vmul.f32 0.01, %v2294_v60  ;;  %v2298_v63 = vadd.f32 %v2297_v0, %v4925_v15  ;;  %v2299_v4 = vpop.f32.mrb[67].mxu1 }
 0x2c9   :  { %v2517_v5 = vmul.f32 0.01, %v2296_v62  ;;  %v2300_v6 = vadd.f32 %v2299_v4, %v4929_v20  ;;  %2939 = vadd.xlane.f32.xlu1 %v2938_v1  ;;  %v2941_v7 = vadd.f32 %v2783_v2, %v2782_v58 }
 0x2ca   :  { %v2644_v8 = vmax.f32 %v2294_v60, %v2516_v3  ;;  %v2518_v9 = vmul.f32 0.01, %v2298_v63 }
 0x2cb   :  { %v2645_v10 = vmax.f32 %v2296_v62, %v2517_v5  ;;  %v2519_v44 = vmul.f32 0.01, %v2300_v6  ;;  %2942 = vadd.xlane.f32.xlu0 %v2941_v7 }
 0x2cc   :  { %v2646_v11 = vmax.f32 %v2298_v63, %v2518_v9  ;;  %v2784_v12 = vmul.f32 %v4937_v26, %v2644_v8 }
 0x2cd   :  { %v2647_v14 = vmax.f32 %v2300_v6, %v2519_v44  ;;  %v2303_v16 = vpop.f32.mrb[68].mxu1  ;;  %v2785_v17 = vmul.f32 %v4941_v32, %v2645_v10 }
 0x2ce   :  { %v2786_v18 = vmul.f32 %v4937_v26, %v2646_v11  ;;  %v2304_v13 = vadd.f32 %v2303_v16, %v4925_v15  ;;  %v2305_v38 = vpop.f32.mrb[69].mxu1 }
 0x2cf   :  { %v2787_v19 = vmul.f32 %v4941_v32, %v2647_v14  ;;  %v2306_v21 = vadd.f32 %v2305_v38, %v4929_v20  ;;  %v2307_v22 = vpop.f32.mrb[70].mxu1  ;;  %v2944_v23 = vadd.f32 %v2785_v17, %v2784_v12 }
 0x2d0   :  { %v2520_v24 = vmul.f32 0.01, %v2304_v13  ;;  %v2308_v25 = vadd.f32 %v2307_v22, %v4925_v15  ;;  %v2309_v27 = vpop.f32.mrb[71].mxu1 }
 0x2d1   :  { %v2521_v28 = vmul.f32 0.01, %v2306_v21  ;;  %v2310_v29 = vadd.f32 %v2309_v27, %v4929_v20  ;;  %2945 = vadd.xlane.f32.xlu1 %v2944_v23  ;;  %v2947_v30 = vadd.f32 %v2787_v19, %v2786_v18 }
 0x2d2   :  { %v2648_v36 = vmax.f32 %v2304_v13, %v2520_v24  ;;  %v2522_v40 = vmul.f32 0.01, %v2308_v25 }
 0x2d3   :  { %v2649_v42 = vmax.f32 %v2306_v21, %v2521_v28  ;;  %v2523_v31 = vmul.f32 0.01, %v2310_v29  ;;  %2948 = vadd.xlane.f32.xlu0 %v2947_v30 }
 0x2d4   :  { %v2650_v41 = vmax.f32 %v2308_v25, %v2522_v40  ;;  %v2788_v46 = vmul.f32 %v4937_v26, %v2648_v36 }
 0x2d5   :  { %v2651_v47 = vmax.f32 %v2310_v29, %v2523_v31  ;;  %v2313_v48 = vpop.f32.mrb[72].mxu1  ;;  %v2789_v49 = vmul.f32 %v4941_v32, %v2649_v42 }
 0x2d6   :  { %v2790_v50 = vmul.f32 %v4937_v26, %v2650_v41  ;;  %v2314_v51 = vadd.f32 %v2313_v48, %v4925_v15  ;;  %v2315_v34 = vpop.f32.mrb[73].mxu1 }
 0x2d7   :  { %v2791_v54 = vmul.f32 %v4941_v32, %v2651_v47  ;;  %v2316_v37 = vadd.f32 %v2315_v34, %v4929_v20  ;;  %v2317_v39 = vpop.f32.mrb[74].mxu1  ;;  %v2950_v55 = vadd.f32 %v2789_v49, %v2788_v46 }
 0x2d8   :  { %v2524_v52 = vmul.f32 0.01, %v2314_v51  ;;  %v2318_v45 = vadd.f32 %v2317_v39, %v4925_v15  ;;  %v2319_v56 = vpop.f32.mrb[75].mxu1 }
 0x2d9   :  { %v2525_v59 = vmul.f32 0.01, %v2316_v37  ;;  %v2320_v60 = vadd.f32 %v2319_v56, %v4929_v20  ;;  %2951 = vadd.xlane.f32.xlu1 %v2950_v55  ;;  %v2953_v61 = vadd.f32 %v2791_v54, %v2790_v50 }
 0x2da   :  { %v2652_v62 = vmax.f32 %v2314_v51, %v2524_v52  ;;  %v2526_v0 = vmul.f32 0.01, %v2318_v45 }
 0x2db   :  { %v2653_v1 = vmax.f32 %v2316_v37, %v2525_v59  ;;  %v2527_v2 = vmul.f32 0.01, %v2320_v60  ;;  %2954 = vadd.xlane.f32.xlu0 %v2953_v61 }
 0x2dc   :  { %v2792_v63 = vmul.f32 %v4937_v26, %v2652_v62  ;;  %v2654_v4 = vmax.f32 %v2318_v45, %v2526_v0 }
 0x2dd   :  { %v2793_v6 = vmul.f32 %v4941_v32, %v2653_v1  ;;  %v2655_v7 = vmax.f32 %v2320_v60, %v2527_v2  ;;  %v2323_v8 = vpop.f32.mrb[76].mxu1 }
 0x2de   :  { %v2850_v43 = vpop.xlane.xlu0 %2849  ;;  %v2794_v10 = vmul.f32 %v4937_v26, %v2654_v4  ;;  %v2324_v44 = vadd.f32 %v2323_v8, %v4925_v15  ;;  %v2325_v11 = vpop.f32.mrb[77].mxu1 }
 0x2df   :  { %v3047_v33 = vadd.f32 %v5104_v35, %v2850_v43  ;;  %v2795_v12 = vmul.f32 %v4941_v32, %v2655_v7  ;;  %v2326_v14 = vadd.f32 %v2325_v11, %v4929_v20  ;;  %v2327_v16 = vpop.f32.mrb[78].mxu1  ;;  %v2956_v17 = vadd.f32 %v2793_v6, %v2792_v63 }
 0x2e0   :  { %v2853_v57 = vpop.xlane.xlu1 %2852  ;;  %v2528_v13 = vmul.f32 0.01, %v2324_v44  ;;  %v2328_v38 = vadd.f32 %v2327_v16, %v4925_v15  ;;  %v2329_v19 = vpop.f32.mrb[79].mxu1 }
 0x2e1   :  { %v3629_v53 = vmul.f32 -1.442695, %v3047_v33  ;;  %v3048_v58 = vadd.f32 %v5104_v35, %v2853_v57  ;;  %v2529_v22 = vmul.f32 0.01, %v2326_v14  ;;  %v2330_v23 = vadd.f32 %v2329_v19, %v4929_v20  ;;  %2957 = vadd.xlane.f32.xlu1 %v2956_v17 }
 0x2e2   :  { %v2959_v24 = vadd.f32 %v2795_v12, %v2794_v10  ;;  %v2656_v27 = vmax.f32 %v2324_v44, %v2528_v13  ;;  %v2530_v28 = vmul.f32 0.01, %v2328_v38 }
 0x2e3   :  { %3792 = vpow2.f32 %v3629_v53  ;;  %v3630_v3 = vmul.f32 -1.442695, %v3048_v58  ;;  %v2657_v30 = vmax.f32 %v2326_v14, %v2529_v22  ;;  %v2531_v40 = vmul.f32 0.01, %v2330_v23 }
 0x2e4   :  { %2960 = vadd.xlane.f32.xlu0 %v2959_v24  ;;  %v2796_v42 = vmul.f32 %v4937_v26, %v2656_v27  ;;  %v2658_v31 = vmax.f32 %v2328_v38, %v2530_v28 }
 0x2e5   :  { %3794 = vpow2.f32 %v3630_v3  ;;  %v2797_v46 = vmul.f32 %v4941_v32, %v2657_v30  ;;  %v2659_v33 = vmax.f32 %v2330_v23, %v2531_v40  ;;  %v2333_v47 = vpop.f32.mrb[80].mxu1 }
 0x2e6   :  { %v2856_v5 = vpop.xlane.xlu0 %2855  ;;  %v2798_v49 = vmul.f32 %v4937_v26, %v2658_v31  ;;  %v2334_v50 = vadd.f32 %v2333_v47, %v4925_v15  ;;  %v2335_v51 = vpop.f32.mrb[81].mxu1 }
 0x2e7   :  { %v3049_v9 = vadd.f32 %v5104_v35, %v2856_v5  ;;  %v2799_v53 = vmul.f32 %v4941_v32, %v2659_v33  ;;  %v2336_v54 = vadd.f32 %v2335_v51, %v4929_v20  ;;  %v2337_v37 = vpop.f32.mrb[82].mxu1  ;;  %v2962_v39 = vadd.f32 %v2797_v46, %v2796_v42 }
 0x2e8   :  { %v2532_v45 = vmul.f32 0.01, %v2334_v50  ;;  %v2338_v56 = vadd.f32 %v2337_v37, %v4925_v15  ;;  %v2339_v57 = vpop.f32.mrb[83].mxu1 }
 0x2e9   :  { %v3631_v18 = vmul.f32 -1.442695, %v3049_v9  ;;  %v2533_v60 = vmul.f32 0.01, %v2336_v54  ;;  %v2340_v61 = vadd.f32 %v2339_v57, %v4929_v20  ;;  %2963 = vadd.xlane.f32.xlu1 %v2962_v39  ;;  %v2965_v58 = vadd.f32 %v2799_v53, %v2798_v49 }
 0x2ea   :  { %v2859_v21 = vpop.xlane.xlu0 %2858  ;;  %v2660_v62 = vmax.f32 %v2334_v50, %v2532_v45  ;;  %v2534_v0 = vmul.f32 0.01, %v2338_v56 }
 0x2eb   :  { %3796 = vpow2.f32 %v3631_v18  ;;  %v3050_v29 = vadd.f32 %v5104_v35, %v2859_v21  ;;  %v2661_v3 = vmax.f32 %v2336_v54, %v2533_v60  ;;  %v2535_v63 = vmul.f32 0.01, %v2340_v61  ;;  %2966 = vadd.xlane.f32.xlu0 %v2965_v58 }
 0x2ec   :  { %v2800_v4 = vmul.f32 %v4937_v26, %v2660_v62  ;;  %v2662_v6 = vmax.f32 %v2338_v56, %v2534_v0 }
 0x2ed   :  { %v3793_v25 = vpop.eup %3792  ;;  %v3632_v43 = vmul.f32 -1.442695, %v3050_v29  ;;  %v2801_v9 = vmul.f32 %v4941_v32, %v2661_v3  ;;  %v2663_v10 = vmax.f32 %v2340_v61, %v2535_v63  ;;  %v2343_v44 = vpop.f32.mrb[84].mxu1 }
 0x2ee   :  { %v3303_v36 = vadd.f32 1.0, %v3793_v25  ;;  %v2862_v41 = vpop.xlane.xlu1 %2861  ;;  %v2802_v12 = vmul.f32 %v4937_v26, %v2662_v6  ;;  %v2344_v14 = vadd.f32 %v2343_v44, %v4925_v15  ;;  %v2345_v16 = vpop.f32.mrb[85].mxu1 }
 0x2ef   :  { %v3051_v48 = vadd.f32 %v5104_v35, %v2862_v41  ;;  %v3795_v34 = vpop.eup %3794  ;;  %v2803_v18 = vmul.f32 %v4941_v32, %v2663_v10  ;;  %v2346_v13 = vadd.f32 %v2345_v16, %v4929_v20  ;;  %v2347_v38 = vpop.f32.mrb[86].mxu1  ;;  %v2968_v19 = vadd.f32 %v2801_v9, %v2800_v4 }
 0x2f0   :  { %3798 = vrcp.f32 %v3303_v36  ;;  %v3304_v52 = vadd.f32 1.0, %v3795_v34  ;;  %v2865_v59 = vpop.xlane.xlu0 %2864  ;;  %v2536_v22 = vmul.f32 0.01, %v2344_v14  ;;  %v2348_v23 = vadd.f32 %v2347_v38, %v4925_v15  ;;  %v2349_v24 = vpop.f32.mrb[87].mxu1 }
 0x2f1   :  { %3800 = vpow2.f32 %v3632_v43  ;;  %v3633_v55 = vmul.f32 -1.442695, %v3051_v48  ;;  %v3052_v1 = vadd.f32 %v5104_v35, %v2865_v59  ;;  %v2537_v29 = vmul.f32 0.01, %v2346_v13  ;;  %2969 = vadd.xlane.f32.xlu1 %v2968_v19 }
 0x2f2   :  { %v2350_v30 = vadd.f32 %v2349_v24, %v4929_v20  ;;  %v2971_v36 = vadd.f32 %v2803_v18, %v2802_v12  ;;  %v2664_v40 = vmax.f32 %v2344_v14, %v2536_v22  ;;  %v2538_v42 = vmul.f32 0.01, %v2348_v23 }
 0x2f3   :  { %3802 = vpow2.f32 %v3633_v55  ;;  %v3634_v7 = vmul.f32 -1.442695, %v3052_v1  ;;  %v2665_v41 = vmax.f32 %v2346_v13, %v2537_v29 }
 0x2f4   :  { %3804 = vrcp.f32 %v3304_v52  ;;  %v2539_v46 = vmul.f32 0.01, %v2350_v30  ;;  %2972 = vadd.xlane.f32.xlu0 %v2971_v36  ;;  %v2804_v47 = vmul.f32 %v4937_v26, %v2664_v40  ;;  %v2666_v49 = vmax.f32 %v2348_v23, %v2538_v42 }
 0x2f5   :  { %v3797_v2 = vpop.eup %3796  ;;  %v2805_v34 = vmul.f32 %v4941_v32, %v2665_v41  ;;  %v2353_v54 = vpop.f32.mrb[88].mxu1 }
 0x2f6   :  { %v3305_v5 = vadd.f32 1.0, %v3797_v2  ;;  %v2868_v8 = vpop.xlane.xlu1 %2867  ;;  %v2667_v53 = vmax.f32 %v2350_v30, %v2539_v46  ;;  %v2806_v55 = vmul.f32 %v4937_v26, %v2666_v49  ;;  %v2354_v52 = vadd.f32 %v2353_v54, %v4925_v15  ;;  %v2355_v45 = vpop.f32.mrb[89].mxu1 }
 0x2f7   :  { %v3053_v11 = vadd.f32 %v5104_v35, %v2868_v8  ;;  %v2356_v59 = vadd.f32 %v2355_v45, %v4929_v20  ;;  %v2357_v60 = vpop.f32.mrb[90].mxu1  ;;  %v2974_v61 = vadd.f32 %v2805_v34, %v2804_v47 }
 0x2f8   :  { %3806 = vrcp.f32 %v3305_v5  ;;  %v2871_v27 = vpop.xlane.xlu0 %2870  ;;  %v2807_v57 = vmul.f32 %v4941_v32, %v2667_v53  ;;  %v2540_v62 = vmul.f32 0.01, %v2354_v52  ;;  %v2358_v0 = vadd.f32 %v2357_v60, %v4925_v15  ;;  %v2359_v1 = vpop.f32.mrb[91].mxu1 }
 0x2f9   :  { %3808 = vpow2.f32 %v3634_v7  ;;  %v3635_v25 = vmul.f32 -1.442695, %v3053_v11  ;;  %v3054_v31 = vadd.f32 %v5104_v35, %v2871_v27  ;;  %v2541_v63 = vmul.f32 0.01, %v2356_v59  ;;  %2975 = vadd.xlane.f32.xlu1 %v2974_v61 }
 0x2fa   :  { %v3799_v17 = vpop.eup %3798  ;;  %v2360_v4 = vadd.f32 %v2359_v1, %v4929_v20  ;;  %v2977_v5 = vadd.f32 %v2807_v57, %v2806_v55  ;;  %v2668_v8 = vmax.f32 %v2354_v52, %v2540_v62  ;;  %v2542_v9 = vmul.f32 0.01, %v2358_v0 }
 0x2fb   :  { %v3801_v21 = vpop.eup %3800  ;;  %3496 = vst.msk [vmem:[%s5553_s9] sm:$0xff] %vm3495_vm0, %v3799_v17  ;;  %3810 = vpow2.f32 %v3635_v25  ;;  %v3636_v50 = vmul.f32 -1.442695, %v3054_v31  ;;  %v2669_v10 = vmax.f32 %v2356_v59, %v2541_v63 }
 0x2fc   :  { %v3306_v28 = vadd.f32 1.0, %v3801_v21  ;;  %v2543_v44 = vmul.f32 0.01, %v2360_v4  ;;  %2978 = vadd.xlane.f32.xlu0 %v2977_v5  ;;  %v2808_v14 = vmul.f32 %v4937_v26, %v2668_v8  ;;  %v2670_v16 = vmax.f32 %v2358_v0, %v2542_v9 }
 0x2fd   :  { %v3803_v43 = vpop.eup %3802  ;;  %v2809_v38 = vmul.f32 %v4941_v32, %v2669_v10  ;;  %v2363_v21 = vpop.f32.mrb[92].mxu1 }
 0x2fe   :  { %3812 = vrcp.f32 %v3306_v28  ;;  %v3805_v33 = vpop.eup %3804  ;;  %v3307_v48 = vadd.f32 1.0, %v3803_v43  ;;  %v2874_v51 = vpop.xlane.xlu1 %2873  ;;  %v2671_v19 = vmax.f32 %v2360_v4, %v2543_v44  ;;  %v2810_v23 = vmul.f32 %v4937_v26, %v2670_v16 }
 0x2ff   :  { %3497 = vst.msk [vmem:[%s5553_s9 + $0x8] sm:$0xff] %vm3495_vm0, %v3805_v33  ;;  %v3055_v37 = vadd.f32 %v5104_v35, %v2874_v51  ;;  %v2364_v24 = vadd.f32 %v2363_v21, %v4925_v15  ;;  %v2365_v25 = vpop.f32.mrb[93].mxu1  ;;  %v2980_v40 = vadd.f32 %v2809_v38, %v2808_v14 }
 0x300   :  { %v2877_v39 = vpop.xlane.xlu0 %2876  ;;  %3814 = vrcp.f32 %v3307_v48  ;;  %v2811_v29 = vmul.f32 %v4941_v32, %v2671_v19  ;;  %v2366_v30 = vadd.f32 %v2365_v25, %v4929_v20  ;;  %v2367_v36 = vpop.f32.mrb[94].mxu1 }
 0x301   :  { %v3056_v56 = vadd.f32 %v5104_v35, %v2877_v39  ;;  %3816 = vpow2.f32 %v3636_v50  ;;  %v3637_v2 = vmul.f32 -1.442695, %v3055_v37  ;;  %v2544_v31 = vmul.f32 0.01, %v2364_v24  ;;  %v2369_v41 = vpop.f32.mrb[95].mxu1  ;;  %2981 = vadd.xlane.f32.xlu1 %v2980_v40 }
 0x302   :  { %v3807_v58 = vpop.eup %3806  ;;  %v2368_v43 = vadd.f32 %v2367_v36, %v4925_v15  ;;  %v2545_v47 = vmul.f32 0.01, %v2366_v30  ;;  %v2370_v48 = vadd.f32 %v2369_v41, %v4929_v20  ;;  %v2983_v49 = vadd.f32 %v2811_v29, %v2810_v23 }
 0x303   :  { %v3809_v3 = vpop.eup %3808  ;;  %3498 = vst.msk [vmem:[%s5553_s9 + $0x10] sm:$0xff] %vm3495_vm0, %v3807_v58  ;;  %v3638_v6 = vmul.f32 -1.442695, %v3056_v56  ;;  %3818 = vpow2.f32 %v3637_v2  ;;  %v2672_v51 = vmax.f32 %v2364_v24, %v2544_v31 }
 0x304   :  { %v3308_v7 = vadd.f32 1.0, %v3809_v3  ;;  %v2546_v34 = vmul.f32 0.01, %v2368_v43  ;;  %v2673_v53 = vmax.f32 %v2366_v30, %v2545_v47  ;;  %v2547_v54 = vmul.f32 0.01, %v2370_v48  ;;  %2984 = vadd.xlane.f32.xlu0 %v2983_v49 }
 0x305   :  { %3820 = vpow2.f32 %v3638_v6  ;;  %v3811_v12 = vpop.eup %3810  ;;  %v2812_v55 = vmul.f32 %v4937_v26, %v2672_v51  ;;  %v2373_v61 = vpop.f32.mrb[96].mxu1 }
 0x306   :  { %v2880_v11 = vpop.xlane.xlu1 %2879  ;;  %3822 = vrcp.f32 %v3308_v7  ;;  %v3309_v13 = vadd.f32 1.0, %v3811_v12  ;;  %v2674_v52 = vmax.f32 %v2368_v43, %v2546_v34  ;;  %v2813_v59 = vmul.f32 %v4941_v32, %v2673_v53  ;;  %v2375_v3 = vpop.f32.mrb[97].mxu1 }
 0x307   :  { %v3057_v17 = vadd.f32 %v5104_v35, %v2880_v11  ;;  %v2675_v60 = vmax.f32 %v2370_v48, %v2547_v54  ;;  %v2374_v2 = vadd.f32 %v2373_v61, %v4925_v15  ;;  %v2376_v5 = vadd.f32 %v2375_v3, %v4929_v20  ;;  %v2377_v6 = vpop.f32.mrb[98].mxu1 }
 0x308   :  { %v3813_v18 = vpop.eup %3812  ;;  %v2883_v22 = vpop.xlane.xlu0 %2882  ;;  %3824 = vrcp.f32 %v3309_v13  ;;  %v2814_v0 = vmul.f32 %v4937_v26, %v2674_v52  ;;  %v2986_v7 = vadd.f32 %v2813_v59, %v2812_v55  ;;  %v2378_v9 = vadd.f32 %v2377_v6, %v4925_v15 }
 0x309   :  { %3499 = vst.msk [vmem:[%s5553_s9 + $0x18] sm:$0xff] %vm3495_vm0, %v3813_v18  ;;  %v3639_v27 = vmul.f32 -1.442695, %v3057_v17  ;;  %v3058_v28 = vadd.f32 %v5104_v35, %v2883_v22  ;;  %v2815_v4 = vmul.f32 %v4941_v32, %v2675_v60  ;;  %v2548_v8 = vmul.f32 0.01, %v2374_v2 }
 0x30a   :  { %v3815_v42 = vpop.eup %3814  ;;  %v2379_v10 = vpop.f32.mrb[99].mxu1  ;;  %v2549_v12 = vmul.f32 0.01, %v2376_v5  ;;  %2987 = vadd.xlane.f32.xlu1 %v2986_v7  ;;  %v2550_v13 = vmul.f32 0.01, %v2378_v9 }
 0x30b   :  { %3826 = vpow2.f32 %v3639_v27  ;;  %v3640_v46 = vmul.f32 -1.442695, %v3058_v28  ;;  %v3817_v33 = vpop.eup %3816  ;;  %3500 = vst.msk [vmem:[%s5553_s9 + $0x20] sm:$0xff] %vm3495_vm0, %v3815_v42  ;;  %v2380_v14 = vadd.f32 %v2379_v10, %v4929_v20  ;;  %v2989_v16 = vadd.f32 %v2815_v4, %v2814_v0 }
 0x30c   :  { %v3310_v50 = vadd.f32 1.0, %v3817_v33  ;;  %v2676_v18 = vmax.f32 %v2374_v2, %v2548_v8  ;;  %v2677_v21 = vmax.f32 %v2376_v5, %v2549_v12  ;;  %v2678_v27 = vmax.f32 %v2378_v9, %v2550_v13 }
 0x30d   :  { %3828 = vpow2.f32 %v3640_v46  ;;  %v3819_v39 = vpop.eup %3818  ;;  %v2551_v22 = vmul.f32 0.01, %v2380_v14  ;;  %2990 = vadd.xlane.f32.xlu0 %v2989_v16  ;;  %v2383_v40 = vpop.f32.mrb[100].mxu1 }
 0x30e   :  { %v2886_v37 = vpop.xlane.xlu1 %2885  ;;  %3830 = vrcp.f32 %v3310_v50  ;;  %v3311_v57 = vadd.f32 1.0, %v3819_v39  ;;  %v2816_v25 = vmul.f32 %v4937_v26, %v2676_v18  ;;  %v2817_v29 = vmul.f32 %v4941_v32, %v2677_v21  ;;  %v2385_v46 = vpop.f32.mrb[101].mxu1 }
 0x30f   :  { %v3059_v45 = vadd.f32 %v5104_v35, %v2886_v37  ;;  %v3821_v56 = vpop.eup %3820  ;;  %v2679_v30 = vmax.f32 %v2380_v14, %v2551_v22  ;;  %v2818_v43 = vmul.f32 %v4937_v26, %v2678_v27  ;;  %v2384_v41 = vadd.f32 %v2383_v40, %v4925_v15  ;;  %v2387_v50 = vpop.f32.mrb[102].mxu1 }
 0x310   :  { %v2889_v58 = vpop.xlane.xlu0 %2888  ;;  %v3823_v62 = vpop.eup %3822  ;;  %v3312_v1 = vadd.f32 1.0, %v3821_v56  ;;  %3832 = vrcp.f32 %v3311_v57  ;;  %v2386_v49 = vadd.f32 %v2385_v46, %v4929_v20  ;;  %v2992_v51 = vadd.f32 %v2817_v29, %v2816_v25 }
 0x311   :  { %v3641_v63 = vmul.f32 -1.442695, %v3059_v45  ;;  %3501 = vst.msk [vmem:[%s5553_s9 + $0x28] sm:$0xff] %vm3495_vm0, %v3823_v62  ;;  %v3060_v44 = vadd.f32 %v5104_v35, %v2889_v58  ;;  %v2819_v48 = vmul.f32 %v4941_v32, %v2679_v30  ;;  %v2552_v34 = vmul.f32 0.01, %v2384_v41 }
 0x312   :  { %3834 = vrcp.f32 %v3312_v1  ;;  %v3825_v11 = vpop.eup %3824  ;;  %v2388_v53 = vadd.f32 %v2387_v50, %v4925_v15  ;;  %v2389_v54 = vpop.f32.mrb[103].mxu1  ;;  %v2553_v55 = vmul.f32 0.01, %v2386_v49  ;;  %2993 = vadd.xlane.f32.xlu1 %v2992_v51 }
 0x313   :  { %3836 = vpow2.f32 %v3641_v63  ;;  %3502 = vst.msk [vmem:[%s5553_s9 + $0x30] sm:$0xff] %vm3495_vm0, %v3825_v11  ;;  %v3642_v38 = vmul.f32 -1.442695, %v3060_v44  ;;  %v2390_v52 = vadd.f32 %v2389_v54, %v4929_v20  ;;  %v2995_v45 = vadd.f32 %v2819_v48, %v2818_v43 }
 0x314   :  { %v2680_v57 = vmax.f32 %v2384_v41, %v2552_v34  ;;  %v2554_v59 = vmul.f32 0.01, %v2388_v53  ;;  %v2681_v61 = vmax.f32 %v2386_v49, %v2553_v55 }
 0x315   :  { %v3827_v17 = vpop.eup %3826  ;;  %3838 = vpow2.f32 %v3642_v38  ;;  %v2555_v58 = vmul.f32 0.01, %v2390_v52  ;;  %2996 = vadd.xlane.f32.xlu0 %v2995_v45  ;;  %v2393_v5 = vpop.f32.mrb[104].mxu1 }
 0x316   :  { %v3313_v19 = vadd.f32 1.0, %v3827_v17  ;;  %v2892_v23 = vpop.xlane.xlu1 %2891  ;;  %v2820_v0 = vmul.f32 %v4937_v26, %v2680_v57  ;;  %v2682_v2 = vmax.f32 %v2388_v53, %v2554_v59  ;;  %v2821_v63 = vmul.f32 %v4941_v32, %v2681_v61  ;;  %v2395_v10 = vpop.f32.mrb[105].mxu1 }
 0x317   :  { %v3829_v24 = vpop.eup %3828  ;;  %v3061_v28 = vadd.f32 %v5104_v35, %v2892_v23  ;;  %v2683_v4 = vmax.f32 %v2390_v52, %v2555_v58  ;;  %v2394_v9 = vadd.f32 %v2393_v5, %v4925_v15  ;;  %v2396_v16 = vadd.f32 %v2395_v10, %v4929_v20  ;;  %v2397_v17 = vpop.f32.mrb[106].mxu1 }
 0x318   :  { %3840 = vrcp.f32 %v3313_v19  ;;  %v3314_v36 = vadd.f32 1.0, %v3829_v24  ;;  %v2895_v42 = vpop.xlane.xlu0 %2894  ;;  %v3831_v31 = vpop.eup %3830  ;;  %v2822_v8 = vmul.f32 %v4937_v26, %v2682_v2  ;;  %v2998_v18 = vadd.f32 %v2821_v63, %v2820_v0 }
 0x319   :  { %v3643_v33 = vmul.f32 -1.442695, %v3061_v28  ;;  %v3062_v47 = vadd.f32 %v5104_v35, %v2895_v42  ;;  %3503 = vst.msk [vmem:[%s5553_s9 + $0x38] sm:$0xff] %vm3495_vm0, %v3831_v31  ;;  %v2823_v12 = vmul.f32 %v4941_v32, %v2683_v4  ;;  %v2556_v13 = vmul.f32 0.01, %v2394_v9 }
 0x31a   :  { %3842 = vrcp.f32 %v3314_v36  ;;  %v3833_v39 = vpop.eup %3832  ;;  %v2398_v38 = vadd.f32 %v2397_v17, %v4925_v15  ;;  %v2399_v19 = vpop.f32.mrb[107].mxu1  ;;  %v2557_v23 = vmul.f32 0.01, %v2396_v16  ;;  %2999 = vadd.xlane.f32.xlu1 %v2998_v18 }
 0x31b   :  { %3844 = vpow2.f32 %v3643_v33  ;;  %v3644_v37 = vmul.f32 -1.442695, %v3062_v47  ;;  %3504 = vst.msk [vmem:[%s5553_s9 + $0x40] sm:$0xff] %vm3495_vm0, %v3833_v39  ;;  %v2400_v24 = vadd.f32 %v2399_v19, %v4929_v20  ;;  %v3001_v25 = vadd.f32 %v2823_v12, %v2822_v8 }
 0x31c   :  { %v3835_v56 = vpop.eup %3834  ;;  %v2684_v28 = vmax.f32 %v2394_v9, %v2556_v13  ;;  %v2558_v29 = vmul.f32 0.01, %v2398_v38  ;;  %v2685_v40 = vmax.f32 %v2396_v16, %v2557_v23 }
 0x31d   :  { %3846 = vpow2.f32 %v3644_v37  ;;  %v3837_v60 = vpop.eup %3836  ;;  %3505 = vst.msk [vmem:[%s5553_s9 + $0x48] sm:$0xff] %vm3495_vm0, %v3835_v56  ;;  %v2559_v42 = vmul.f32 0.01, %v2400_v24  ;;  %3002 = vadd.xlane.f32.xlu0 %v3001_v25 }
 0x31e   :  { %v2898_v62 = vpop.xlane.xlu1 %2897  ;;  %v3315_v1 = vadd.f32 1.0, %v3837_v60  ;;  %v2824_v43 = vmul.f32 %v4937_v26, %v2684_v28  ;;  %v2686_v41 = vmax.f32 %v2398_v38, %v2558_v29  ;;  %v2825_v33 = vmul.f32 %v4941_v32, %v2685_v40 }
 0x31f   :  { %v3063_v3 = vadd.f32 %v5104_v35, %v2898_v62  ;;  %v3839_v7 = vpop.eup %3838  ;;  %v2687_v47 = vmax.f32 %v2400_v24, %v2559_v42 }
 0x320   :  { %v2901_v6 = vpop.xlane.xlu0 %2900  ;;  %3848 = vrcp.f32 %v3315_v1  ;;  %v3316_v14 = vadd.f32 1.0, %v3839_v7  ;;  %v2403_v49 = vpop.f32.mrb[108].mxu1  ;;  %v2826_v50 = vmul.f32 %v4937_v26, %v2686_v41  ;;  %v3004_v52 = vadd.f32 %v2825_v33, %v2824_v43 }
 0x321   :  { %v3645_v44 = vmul.f32 -1.442695, %v3063_v3  ;;  %v3064_v21 = vadd.f32 %v5104_v35, %v2901_v6  ;;  %v2404_v51 = vadd.f32 %v2403_v49, %v4925_v15  ;;  %v2405_v34 = vpop.f32.mrb[109].mxu1  ;;  %v2827_v37 = vmul.f32 %v4941_v32, %v2687_v47 }
 0x322   :  { %v3841_v11 = vpop.eup %3840  ;;  %v2406_v39 = vadd.f32 %v2405_v34, %v4929_v20  ;;  %v2407_v55 = vpop.f32.mrb[110].mxu1  ;;  %3005 = vadd.xlane.f32.xlu1 %v3004_v52 }
 0x323   :  { %3506 = vst.msk [vmem:[%s5553_s9 + $0x50] sm:$0xff] %vm3495_vm0, %v3841_v11  ;;  %3850 = vpow2.f32 %v3645_v44  ;;  %v3646_v30 = vmul.f32 -1.442695, %v3064_v21  ;;  %v2560_v56 = vmul.f32 0.01, %v2404_v51  ;;  %v2408_v57 = vadd.f32 %v2407_v55, %v4925_v15 }
 0x324   :  { %v3843_v22 = vpop.eup %3842  ;;  %3852 = vrcp.f32 %v3316_v14  ;;  %v2409_v59 = vpop.f32.mrb[111].mxu1  ;;  %v2561_v58 = vmul.f32 0.01, %v2406_v39  ;;  %v3007_v0 = vadd.f32 %v2827_v37, %v2826_v50 }
 0x325   :  { %v3845_v27 = vpop.eup %3844  ;;  %3507 = vst.msk [vmem:[%s5553_s9 + $0x58] sm:$0xff] %vm3495_vm0, %v3843_v22  ;;  %3854 = vpow2.f32 %v3646_v30  ;;  %v2410_v62 = vadd.f32 %v2409_v59, %v4929_v20  ;;  %v2688_v2 = vmax.f32 %v2404_v51, %v2560_v56  ;;  %v2562_v3 = vmul.f32 0.01, %v2408_v57 }
 0x326   :  { %v3317_v36 = vadd.f32 1.0, %v3845_v27  ;;  %v2904_v46 = vpop.xlane.xlu1 %2903  ;;  %v2689_v6 = vmax.f32 %v2406_v39, %v2561_v58  ;;  %3008 = vadd.xlane.f32.xlu0 %v3007_v0 }
 0x327   :  { %v3847_v31 = vpop.eup %3846  ;;  %v3065_v53 = vadd.f32 %v5104_v35, %v2904_v46  ;;  %v2563_v7 = vmul.f32 0.01, %v2410_v62  ;;  %v2828_v8 = vmul.f32 %v4937_v26, %v2688_v2  ;;  %v2690_v9 = vmax.f32 %v2408_v57, %v2562_v3 }
 0x328   :  { %3856 = vrcp.f32 %v3317_v36  ;;  %v3318_v48 = vadd.f32 1.0, %v3847_v31  ;;  %v2907_v54 = vpop.xlane.xlu0 %2906  ;;  %v2829_v10 = vmul.f32 %v4941_v32, %v2689_v6  ;;  %v2413_v11 = vpop.f32.mrb[112].mxu1 }
 0x329   :  { %v3647_v60 = vmul.f32 -1.442695, %v3065_v53  ;;  %v3066_v61 = vadd.f32 %v5104_v35, %v2907_v54  ;;  %v2691_v44 = vmax.f32 %v2410_v62, %v2563_v7  ;;  %v2830_v14 = vmul.f32 %v4937_v26, %v2690_v9  ;;  %v2415_v17 = vpop.f32.mrb[113].mxu1 }
 0x32a   :  { %3858 = vrcp.f32 %v3318_v48  ;;  %v3849_v45 = vpop.eup %3848  ;;  %v2414_v16 = vadd.f32 %v2413_v11, %v4925_v15  ;;  %v2416_v19 = vadd.f32 %v2415_v17, %v4929_v20  ;;  %v2417_v21 = vpop.f32.mrb[114].mxu1  ;;  %v3010_v22 = vadd.f32 %v2829_v10, %v2828_v8 }
 0x32b   :  { %3508 = vst.msk [vmem:[%s5553_s9 + $0x60] sm:$0xff] %vm3495_vm0, %v3849_v45  ;;  %3860 = vpow2.f32 %v3647_v60  ;;  %v3648_v63 = vmul.f32 -1.442695, %v3066_v61  ;;  %v2831_v13 = vmul.f32 %v4941_v32, %v2691_v44  ;;  %v2418_v24 = vadd.f32 %v2417_v21, %v4925_v15  ;;  %v2419_v25 = vpop.f32.mrb[115].mxu1 }
 0x32c   :  { %v2564_v23 = vmul.f32 0.01, %v2414_v16  ;;  %v2565_v29 = vmul.f32 0.01, %v2416_v19  ;;  %v2420_v30 = vadd.f32 %v2419_v25, %v4929_v20  ;;  %3011 = vadd.xlane.f32.xlu1 %v3010_v22 }
 0x32d   :  { %v3851_v1 = vpop.eup %3850  ;;  %3862 = vpow2.f32 %v3648_v63  ;;  %v3013_v36 = vadd.f32 %v2831_v13, %v2830_v14  ;;  %v2566_v42 = vmul.f32 0.01, %v2418_v24 }
 0x32e   :  { %v3853_v4 = vpop.eup %3852  ;;  %v3319_v5 = vadd.f32 1.0, %v3851_v1  ;;  %v2910_v27 = vpop.xlane.xlu1 %2909  ;;  %v2692_v40 = vmax.f32 %v2414_v16, %v2564_v23  ;;  %v2693_v41 = vmax.f32 %v2416_v19, %v2565_v29  ;;  %v2567_v46 = vmul.f32 0.01, %v2420_v30 }
 0x32f   :  { %3509 = vst.msk [vmem:[%s5553_s9 + $0x68] sm:$0xff] %vm3495_vm0, %v3853_v4  ;;  %v3855_v12 = vpop.eup %3854  ;;  %v3067_v31 = vadd.f32 %v5104_v35, %v2910_v27  ;;  %3014 = vadd.xlane.f32.xlu0 %v3013_v36  ;;  %v2694_v49 = vmax.f32 %v2418_v24, %v2566_v42 }
 0x330   :  { %3864 = vrcp.f32 %v3319_v5  ;;  %v3320_v38 = vadd.f32 1.0, %v3855_v12  ;;  %v2913_v43 = vpop.xlane.xlu0 %2912  ;;  %v2832_v48 = vmul.f32 %v4937_v26, %v2692_v40  ;;  %v2833_v34 = vmul.f32 %v4941_v32, %v2693_v41  ;;  %v2423_v54 = vpop.f32.mrb[116].mxu1 }
 0x331   :  { %v3068_v33 = vadd.f32 %v5104_v35, %v2913_v43  ;;  %v3649_v50 = vmul.f32 -1.442695, %v3067_v31  ;;  %v2695_v53 = vmax.f32 %v2420_v30, %v2567_v46  ;;  %v2834_v55 = vmul.f32 %v4937_v26, %v2694_v49  ;;  %v2425_v45 = vpop.f32.mrb[117].mxu1 }
 0x332   :  { %v3857_v18 = vpop.eup %3856  ;;  %3866 = vrcp.f32 %v3320_v38  ;;  %v2424_v52 = vadd.f32 %v2423_v54, %v4925_v15  ;;  %v2426_v60 = vadd.f32 %v2425_v45, %v4929_v20  ;;  %v2427_v61 = vpop.f32.mrb[118].mxu1  ;;  %v3016_v1 = vadd.f32 %v2833_v34, %v2832_v48 }
 0x333   :  { %3510 = vst.msk [vmem:[%s5553_s9 + $0x70] sm:$0xff] %vm3495_vm0, %v3857_v18  ;;  %v3650_v37 = vmul.f32 -1.442695, %v3068_v33  ;;  %3868 = vpow2.f32 %v3649_v50  ;;  %v2835_v57 = vmul.f32 %v4941_v32, %v2695_v53  ;;  %v2428_v62 = vadd.f32 %v2427_v61, %v4925_v15  ;;  %v2429_v0 = vpop.f32.mrb[119].mxu1 }
 0x334   :  { %v3859_v28 = vpop.eup %3858  ;;  %v2568_v58 = vmul.f32 0.01, %v2424_v52  ;;  %v2569_v2 = vmul.f32 0.01, %v2426_v60  ;;  %v2430_v3 = vadd.f32 %v2429_v0, %v4929_v20  ;;  %3017 = vadd.xlane.f32.xlu1 %v3016_v1 }
 0x335   :  { %3511 = vst.msk [vmem:[%s5553_s9 + $0x78] sm:$0xff] %vm3495_vm0, %v3859_v28  ;;  %v3861_v47 = vpop.eup %3860  ;;  %v3019_v63 = vadd.f32 %v2835_v57, %v2834_v55  ;;  %v2570_v5 = vmul.f32 0.01, %v2428_v62  ;;  %v5316_v55 = vld [vmem:[#allocation2] ss:$0 sm:$0xff] }
 0x336   :  { %v3321_v51 = vadd.f32 1.0, %v3861_v47  ;;  %v2696_v4 = vmax.f32 %v2424_v52, %v2568_v58  ;;  %v2697_v7 = vmax.f32 %v2426_v60, %v2569_v2  ;;  %v2571_v8 = vmul.f32 0.01, %v2430_v3  ;;  %v2916_v9 = vpop.xlane.xlu1 %2915 }
 0x337   :  { %v3863_v39 = vpop.eup %3862  ;;  %3020 = vadd.xlane.f32.xlu0 %v3019_v63  ;;  %v2698_v44 = vmax.f32 %v2428_v62, %v2570_v5  ;;  %v3069_v11 = vadd.f32 %v5104_v35, %v2916_v9 }
 0x338   :  { %3870 = vrcp.f32 %v3321_v51  ;;  %v3322_v59 = vadd.f32 1.0, %v3863_v39  ;;  %v2836_v10 = vmul.f32 %v4937_v26, %v2696_v4  ;;  %v2837_v12 = vmul.f32 %v4941_v32, %v2697_v7  ;;  %v2433_v16 = vpop.f32.mrb[120].mxu1  ;;  %v2919_v17 = vpop.xlane.xlu0 %2918 }
 0x339   :  { %3872 = vpow2.f32 %v3650_v37  ;;  %v2699_v14 = vmax.f32 %v2430_v3, %v2571_v8  ;;  %v2838_v18 = vmul.f32 %v4937_v26, %v2698_v44  ;;  %v2434_v13 = vadd.f32 %v2433_v16, %v4925_v15  ;;  %v2435_v19 = vpop.f32.mrb[121].mxu1 }
 0x33a   :  { %v3865_v56 = vpop.eup %3864  ;;  %3874 = vrcp.f32 %v3322_v59  ;;  %v3651_v38 = vmul.f32 -1.442695, %v3069_v11  ;;  %v3070_v21 = vadd.f32 %v5104_v35, %v2919_v17  ;;  %v2436_v23 = vadd.f32 %v2435_v19, %v4929_v20  ;;  %v2437_v24 = vpop.f32.mrb[122].mxu1 }
 0x33b   :  { %3512 = vst.msk [vmem:[%s5553_s9 + $0x80] sm:$0xff] %vm3495_vm0, %v3865_v56  ;;  %v2839_v22 = vmul.f32 %v4941_v32, %v2699_v14  ;;  %v3022_v25 = vadd.f32 %v2837_v12, %v2836_v10  ;;  %v2572_v28 = vmul.f32 0.01, %v2434_v13  ;;  %v2438_v29 = vadd.f32 %v2437_v24, %v4925_v15  ;;  %v2439_v30 = vpop.f32.mrb[123].mxu1 }
 0x33c   :  { %v3867_v6 = vpop.eup %3866  ;;  %3876 = vpow2.f32 %v3651_v38  ;;  %v3652_v36 = vmul.f32 -1.442695, %v3070_v21  ;;  %v2573_v31 = vmul.f32 0.01, %v2436_v23  ;;  %v2440_v43 = vadd.f32 %v2439_v30, %v4929_v20 }
 0x33d   :  { %3513 = vst.msk [vmem:[%s5553_s9 + $0x88] sm:$0xff] %vm3495_vm0, %v3867_v6  ;;  %v3869_v27 = vpop.eup %3868  ;;  %3023 = vadd.xlane.f32.xlu1 %v3022_v25  ;;  %v3025_v35 = vadd.f32 %v2839_v22, %v2838_v18  ;;  %v2700_v46 = vmax.f32 %v2434_v13, %v2572_v28  ;;  %v2574_v33 = vmul.f32 0.01, %v2438_v29 }
 0x33e   :  { %v3323_v42 = vadd.f32 1.0, %v3869_v27  ;;  %3878 = vpow2.f32 %v3652_v36  ;;  %v2701_v49 = vmax.f32 %v2436_v23, %v2573_v31  ;;  %v2575_v50 = vmul.f32 0.01, %v2440_v43  ;;  %v2922_v53 = vpop.xlane.xlu1 %2921 }
 0x33f   :  { %3026 = vadd.xlane.f32.xlu0 %v3025_v35  ;;  %v2840_v51 = vmul.f32 %v4937_v26, %v2700_v46  ;;  %v2702_v34 = vmax.f32 %v2438_v29, %v2574_v33  ;;  %v3071_v52 = vadd.f32 %v5316_v55, %v2922_v53 }
 0x340   :  { %3880 = vrcp.f32 %v3323_v42  ;;  %v2841_v54 = vmul.f32 %v4941_v32, %v2701_v49  ;;  %v2703_v37 = vmax.f32 %v2440_v43, %v2575_v50  ;;  %v2443_v39 = vpop.f32.mrb[124].mxu1  ;;  %v2925_v59 = vpop.xlane.xlu0 %2924 }
 0x341   :  { %v2842_v45 = vmul.f32 %v4937_v26, %v2702_v34  ;;  %v2444_v56 = vadd.f32 %v2443_v39, %v4925_v15  ;;  %v2445_v57 = vpop.f32.mrb[125].mxu1  ;;  %v3653_v61 = vmul.f32 -1.442695, %v3071_v52  ;;  %v3072_v0 = vadd.f32 %v5316_v55, %v2925_v59 }
 0x342   :  { %v3871_v40 = vpop.eup %3870  ;;  %v2843_v60 = vmul.f32 %v4941_v32, %v2703_v37  ;;  %v2446_v58 = vadd.f32 %v2445_v57, %v4929_v20  ;;  %v2447_v62 = vpop.f32.mrb[126].mxu1  ;;  %v3028_v63 = vadd.f32 %v2841_v54, %v2840_v51 }
 0x343   :  { %v3873_v41 = vpop.eup %3872  ;;  %3514 = vst.msk [vmem:[%s5553_s9 + $0x90] sm:$0xff] %vm3495_vm0, %v3871_v40  ;;  %v2576_v1 = vmul.f32 0.01, %v2444_v56  ;;  %v2448_v2 = vadd.f32 %v2447_v62, %v4925_v15  ;;  %v2449_v3 = vpop.f32.mrb[127].mxu1 }
 0x344   :  { %v3875_v47 = vpop.eup %3874  ;;  %v3324_v48 = vadd.f32 1.0, %v3873_v41  ;;  %v2577_v4 = vmul.f32 0.01, %v2446_v58  ;;  %v2450_v5 = vadd.f32 %v2449_v3, %v4929_v20  ;;  %v3654_v6 = vmul.f32 -1.442695, %v3072_v0  ;;  %3029 = vadd.xlane.f32.xlu1 %v3028_v63 }
 0x345   :  { %3515 = vst.msk [vmem:[%s5553_s9 + $0x98] sm:$0xff] %vm3495_vm0, %v3875_v47  ;;  %v2704_v8 = vmax.f32 %v2444_v56, %v2576_v1  ;;  %v2578_v9 = vmul.f32 0.01, %v2448_v2  ;;  %v3031_v10 = vadd.f32 %v2843_v60, %v2842_v45 }
 0x346   :  { %3882 = vrcp.f32 %v3324_v48  ;;  %v3877_v7 = vpop.eup %3876  ;;  %v2705_v11 = vmax.f32 %v2446_v58, %v2577_v4  ;;  %v2579_v12 = vmul.f32 0.01, %v2450_v5  ;;  %v2928_v19 = vpop.xlane.xlu1 %2927 }
 0x347   :  { %3884 = vpow2.f32 %v3653_v61  ;;  %v3325_v44 = vadd.f32 1.0, %v3877_v7  ;;  %v2844_v16 = vmul.f32 %v4937_v26, %v2704_v8  ;;  %v2706_v15 = vmax.f32 %v2448_v2, %v2578_v9  ;;  %3032 = vadd.xlane.f32.xlu0 %v3031_v10 }
 0x348   :  { %3886 = vpow2.f32 %v3654_v6  ;;  %v3879_v14 = vpop.eup %3878  ;;  %v2845_v20 = vmul.f32 %v4941_v32, %v2705_v11  ;;  %v2707_v13 = vmax.f32 %v2450_v5, %v2579_v12  ;;  %v3073_v23 = vadd.f32 %v5316_v55, %v2928_v19  ;;  %v2931_v25 = vpop.xlane.xlu0 %2930 }
 0x349   :  { %3888 = vrcp.f32 %v3325_v44  ;;  %v3326_v18 = vadd.f32 1.0, %v3879_v14  ;;  %v2846_v38 = vmul.f32 %v4937_v26, %v2706_v15  ;;  %v3074_v28 = vadd.f32 %v5316_v55, %v2931_v25 }
 0x34a   :  { %v3881_v17 = vpop.eup %3880  ;;  %v2847_v22 = vmul.f32 %v4941_v32, %v2707_v13  ;;  %v3034_v24 = vadd.f32 %v2845_v20, %v2844_v16  ;;  %v3655_v27 = vmul.f32 -1.442695, %v3073_v23 }
 0x34b   :  { %3516 = vst.msk [vmem:[%s5553_s9 + $0xa0] sm:$0xff] %vm3495_vm0, %v3881_v17  ;;  %3890 = vrcp.f32 %v3326_v18  ;;  %v3656_v30 = vmul.f32 -1.442695, %v3074_v28 }
 0x34c   :  { %3035 = vadd.xlane.f32.xlu1 %v3034_v24  ;;  %v3037_v29 = vadd.f32 %v2847_v22, %v2846_v38  ;;  %3892 = vpow2.f32 %v3655_v27 }
 0x34d   :  { %3894 = vpow2.f32 %v3656_v30 }
 0x34e   :  { %3038 = vadd.xlane.f32.xlu0 %v3037_v29  ;;  %v2934_v42 = vpop.xlane.xlu1 %2933 }
 0x34f   :  { %v3075_v43 = vadd.f32 %v5316_v55, %v2934_v42 }
 0x350   :  { %v3883_v21 = vpop.eup %3882  ;;  %v2937_v35 = vpop.xlane.xlu0 %2936 }
 0x351   :  { %3517 = vst.msk [vmem:[%s5553_s9 + $0xa8] sm:$0xff] %vm3495_vm0, %v3883_v21  ;;  %v3885_v26 = vpop.eup %3884  ;;  %v3657_v46 = vmul.f32 -1.442695, %v3075_v43  ;;  %v3076_v33 = vadd.f32 %v5316_v55, %v2937_v35 }
 0x352   :  { %v3327_v36 = vadd.f32 1.0, %v3885_v26  ;;  %v3887_v32 = vpop.eup %3886 }
 0x353   :  { %v3328_v40 = vadd.f32 1.0, %v3887_v32  ;;  %v3889_v31 = vpop.eup %3888  ;;  %v3658_v47 = vmul.f32 -1.442695, %v3076_v33 }
 0x354   :  { %3896 = vrcp.f32 %v3327_v36  ;;  %3518 = vst.msk [vmem:[%s5553_s9 + $0xb0] sm:$0xff] %vm3495_vm0, %v3889_v31 }
 0x355   :  { %3898 = vrcp.f32 %v3328_v40  ;;  %v3891_v41 = vpop.eup %3890 }
 0x356   :  { %3519 = vst.msk [vmem:[%s5553_s9 + $0xb8] sm:$0xff] %vm3495_vm0, %v3891_v41  ;;  %3900 = vpow2.f32 %v3657_v46  ;;  %v3893_v48 = vpop.eup %3892  ;;  %v2940_v50 = vpop.xlane.xlu1 %2939 }
 0x357   :  { %3902 = vpow2.f32 %v3658_v47  ;;  %v3329_v49 = vadd.f32 1.0, %v3893_v48  ;;  %v3895_v51 = vpop.eup %3894  ;;  %v3077_v34 = vadd.f32 %v5316_v55, %v2940_v50 }
 0x358   :  { %v3330_v54 = vadd.f32 1.0, %v3895_v51  ;;  %v2943_v37 = vpop.xlane.xlu0 %2942 }
 0x359   :  { %3904 = vrcp.f32 %v3329_v49  ;;  %v3659_v39 = vmul.f32 -1.442695, %v3077_v34  ;;  %v3078_v52 = vadd.f32 %v5316_v55, %v2943_v37 }
 0x35a   :  { %3906 = vrcp.f32 %v3330_v54 }
 0x35b   :  { %3908 = vpow2.f32 %v3659_v39  ;;  %v3660_v56 = vmul.f32 -1.442695, %v3078_v52 }
 0x35d   :  { %3910 = vpow2.f32 %v3660_v56 }
 0x35e   :  { %v3897_v53 = vpop.eup %3896  ;;  %v2946_v60 = vpop.xlane.xlu1 %2945 }
 0x35f   :  { %3520 = vst.msk [vmem:[%s5553_s9 + $0xc0] sm:$0xff] %vm3495_vm0, %v3897_v53  ;;  %v3899_v45 = vpop.eup %3898  ;;  %v3079_v58 = vadd.f32 %v5316_v55, %v2946_v60 }
 0x360   :  { %3521 = vst.msk [vmem:[%s5553_s9 + $0xc8] sm:$0xff] %vm3495_vm0, %v3899_v45  ;;  %v3901_v57 = vpop.eup %3900  ;;  %v2949_v0 = vpop.xlane.xlu0 %2948 }
 0x361   :  { %v3331_v59 = vadd.f32 1.0, %v3901_v57  ;;  %v3903_v61 = vpop.eup %3902  ;;  %v3661_v1 = vmul.f32 -1.442695, %v3079_v58  ;;  %v3080_v2 = vadd.f32 %v5316_v55, %v2949_v0 }
 0x362   :  { %v3332_v62 = vadd.f32 1.0, %v3903_v61 }
 0x363   :  { %3912 = vrcp.f32 %v3331_v59  ;;  %v3905_v3 = vpop.eup %3904  ;;  %v3662_v63 = vmul.f32 -1.442695, %v3080_v2 }
 0x364   :  { %3914 = vrcp.f32 %v3332_v62  ;;  %3522 = vst.msk [vmem:[%s5553_s9 + $0xd0] sm:$0xff] %vm3495_vm0, %v3905_v3  ;;  %v3907_v4 = vpop.eup %3906 }
 0x365   :  { %3916 = vpow2.f32 %v3661_v1  ;;  %v3909_v5 = vpop.eup %3908  ;;  %3523 = vst.msk [vmem:[%s5553_s9 + $0xd8] sm:$0xff] %vm3495_vm0, %v3907_v4 }
 0x366   :  { %3918 = vpow2.f32 %v3662_v63  ;;  %v3333_v6 = vadd.f32 1.0, %v3909_v5  ;;  %v2952_v7 = vpop.xlane.xlu1 %2951 }
 0x367   :  { %v3911_v8 = vpop.eup %3910  ;;  %v3081_v9 = vadd.f32 %v5316_v55, %v2952_v7 }
 0x368   :  { %3920 = vrcp.f32 %v3333_v6  ;;  %v3334_v10 = vadd.f32 1.0, %v3911_v8  ;;  %v2955_v44 = vpop.xlane.xlu0 %2954 }
 0x369   :  { %v3663_v11 = vmul.f32 -1.442695, %v3081_v9  ;;  %v3082_v12 = vadd.f32 %v5316_v55, %v2955_v44 }
 0x36a   :  { %3922 = vrcp.f32 %v3334_v10 }
 0x36b   :  { %3924 = vpow2.f32 %v3663_v11  ;;  %v3664_v16 = vmul.f32 -1.442695, %v3082_v12 }
 0x36d   :  { %v3913_v14 = vpop.eup %3912  ;;  %3926 = vpow2.f32 %v3664_v16 }
 0x36e   :  { %3524 = vst.msk [vmem:[%s5553_s9 + $0xe0] sm:$0xff] %vm3495_vm0, %v3913_v14  ;;  %v3915_v15 = vpop.eup %3914  ;;  %v2958_v20 = vpop.xlane.xlu1 %2957 }
 0x36f   :  { %v3917_v17 = vpop.eup %3916  ;;  %3525 = vst.msk [vmem:[%s5553_s9 + $0xe8] sm:$0xff] %vm3495_vm0, %v3915_v15  ;;  %v3083_v38 = vadd.f32 %v5316_v55, %v2958_v20 }
 0x370   :  { %v3335_v18 = vadd.f32 1.0, %v3917_v17  ;;  %v3919_v13 = vpop.eup %3918 }
 0x371   :  { %v3336_v19 = vadd.f32 1.0, %v3919_v13  ;;  %v2961_v21 = vpop.xlane.xlu0 %2960  ;;  %v3665_v22 = vmul.f32 -1.442695, %v3083_v38 }
 0x372   :  { %3928 = vrcp.f32 %v3335_v18  ;;  %v3084_v23 = vadd.f32 %v5316_v55, %v2961_v21  ;;  %v3921_v24 = vpop.eup %3920 }
 0x373   :  { %3930 = vrcp.f32 %v3336_v19  ;;  %3526 = vst.msk [vmem:[%s5553_s9 + $0xf0] sm:$0xff] %vm3495_vm0, %v3921_v24 }
 0x374   :  { %3932 = vpow2.f32 %v3665_v22  ;;  %v3666_v25 = vmul.f32 -1.442695, %v3084_v23  ;;  %v3923_v27 = vpop.eup %3922 }
 0x375   :  { %v3925_v28 = vpop.eup %3924  ;;  %3527 = vst.msk [vmem:[%s5553_s9 + $0xf8] sm:$0xff] %vm3495_vm0, %v3923_v27 }
 0x376   :  { %3934 = vpow2.f32 %v3666_v25  ;;  %v3337_v29 = vadd.f32 1.0, %v3925_v28  ;;  %v2964_v26 = vpop.xlane.xlu1 %2963 }
 0x377   :  { %v3927_v30 = vpop.eup %3926  ;;  %v3085_v36 = vadd.f32 %v5316_v55, %v2964_v26 }
 0x378   :  { %3936 = vrcp.f32 %v3337_v29  ;;  %v3338_v32 = vadd.f32 1.0, %v3927_v30  ;;  %v2967_v40 = vpop.xlane.xlu0 %2966 }
 0x379   :  { %v3667_v42 = vmul.f32 -1.442695, %v3085_v36  ;;  %v3086_v31 = vadd.f32 %v5316_v55, %v2967_v40 }
 0x37a   :  { %3938 = vrcp.f32 %v3338_v32 }
 0x37b   :  { %3940 = vpow2.f32 %v3667_v42  ;;  %v3668_v35 = vmul.f32 -1.442695, %v3086_v31 }
 0x37c   :  { %v3929_v43 = vpop.eup %3928 }
 0x37d   :  { %3528 = vst.msk [vmem:[%s5553_s9 + $0x100] sm:$0xff] %vm3495_vm0, %v3929_v43  ;;  %v3931_v41 = vpop.eup %3930  ;;  %3942 = vpow2.f32 %v3668_v35 }
 0x37e   :  { %v3933_v46 = vpop.eup %3932  ;;  %3529 = vst.msk [vmem:[%s5553_s9 + $0x108] sm:$0xff] %vm3495_vm0, %v3931_v41  ;;  %v2970_v47 = vpop.xlane.xlu1 %2969 }
 0x37f   :  { %v3339_v33 = vadd.f32 1.0, %v3933_v46  ;;  %v3087_v49 = vadd.f32 %v5316_v55, %v2970_v47 }
 0x380   :  { %v3935_v48 = vpop.eup %3934 }
 0x381   :  { %3944 = vrcp.f32 %v3339_v33  ;;  %v3340_v50 = vadd.f32 1.0, %v3935_v48  ;;  %v2973_v51 = vpop.xlane.xlu0 %2972  ;;  %v3669_v34 = vmul.f32 -1.442695, %v3087_v49 }
 0x382   :  { %v3088_v53 = vadd.f32 %v5316_v55, %v2973_v51  ;;  %v3937_v54 = vpop.eup %3936 }
 0x383   :  { %3946 = vrcp.f32 %v3340_v50  ;;  %3530 = vst.msk [vmem:[%s5553_s9 + $0x110] sm:$0xff] %vm3495_vm0, %v3937_v54 }
 0x384   :  { %3948 = vpow2.f32 %v3669_v34  ;;  %v3670_v37 = vmul.f32 -1.442695, %v3088_v53  ;;  %v3939_v39 = vpop.eup %3938 }
 0x385   :  { %v3941_v52 = vpop.eup %3940  ;;  %3531 = vst.msk [vmem:[%s5553_s9 + $0x118] sm:$0xff] %vm3495_vm0, %v3939_v39 }
 0x386   :  { %3950 = vpow2.f32 %v3670_v37  ;;  %v3341_v45 = vadd.f32 1.0, %v3941_v52  ;;  %v2976_v56 = vpop.xlane.xlu1 %2975 }
 0x387   :  { %v3943_v57 = vpop.eup %3942  ;;  %v3089_v59 = vadd.f32 %v5316_v55, %v2976_v56 }
 0x388   :  { %3952 = vrcp.f32 %v3341_v45  ;;  %v3342_v60 = vadd.f32 1.0, %v3943_v57 }
 0x389   :  { %v2979_v61 = vpop.xlane.xlu0 %2978  ;;  %v3671_v58 = vmul.f32 -1.442695, %v3089_v59 }
 0x38a   :  { %v3090_v62 = vadd.f32 %v5316_v55, %v2979_v61  ;;  %3954 = vrcp.f32 %v3342_v60 }
 0x38b   :  { %v3945_v0 = vpop.eup %3944  ;;  %3956 = vpow2.f32 %v3671_v58 }
 0x38c   :  { %3532 = vst.msk [vmem:[%s5553_s9 + $0x120] sm:$0xff] %vm3495_vm0, %v3945_v0  ;;  %v3672_v1 = vmul.f32 -1.442695, %v3090_v62 }
 0x38d   :  { %v3947_v2 = vpop.eup %3946 }
 0x38e   :  { %v3949_v3 = vpop.eup %3948  ;;  %3533 = vst.msk [vmem:[%s5553_s9 + $0x128] sm:$0xff] %vm3495_vm0, %v3947_v2  ;;  %3958 = vpow2.f32 %v3672_v1  ;;  %v2982_v4 = vpop.xlane.xlu1 %2981 }
 0x38f   :  { %v3343_v63 = vadd.f32 1.0, %v3949_v3  ;;  %v3091_v6 = vadd.f32 %v5316_v55, %v2982_v4 }
 0x390   :  { %v3951_v5 = vpop.eup %3950 }
 0x391   :  { %3960 = vrcp.f32 %v3343_v63  ;;  %v3344_v7 = vadd.f32 1.0, %v3951_v5  ;;  %v2985_v8 = vpop.xlane.xlu0 %2984  ;;  %v3673_v9 = vmul.f32 -1.442695, %v3091_v6 }
 0x392   :  { %v3092_v10 = vadd.f32 %v5316_v55, %v2985_v8  ;;  %v3953_v44 = vpop.eup %3952 }
 0x393   :  { %3962 = vrcp.f32 %v3344_v7  ;;  %3534 = vst.msk [vmem:[%s5553_s9 + $0x130] sm:$0xff] %vm3495_vm0, %v3953_v44 }
 0x394   :  { %3964 = vpow2.f32 %v3673_v9  ;;  %v3674_v11 = vmul.f32 -1.442695, %v3092_v10  ;;  %v3955_v12 = vpop.eup %3954 }
 0x395   :  { %v3957_v14 = vpop.eup %3956  ;;  %3535 = vst.msk [vmem:[%s5553_s9 + $0x138] sm:$0xff] %vm3495_vm0, %v3955_v12 }
 0x396   :  { %3966 = vpow2.f32 %v3674_v11  ;;  %v3345_v16 = vadd.f32 1.0, %v3957_v14 }
 0x397   :  { %v2988_v15 = vpop.xlane.xlu1 %2987 }
 0x398   :  { %v3959_v17 = vpop.eup %3958  ;;  %v3093_v18 = vadd.f32 %v5316_v55, %v2988_v15  ;;  %3968 = vrcp.f32 %v3345_v16 }
 0x399   :  { %v3346_v20 = vadd.f32 1.0, %v3959_v17 }
 0x39a   :  { %v2991_v13 = vpop.xlane.xlu0 %2990  ;;  %v3675_v38 = vmul.f32 -1.442695, %v3093_v18 }
 0x39b   :  { %v3094_v19 = vadd.f32 %v5316_v55, %v2991_v13  ;;  %v3961_v21 = vpop.eup %3960  ;;  %3970 = vrcp.f32 %v3346_v20 }
 0x39c   :  { %3536 = vst.msk [vmem:[%s5553_s9 + $0x140] sm:$0xff] %vm3495_vm0, %v3961_v21  ;;  %3972 = vpow2.f32 %v3675_v38 }
 0x39d   :  { %v3676_v22 = vmul.f32 -1.442695, %v3094_v19  ;;  %v3963_v23 = vpop.eup %3962 }
 0x39e   :  { %v3965_v24 = vpop.eup %3964  ;;  %3537 = vst.msk [vmem:[%s5553_s9 + $0x148] sm:$0xff] %vm3495_vm0, %v3963_v23 }
 0x39f   :  { %3974 = vpow2.f32 %v3676_v22  ;;  %v3347_v25 = vadd.f32 1.0, %v3965_v24  ;;  %v2994_v27 = vpop.xlane.xlu1 %2993 }
 0x3a0   :  { %v3967_v28 = vpop.eup %3966  ;;  %v3095_v29 = vadd.f32 %v5316_v55, %v2994_v27 }
 0x3a1   :  { %3976 = vrcp.f32 %v3347_v25  ;;  %v3348_v26 = vadd.f32 1.0, %v3967_v28 }
 0x3a2   :  { %v2997_v30 = vpop.xlane.xlu0 %2996  ;;  %v3677_v36 = vmul.f32 -1.442695, %v3095_v29  ;;  %v3969_v40 = vpop.eup %3968 }
 0x3a3   :  { %v3096_v32 = vadd.f32 %v5316_v55, %v2997_v30  ;;  %3978 = vrcp.f32 %v3348_v26  ;;  %3538 = vst.msk [vmem:[%s5553_s9 + $0x150] sm:$0xff] %vm3495_vm0, %v3969_v40 }
 0x3a4   :  { %3980 = vpow2.f32 %v3677_v36 }
 0x3a5   :  { %v3678_v42 = vmul.f32 -1.442695, %v3096_v32  ;;  %v3971_v31 = vpop.eup %3970 }
 0x3a6   :  { %v3973_v43 = vpop.eup %3972  ;;  %3539 = vst.msk [vmem:[%s5553_s9 + $0x158] sm:$0xff] %vm3495_vm0, %v3971_v31 }
 0x3a7   :  { %3982 = vpow2.f32 %v3678_v42  ;;  %v3349_v35 = vadd.f32 1.0, %v3973_v43  ;;  %v3000_v41 = vpop.xlane.xlu1 %2999 }
 0x3a8   :  { %v3097_v33 = vadd.f32 %v5316_v55, %v3000_v41 }
 0x3a9   :  { %v3975_v46 = vpop.eup %3974  ;;  %3984 = vrcp.f32 %v3349_v35 }
 0x3aa   :  { %v3350_v47 = vadd.f32 1.0, %v3975_v46  ;;  %v3003_v48 = vpop.xlane.xlu0 %3002  ;;  %v3679_v49 = vmul.f32 -1.442695, %v3097_v33 }
 0x3ab   :  { %v3098_v50 = vadd.f32 %v5316_v55, %v3003_v48  ;;  %v3977_v51 = vpop.eup %3976 }
 0x3ac   :  { %3986 = vrcp.f32 %v3350_v47  ;;  %3540 = vst.msk [vmem:[%s5553_s9 + $0x160] sm:$0xff] %vm3495_vm0, %v3977_v51 }
 0x3ad   :  { %3988 = vpow2.f32 %v3679_v49  ;;  %v3680_v34 = vmul.f32 -1.442695, %v3098_v50  ;;  %v3979_v53 = vpop.eup %3978 }
 0x3ae   :  { %v3981_v54 = vpop.eup %3980  ;;  %3541 = vst.msk [vmem:[%s5553_s9 + $0x168] sm:$0xff] %vm3495_vm0, %v3979_v53 }
 0x3af   :  { %3990 = vpow2.f32 %v3680_v34  ;;  %v3351_v37 = vadd.f32 1.0, %v3981_v54  ;;  %v3006_v39 = vpop.xlane.xlu1 %3005 }
 0x3b0   :  { %v3099_v45 = vadd.f32 %v5316_v55, %v3006_v39 }
 0x3b1   :  { %v3983_v52 = vpop.eup %3982  ;;  %3992 = vrcp.f32 %v3351_v37 }
 0x3b2   :  { %v3352_v56 = vadd.f32 1.0, %v3983_v52  ;;  %v3681_v59 = vmul.f32 -1.442695, %v3099_v45 }
 0x3b3   :  { %v3009_v57 = vpop.xlane.xlu0 %3008  ;;  %v3985_v61 = vpop.eup %3984 }
 0x3b4   :  { %v3100_v60 = vadd.f32 %v5316_v55, %v3009_v57  ;;  %3994 = vrcp.f32 %v3352_v56  ;;  %3542 = vst.msk [vmem:[%s5553_s9 + $0x170] sm:$0xff] %vm3495_vm0, %v3985_v61 }
 0x3b5   :  { %3996 = vpow2.f32 %v3681_v59 }
 0x3b6   :  { %v3682_v58 = vmul.f32 -1.442695, %v3100_v60  ;;  %v3987_v62 = vpop.eup %3986 }
 0x3b7   :  { %v3989_v0 = vpop.eup %3988  ;;  %3543 = vst.msk [vmem:[%s5553_s9 + $0x178] sm:$0xff] %vm3495_vm0, %v3987_v62 }
 0x3b8   :  { %3998 = vpow2.f32 %v3682_v58  ;;  %v3353_v1 = vadd.f32 1.0, %v3989_v0 }
 0x3b9   :  { %v3012_v2 = vpop.xlane.xlu1 %3011  ;;  %v3991_v3 = vpop.eup %3990 }
 0x3ba   :  { %v3101_v63 = vadd.f32 %v5316_v55, %v3012_v2  ;;  %4000 = vrcp.f32 %v3353_v1  ;;  %v3354_v4 = vadd.f32 1.0, %v3991_v3 }
 0x3bb   :  { %v3993_v8 = vpop.eup %3992 }
 0x3bc   :  { %v3015_v5 = vpop.xlane.xlu0 %3014  ;;  %v3683_v6 = vmul.f32 -1.442695, %v3101_v63  ;;  %4002 = vrcp.f32 %v3354_v4  ;;  %3544 = vst.msk [vmem:[%s5553_s9 + $0x180] sm:$0xff] %vm3495_vm0, %v3993_v8 }
 0x3bd   :  { %v3102_v7 = vadd.f32 %v5316_v55, %v3015_v5 }
 0x3be   :  { %4004 = vpow2.f32 %v3683_v6  ;;  %v3995_v10 = vpop.eup %3994 }
 0x3bf   :  { %v3684_v9 = vmul.f32 -1.442695, %v3102_v7  ;;  %v3997_v44 = vpop.eup %3996  ;;  %3545 = vst.msk [vmem:[%s5553_s9 + $0x188] sm:$0xff] %vm3495_vm0, %v3995_v10 }
 0x3c0   :  { %v3355_v11 = vadd.f32 1.0, %v3997_v44 }
 0x3c1   :  { %4006 = vpow2.f32 %v3684_v9  ;;  %v3018_v14 = vpop.xlane.xlu1 %3017 }
 0x3c2   :  { %v3999_v12 = vpop.eup %3998  ;;  %4008 = vrcp.f32 %v3355_v11  ;;  %v3103_v15 = vadd.f32 %v5316_v55, %v3018_v14 }
 0x3c3   :  { %v3356_v16 = vadd.f32 1.0, %v3999_v12 }
 0x3c4   :  { %v3021_v17 = vpop.xlane.xlu0 %3020  ;;  %v4001_v20 = vpop.eup %4000  ;;  %v3685_v13 = vmul.f32 -1.442695, %v3103_v15 }
 0x3c5   :  { %v3104_v18 = vadd.f32 %v5316_v55, %v3021_v17  ;;  %4010 = vrcp.f32 %v3356_v16  ;;  %3546 = vst.msk [vmem:[%s5553_s9 + $0x190] sm:$0xff] %vm3495_vm0, %v4001_v20 }
 0x3c6   :  { %v4003_v19 = vpop.eup %4002  ;;  %4012 = vpow2.f32 %v3685_v13 }
 0x3c7   :  { %v3686_v38 = vmul.f32 -1.442695, %v3104_v18  ;;  %3547 = vst.msk [vmem:[%s5553_s9 + $0x198] sm:$0xff] %vm3495_vm0, %v4003_v19 }
 0x3c8   :  { %v4005_v21 = vpop.eup %4004 }
 0x3c9   :  { %4014 = vpow2.f32 %v3686_v38  ;;  %v3357_v22 = vadd.f32 1.0, %v4005_v21 }
 0x3ca   :  { %v3024_v23 = vpop.xlane.xlu1 %3023 }
 0x3cb   :  { %v4007_v24 = vpop.eup %4006  ;;  %v3105_v25 = vadd.f32 %v5316_v55, %v3024_v23  ;;  %4016 = vrcp.f32 %v3357_v22 }
 0x3cc   :  { %v3358_v27 = vadd.f32 1.0, %v4007_v24  ;;  %v3027_v28 = vpop.xlane.xlu0 %3026  ;;  %v4009_v30 = vpop.eup %4008 }
 0x3cd   :  { %v3687_v29 = vmul.f32 -1.442695, %v3105_v25  ;;  %v3106_v26 = vadd.f32 %v5316_v55, %v3027_v28  ;;  %3548 = vst.msk [vmem:[%s5553_s9 + $0x1a0] sm:$0xff] %vm3495_vm0, %v4009_v30 }
 0x3ce   :  { %4018 = vrcp.f32 %v3358_v27 }
 0x3cf   :  { %4020 = vpow2.f32 %v3687_v29  ;;  %v3688_v36 = vmul.f32 -1.442695, %v3106_v26  ;;  %v4011_v32 = vpop.eup %4010 }
 0x3d0   :  { %3549 = vst.msk [vmem:[%s5553_s9 + $0x1a8] sm:$0xff] %vm3495_vm0, %v4011_v32  ;;  %v4013_v40 = vpop.eup %4012 }
 0x3d1   :  { %4022 = vpow2.f32 %v3688_v36  ;;  %v3359_v31 = vadd.f32 1.0, %v4013_v40  ;;  %v3030_v43 = vpop.xlane.xlu1 %3029 }
 0x3d2   :  { %v3107_v41 = vadd.f32 %v5316_v55, %v3030_v43 }
 0x3d3   :  { %v4015_v42 = vpop.eup %4014  ;;  %4024 = vrcp.f32 %v3359_v31 }
 0x3d4   :  { %v3360_v35 = vadd.f32 1.0, %v4015_v42  ;;  %v3033_v46 = vpop.xlane.xlu0 %3032  ;;  %v3689_v47 = vmul.f32 -1.442695, %v3107_v41 }
 0x3d5   :  { %v4017_v33 = vpop.eup %4016  ;;  %v3108_v48 = vadd.f32 %v5316_v55, %v3033_v46 }
 0x3d6   :  { %4026 = vrcp.f32 %v3360_v35  ;;  %3550 = vst.msk [vmem:[%s5553_s9 + $0x1b0] sm:$0xff] %vm3495_vm0, %v4017_v33 }
 0x3d7   :  { %4028 = vpow2.f32 %v3689_v47  ;;  %v3690_v50 = vmul.f32 -1.442695, %v3108_v48 }
 0x3d8   :  { %v4019_v49 = vpop.eup %4018 }
 0x3d9   :  { %v4021_v51 = vpop.eup %4020  ;;  %3551 = vst.msk [vmem:[%s5553_s9 + $0x1b8] sm:$0xff] %vm3495_vm0, %v4019_v49  ;;  %4030 = vpow2.f32 %v3690_v50  ;;  %v3036_v53 = vpop.xlane.xlu1 %3035 }
 0x3da   :  { %v3361_v34 = vadd.f32 1.0, %v4021_v51  ;;  %v3109_v37 = vadd.f32 %v5316_v55, %v3036_v53 }
 0x3db   :  { %v4023_v54 = vpop.eup %4022  ;;  %v3039_v52 = vpop.xlane.xlu0 %3038 }
 0x3dc   :  { %4032 = vrcp.f32 %v3361_v34  ;;  %v3362_v39 = vadd.f32 1.0, %v4023_v54  ;;  %v3691_v45 = vmul.f32 -1.442695, %v3109_v37  ;;  %v3110_v56 = vadd.f32 %v5316_v55, %v3039_v52 }
 0x3dd   :  { %v4025_v57 = vpop.eup %4024 }
 0x3de   :  { %4034 = vrcp.f32 %v3362_v39  ;;  %v3692_v59 = vmul.f32 -1.442695, %v3110_v56  ;;  %3552 = vst.msk [vmem:[%s5553_s9 + $0x1c0] sm:$0xff] %vm3495_vm0, %v4025_v57 }
 0x3df   :  { %4036 = vpow2.f32 %v3691_v45 }
 0x3e0   :  { %v4027_v60 = vpop.eup %4026  ;;  %4038 = vpow2.f32 %v3692_v59 }
 0x3e1   :  { %3553 = vst.msk [vmem:[%s5553_s9 + $0x1c8] sm:$0xff] %vm3495_vm0, %v4027_v60  ;;  %v4029_v61 = vpop.eup %4028 }
 0x3e2   :  { %v3363_v58 = vadd.f32 1.0, %v4029_v61 }
 0x3e3   :  { %v4031_v62 = vpop.eup %4030 }
 0x3e4   :  { %4040 = vrcp.f32 %v3363_v58  ;;  %v3364_v55 = vadd.f32 1.0, %v4031_v62 }
 0x3e6   :  { %v4033_v0 = vpop.eup %4032  ;;  %4042 = vrcp.f32 %v3364_v55 }
 0x3e7   :  { %3554 = vst.msk [vmem:[%s5553_s9 + $0x1d0] sm:$0xff] %vm3495_vm0, %v4033_v0 }
 0x3e8   :  { %v4035_v1 = vpop.eup %4034 }
 0x3e9   :  { %v4037_v2 = vpop.eup %4036  ;;  %3555 = vst.msk [vmem:[%s5553_s9 + $0x1d8] sm:$0xff] %vm3495_vm0, %v4035_v1 }
 0x3ea   :  { %v3365_v3 = vadd.f32 1.0, %v4037_v2  ;;  %v4039_v63 = vpop.eup %4038 }
 0x3eb   :  { %v3366_v4 = vadd.f32 1.0, %v4039_v63 }
 0x3ec   :  { %4044 = vrcp.f32 %v3365_v3 }
 0x3ed   :  { %4046 = vrcp.f32 %v3366_v4 }
 0x3ee   :  { %v4041_v5 = vpop.eup %4040 }
 0x3ef   :  { %3556 = vst.msk [vmem:[%s5553_s9 + $0x1e0] sm:$0xff] %vm3495_vm0, %v4041_v5 }
 0x3f0   :  { %v4043_v6 = vpop.eup %4042 }
 0x3f1   :  { %3557 = vst.msk [vmem:[%s5553_s9 + $0x1e8] sm:$0xff] %vm3495_vm0, %v4043_v6 }
 0x3f6   :  { %v4045_v7 = vpop.eup %4044 }
 0x3f7   :  { %3558 = vst.msk [vmem:[%s5553_s9 + $0x1f0] sm:$0xff] %vm3495_vm0, %v4045_v7  ;;  %v4047_v8 = vpop.eup %4046 }
 0x3f8   :  { %3559 = vst.msk [vmem:[%s5553_s9 + $0x1f8] sm:$0xff] %vm3495_vm0, %v4047_v8 }

</bundles_post_ra>
